<compile_context>
chip_gen: v7x
topology: tpu7x:2x2x1
jax: 0.10.0
libtpu: 0.0.40
codegen_flags: <defaults>
</compile_context>

<pallas_src>
import jax
import jax.numpy as jnp
from jax import lax
from jax.experimental import pallas as pl
from jax.experimental.pallas import tpu as pltpu

INPUT_SIZE = 22
HIDDEN = 128
NUM_LAYERS = 5
NUM_CLASSES = 4
SUBLANE = 8
LANE = 128


def rnn_kernel(x_ref, wih0_ref, wih_ref, whh_ref, b_ref, wfc_ref, bfc_ref,
               out_ref, seq):
    """Multi-layer tanh RNN + final linear layer on the last hidden state.

    x_ref    : (T*Bp, IN)    flattened time-major input (batch padded)
    wih0_ref : (IN, H)       layer-0 input->hidden weights (transposed)
    wih_ref  : (L-1, H, H)   layers 1..L-1 input->hidden weights (transposed)
    whh_ref  : (L, H, H)     hidden->hidden weights (transposed)
    b_ref    : (L, 1, H)     combined bias (b_ih + b_hh)
    wfc_ref  : (H, Cp)       fc weight (transposed, lane-padded)
    bfc_ref  : (1, Cp)       fc bias (lane-padded)
    out_ref  : (Bp, Cp)      logits (padded rows/cols sliced off by wrapper)
    seq      : (T, Bp, H)    scratch: pre-activations -> hidden sequence
    """
    T, Bp, H = seq.shape
    L = whh_ref.shape[0]

    h_last = jnp.zeros((Bp, H), jnp.float32)

    for layer in range(L):                       # static (unrolled) layer loop
        # --- hoisted input->hidden projection: ONE batched MXU matmul + bias ---
        if layer == 0:
            src2d = x_ref[...]                   # (T*Bp, IN), already flat
            w_in = wih0_ref[...]
        else:
            src2d = seq[...].reshape(T * Bp, H)  # H=128 -> lane-aligned reshape
            w_in = wih_ref[layer - 1]
        pre = jnp.dot(src2d, w_in, preferred_element_type=jnp.float32) + b_ref[layer]
        seq[...] = pre.reshape(T, Bp, H)         # overwrite in place

        # --- serial recurrence: only h @ whh remains on the critical chain ---
        is_last = layer == L - 1

        def step(t, h, layer=layer, is_last=is_last):
            h_new = jnp.tanh(seq[t]
                             + jnp.dot(h, whh_ref[layer],
                                       preferred_element_type=jnp.float32))
            if not is_last:
                seq[t] = h_new      # feeds the next layer's batched projection
            return h_new

        h_last = lax.fori_loop(0, T, step,
                               jnp.zeros((Bp, H), jnp.float32), unroll=True)

    # h_last holds the last-timestep hidden state of the last layer.
    out_ref[...] = (jnp.dot(h_last, wfc_ref[...],
                            preferred_element_type=jnp.float32)
                    + bfc_ref[...])


def rnn_forward(x, params):
    """x: (B, INPUT_SIZE, T) float32  ->  logits (B, NUM_CLASSES)."""
    wih0, wih, whh, b, wfc, bfc = params
    B, F, T = x.shape
    Bp = ((B + SUBLANE - 1) // SUBLANE) * SUBLANE
    # permute(0, 2, 1) then go time-major; pad batch (sublanes), NOT features.
    xt = jnp.transpose(x, (2, 0, 1)).astype(jnp.float32)       # (T, B, F)
    xt = jnp.pad(xt, ((0, 0), (0, Bp - B), (0, 0)))            # (T, Bp, F)
    x2d = xt.reshape(T * Bp, F)                                 # (T*Bp, F)

    # Pad fc to 128 lanes so the logits store is unmasked (lane-dense output).
    Cp = LANE
    wfc_p = jnp.pad(wfc, ((0, 0), (0, Cp - NUM_CLASSES)))
    bfc_p = jnp.pad(bfc, ((0, 0), (0, Cp - NUM_CLASSES)))

    out = pl.pallas_call(
        rnn_kernel,
        out_shape=jax.ShapeDtypeStruct((Bp, Cp), jnp.float32),
        grid=(1,),
        in_specs=[
            pl.BlockSpec(x2d.shape, lambda i: (0, 0)),
            pl.BlockSpec(wih0.shape, lambda i: (0, 0)),
            pl.BlockSpec(wih.shape, lambda i: (0, 0, 0)),
            pl.BlockSpec(whh.shape, lambda i: (0, 0, 0)),
            pl.BlockSpec(b.shape, lambda i: (0, 0, 0)),
            pl.BlockSpec(wfc_p.shape, lambda i: (0, 0)),
            pl.BlockSpec(bfc_p.shape, lambda i: (0, 0)),
        ],
        out_specs=pl.BlockSpec((Bp, Cp), lambda i: (0, 0)),
        scratch_shapes=[
            pltpu.VMEM((T, Bp, HIDDEN), jnp.float32),   # sequence buffer
        ],
        compiler_params=pltpu.CompilerParams(
            dimension_semantics=("arbitrary",)),
    )(x2d, wih0, wih, whh, b, wfc_p, bfc_p)
    return out[:B, :NUM_CLASSES]


def init_params(key):
    """Deterministic init matching nn.RNN / nn.Linear shapes (U(-1/sqrt(H), 1/sqrt(H)))."""
    k = 1.0 / float(jnp.sqrt(HIDDEN))
    keys = jax.random.split(key, 4 * NUM_LAYERS + 2)
    wih0 = None
    wih_l, whh_l, b_l = [], [], []
    for l in range(NUM_LAYERS):
        in_dim = INPUT_SIZE if l == 0 else HIDDEN
        kw1, kw2, kb1, kb2 = keys[4 * l: 4 * l + 4]
        wih = jax.random.uniform(kw1, (in_dim, HIDDEN), jnp.float32, -k, k)
        whh = jax.random.uniform(kw2, (HIDDEN, HIDDEN), jnp.float32, -k, k)
        bih = jax.random.uniform(kb1, (HIDDEN,), jnp.float32, -k, k)
        bhh = jax.random.uniform(kb2, (HIDDEN,), jnp.float32, -k, k)
        if l == 0:
            wih0 = wih
        else:
            wih_l.append(wih)
        whh_l.append(whh)
        b_l.append((bih + bhh)[None, :])
    wfc = jax.random.uniform(keys[-2], (HIDDEN, NUM_CLASSES), jnp.float32, -k, k)
    bfc = jax.random.uniform(keys[-1], (1, NUM_CLASSES), jnp.float32, -k, k)
    return (wih0, jnp.stack(wih_l), jnp.stack(whh_l), jnp.stack(b_l), wfc, bfc)


def ref_forward(x, params):
    """Pure-JAX reference of the PyTorch forward (eval mode)."""
    wih0, wih, whh, b, wfc, bfc = params
    B, F, T = x.shape
    h_in = jnp.transpose(x, (0, 2, 1)).astype(jnp.float32)      # (B, T, F)
    for l in range(NUM_LAYERS):
        w_in = wih0 if l == 0 else wih[l - 1]
        pre = jnp.einsum('btf,fh->bth', h_in, w_in) + b[l]       # bias folded like kernel
        h = jnp.zeros((B, HIDDEN), jnp.float32)
        outs = []
        for t in range(T):
            h = jnp.tanh(pre[:, t, :] + h @ whh[l])
            outs.append(h)
        h_in = jnp.stack(outs, axis=1)
    last = h_in[:, -1, :]
    return last @ wfc + bfc


if __name__ == "__main__":
    key = jax.random.PRNGKey(0)
    k_param, k_x = jax.random.split(key)
    params = init_params(k_param)

    B, T = 2, 8
    x = jax.random.normal(k_x, (B, INPUT_SIZE, T), jnp.float32)

    out = rnn_forward(x, params)
    out = jax.block_until_ready(out)

    ref = ref_forward(x, params)
    assert out.shape == (B, NUM_CLASSES)
    assert jnp.allclose(out, ref, rtol=1e-5, atol=1e-5), (out, ref)

    print("KERNEL_OK")
</pallas_src>

<mosaic_0001>
module attributes {stable_mosaic.version = 11 : i64} {
  func.func @rnn_kernel(%arg0: i32, %arg1: memref<64x22xf32, #tpu.memory_space<vmem>>, %arg2: memref<22x128xf32, #tpu.memory_space<vmem>>, %arg3: memref<4x128x128xf32, #tpu.memory_space<vmem>>, %arg4: memref<5x128x128xf32, #tpu.memory_space<vmem>>, %arg5: memref<5x1x128xf32, #tpu.memory_space<vmem>>, %arg6: memref<128x128xf32, #tpu.memory_space<vmem>>, %arg7: memref<1x128xf32, #tpu.memory_space<vmem>>, %arg8: memref<8x128xf32, #tpu.memory_space<vmem>>, %arg9: memref<8x8x128xf32, #tpu.memory_space<vmem>>) attributes {dimension_semantics = [#tpu.dimension_semantics<arbitrary>], iteration_bounds = array<i64: 1>, scalar_prefetch = 0 : i64, scratch_operands = 1 : i64, tpu.core_type = #tpu.core_type<tc>, window_params = [{pipeline_mode = #tpu.pipeline_mode<synchronous>, transform_indices = @transform_0, window_bounds = array<i64: 64, 22>}, {pipeline_mode = #tpu.pipeline_mode<synchronous>, transform_indices = @transform_1, window_bounds = array<i64: 22, 128>}, {pipeline_mode = #tpu.pipeline_mode<synchronous>, transform_indices = @transform_2, window_bounds = array<i64: 4, 128, 128>}, {pipeline_mode = #tpu.pipeline_mode<synchronous>, transform_indices = @transform_3, window_bounds = array<i64: 5, 128, 128>}, {pipeline_mode = #tpu.pipeline_mode<synchronous>, transform_indices = @transform_4, window_bounds = array<i64: 5, 1, 128>}, {pipeline_mode = #tpu.pipeline_mode<synchronous>, transform_indices = @transform_5, window_bounds = array<i64: 128, 128>}, {pipeline_mode = #tpu.pipeline_mode<synchronous>, transform_indices = @transform_6, window_bounds = array<i64: 1, 128>}, {pipeline_mode = #tpu.pipeline_mode<synchronous>, transform_indices = @transform_7, window_bounds = array<i64: 8, 128>}]} {
    %c0 = arith.constant 0 : index
    %c0_0 = arith.constant 0 : index
    %0 = vector.load %arg1[%c0, %c0_0] : memref<64x22xf32, #tpu.memory_space<vmem>>, vector<64x22xf32>
    %c0_1 = arith.constant 0 : index
    %c0_2 = arith.constant 0 : index
    %1 = vector.load %arg2[%c0_1, %c0_2] : memref<22x128xf32, #tpu.memory_space<vmem>>, vector<22x128xf32>
    %cst = arith.constant dense<0.000000e+00> : vector<64x128xf32>
    %2 = tpu.matmul %0, %1, %cst {dimension_numbers = #tpu.dot_dimension_numbers<[1], [0], [0], [1], [0, 0, 1, 1], [], []>} : vector<64x22xf32>, vector<22x128xf32>, vector<64x128xf32> -> vector<64x128xf32>
    %c0_3 = arith.constant 0 : index
    %c0_4 = arith.constant 0 : index
    %c0_5 = arith.constant 0 : index
    %3 = vector.load %arg5[%c0_3, %c0_4, %c0_5] : memref<5x1x128xf32, #tpu.memory_space<vmem>>, vector<1x1x128xf32>
    %4 = vector.shape_cast %3 : vector<1x1x128xf32> to vector<1x128xf32>
    %5 = vector.broadcast %4 : vector<1x128xf32> to vector<64x128xf32>
    %6 = arith.addf %2, %5 : vector<64x128xf32>
    %7 = vector.shape_cast %6 : vector<64x128xf32> to vector<8x8x128xf32>
    %c0_6 = arith.constant 0 : index
    %c0_7 = arith.constant 0 : index
    %c0_8 = arith.constant 0 : index
    %8 = vector.load %arg9[%c0_6, %c0_7, %c0_8] : memref<8x8x128xf32, #tpu.memory_space<vmem>>, vector<8x8x128xf32>
    tpu.vector_store %arg9[%c0_6, %c0_7, %c0_8], %7 {strides = array<i32>} : memref<8x8x128xf32, #tpu.memory_space<vmem>>, vector<8x8x128xf32>,
    %cst_9 = arith.constant 0.000000e+00 : f32
    %9 = vector.broadcast %cst_9 : f32 to vector<8x128xf32>
    %c0_i32 = arith.constant 0 : i32
    %10 = arith.index_cast %c0_i32 : i32 to index
    %c0_10 = arith.constant 0 : index
    %c0_11 = arith.constant 0 : index
    %11 = vector.load %arg9[%10, %c0_10, %c0_11] : memref<8x8x128xf32, #tpu.memory_space<vmem>>, vector<1x8x128xf32>
    %12 = vector.shape_cast %11 : vector<1x8x128xf32> to vector<8x128xf32>
    %c0_12 = arith.constant 0 : index
    %c0_13 = arith.constant 0 : index
    %c0_14 = arith.constant 0 : index
    %13 = vector.load %arg4[%c0_12, %c0_13, %c0_14] : memref<5x128x128xf32, #tpu.memory_space<vmem>>, vector<1x128x128xf32>
    %14 = vector.shape_cast %13 : vector<1x128x128xf32> to vector<128x128xf32>
    %cst_15 = arith.constant dense<0.000000e+00> : vector<8x128xf32>
    %15 = tpu.matmul %9, %14, %cst_15 {dimension_numbers = #tpu.dot_dimension_numbers<[1], [0], [0], [1], [0, 0, 1, 1], [], []>} : vector<8x128xf32>, vector<128x128xf32>, vector<8x128xf32> -> vector<8x128xf32>
    %16 = arith.addf %12, %15 : vector<8x128xf32>
    %17 = math.tanh %16 : vector<8x128xf32>
    %18 = arith.index_cast %c0_i32 : i32 to index
    %c0_16 = arith.constant 0 : index
    %c0_17 = arith.constant 0 : index
    %19 = vector.load %arg9[%18, %c0_16, %c0_17] : memref<8x8x128xf32, #tpu.memory_space<vmem>>, vector<1x8x128xf32>
    %20 = vector.shape_cast %19 : vector<1x8x128xf32> to vector<8x128xf32>
    %21 = vector.shape_cast %17 : vector<8x128xf32> to vector<1x8x128xf32>
    tpu.vector_store %arg9[%18, %c0_16, %c0_17], %21 {strides = array<i32>} : memref<8x8x128xf32, #tpu.memory_space<vmem>>, vector<1x8x128xf32>,
    %c1_i32 = arith.constant 1 : i32
    %22 = arith.index_cast %c1_i32 : i32 to index
    %c0_18 = arith.constant 0 : index
    %c0_19 = arith.constant 0 : index
    %23 = vector.load %arg9[%22, %c0_18, %c0_19] : memref<8x8x128xf32, #tpu.memory_space<vmem>>, vector<1x8x128xf32>
    %24 = vector.shape_cast %23 : vector<1x8x128xf32> to vector<8x128xf32>
    %c0_20 = arith.constant 0 : index
    %c0_21 = arith.constant 0 : index
    %c0_22 = arith.constant 0 : index
    %25 = vector.load %arg4[%c0_20, %c0_21, %c0_22] : memref<5x128x128xf32, #tpu.memory_space<vmem>>, vector<1x128x128xf32>
    %26 = vector.shape_cast %25 : vector<1x128x128xf32> to vector<128x128xf32>
    %cst_23 = arith.constant dense<0.000000e+00> : vector<8x128xf32>
    %27 = tpu.matmul %17, %26, %cst_23 {dimension_numbers = #tpu.dot_dimension_numbers<[1], [0], [0], [1], [0, 0, 1, 1], [], []>} : vector<8x128xf32>, vector<128x128xf32>, vector<8x128xf32> -> vector<8x128xf32>
    %28 = arith.addf %24, %27 : vector<8x128xf32>
    %29 = math.tanh %28 : vector<8x128xf32>
    %30 = arith.index_cast %c1_i32 : i32 to index
    %c0_24 = arith.constant 0 : index
    %c0_25 = arith.constant 0 : index
    %31 = vector.load %arg9[%30, %c0_24, %c0_25] : memref<8x8x128xf32, #tpu.memory_space<vmem>>, vector<1x8x128xf32>
    %32 = vector.shape_cast %31 : vector<1x8x128xf32> to vector<8x128xf32>
    %33 = vector.shape_cast %29 : vector<8x128xf32> to vector<1x8x128xf32>
    tpu.vector_store %arg9[%30, %c0_24, %c0_25], %33 {strides = array<i32>} : memref<8x8x128xf32, #tpu.memory_space<vmem>>, vector<1x8x128xf32>,
    %c2_i32 = arith.constant 2 : i32
    %34 = arith.index_cast %c2_i32 : i32 to index
    %c0_26 = arith.constant 0 : index
    %c0_27 = arith.constant 0 : index
    %35 = vector.load %arg9[%34, %c0_26, %c0_27] : memref<8x8x128xf32, #tpu.memory_space<vmem>>, vector<1x8x128xf32>
    %36 = vector.shape_cast %35 : vector<1x8x128xf32> to vector<8x128xf32>
    %c0_28 = arith.constant 0 : index
    %c0_29 = arith.constant 0 : index
    %c0_30 = arith.constant 0 : index
    %37 = vector.load %arg4[%c0_28, %c0_29, %c0_30] : memref<5x128x128xf32, #tpu.memory_space<vmem>>, vector<1x128x128xf32>
    %38 = vector.shape_cast %37 : vector<1x128x128xf32> to vector<128x128xf32>
    %cst_31 = arith.constant dense<0.000000e+00> : vector<8x128xf32>
    %39 = tpu.matmul %29, %38, %cst_31 {dimension_numbers = #tpu.dot_dimension_numbers<[1], [0], [0], [1], [0, 0, 1, 1], [], []>} : vector<8x128xf32>, vector<128x128xf32>, vector<8x128xf32> -> vector<8x128xf32>
    %40 = arith.addf %36, %39 : vector<8x128xf32>
    %41 = math.tanh %40 : vector<8x128xf32>
    %42 = arith.index_cast %c2_i32 : i32 to index
    %c0_32 = arith.constant 0 : index
    %c0_33 = arith.constant 0 : index
    %43 = vector.load %arg9[%42, %c0_32, %c0_33] : memref<8x8x128xf32, #tpu.memory_space<vmem>>, vector<1x8x128xf32>
    %44 = vector.shape_cast %43 : vector<1x8x128xf32> to vector<8x128xf32>
    %45 = vector.shape_cast %41 : vector<8x128xf32> to vector<1x8x128xf32>
    tpu.vector_store %arg9[%42, %c0_32, %c0_33], %45 {strides = array<i32>} : memref<8x8x128xf32, #tpu.memory_space<vmem>>, vector<1x8x128xf32>,
    %c3_i32 = arith.constant 3 : i32
    %46 = arith.index_cast %c3_i32 : i32 to index
    %c0_34 = arith.constant 0 : index
    %c0_35 = arith.constant 0 : index
    %47 = vector.load %arg9[%46, %c0_34, %c0_35] : memref<8x8x128xf32, #tpu.memory_space<vmem>>, vector<1x8x128xf32>
    %48 = vector.shape_cast %47 : vector<1x8x128xf32> to vector<8x128xf32>
    %c0_36 = arith.constant 0 : index
    %c0_37 = arith.constant 0 : index
    %c0_38 = arith.constant 0 : index
    %49 = vector.load %arg4[%c0_36, %c0_37, %c0_38] : memref<5x128x128xf32, #tpu.memory_space<vmem>>, vector<1x128x128xf32>
    %50 = vector.shape_cast %49 : vector<1x128x128xf32> to vector<128x128xf32>
    %cst_39 = arith.constant dense<0.000000e+00> : vector<8x128xf32>
    %51 = tpu.matmul %41, %50, %cst_39 {dimension_numbers = #tpu.dot_dimension_numbers<[1], [0], [0], [1], [0, 0, 1, 1], [], []>} : vector<8x128xf32>, vector<128x128xf32>, vector<8x128xf32> -> vector<8x128xf32>
    %52 = arith.addf %48, %51 : vector<8x128xf32>
    %53 = math.tanh %52 : vector<8x128xf32>
    %54 = arith.index_cast %c3_i32 : i32 to index
    %c0_40 = arith.constant 0 : index
    %c0_41 = arith.constant 0 : index
    %55 = vector.load %arg9[%54, %c0_40, %c0_41] : memref<8x8x128xf32, #tpu.memory_space<vmem>>, vector<1x8x128xf32>
    %56 = vector.shape_cast %55 : vector<1x8x128xf32> to vector<8x128xf32>
    %57 = vector.shape_cast %53 : vector<8x128xf32> to vector<1x8x128xf32>
    tpu.vector_store %arg9[%54, %c0_40, %c0_41], %57 {strides = array<i32>} : memref<8x8x128xf32, #tpu.memory_space<vmem>>, vector<1x8x128xf32>,
    %c4_i32 = arith.constant 4 : i32
    %58 = arith.index_cast %c4_i32 : i32 to index
    %c0_42 = arith.constant 0 : index
    %c0_43 = arith.constant 0 : index
    %59 = vector.load %arg9[%58, %c0_42, %c0_43] : memref<8x8x128xf32, #tpu.memory_space<vmem>>, vector<1x8x128xf32>
    %60 = vector.shape_cast %59 : vector<1x8x128xf32> to vector<8x128xf32>
    %c0_44 = arith.constant 0 : index
    %c0_45 = arith.constant 0 : index
    %c0_46 = arith.constant 0 : index
    %61 = vector.load %arg4[%c0_44, %c0_45, %c0_46] : memref<5x128x128xf32, #tpu.memory_space<vmem>>, vector<1x128x128xf32>
    %62 = vector.shape_cast %61 : vector<1x128x128xf32> to vector<128x128xf32>
    %cst_47 = arith.constant dense<0.000000e+00> : vector<8x128xf32>
    %63 = tpu.matmul %53, %62, %cst_47 {dimension_numbers = #tpu.dot_dimension_numbers<[1], [0], [0], [1], [0, 0, 1, 1], [], []>} : vector<8x128xf32>, vector<128x128xf32>, vector<8x128xf32> -> vector<8x128xf32>
    %64 = arith.addf %60, %63 : vector<8x128xf32>
    %65 = math.tanh %64 : vector<8x128xf32>
    %66 = arith.index_cast %c4_i32 : i32 to index
    %c0_48 = arith.constant 0 : index
    %c0_49 = arith.constant 0 : index
    %67 = vector.load %arg9[%66, %c0_48, %c0_49] : memref<8x8x128xf32, #tpu.memory_space<vmem>>, vector<1x8x128xf32>
    %68 = vector.shape_cast %67 : vector<1x8x128xf32> to vector<8x128xf32>
    %69 = vector.shape_cast %65 : vector<8x128xf32> to vector<1x8x128xf32>
    tpu.vector_store %arg9[%66, %c0_48, %c0_49], %69 {strides = array<i32>} : memref<8x8x128xf32, #tpu.memory_space<vmem>>, vector<1x8x128xf32>,
    %c5_i32 = arith.constant 5 : i32
    %70 = arith.index_cast %c5_i32 : i32 to index
    %c0_50 = arith.constant 0 : index
    %c0_51 = arith.constant 0 : index
    %71 = vector.load %arg9[%70, %c0_50, %c0_51] : memref<8x8x128xf32, #tpu.memory_space<vmem>>, vector<1x8x128xf32>
    %72 = vector.shape_cast %71 : vector<1x8x128xf32> to vector<8x128xf32>
    %c0_52 = arith.constant 0 : index
    %c0_53 = arith.constant 0 : index
    %c0_54 = arith.constant 0 : index
    %73 = vector.load %arg4[%c0_52, %c0_53, %c0_54] : memref<5x128x128xf32, #tpu.memory_space<vmem>>, vector<1x128x128xf32>
    %74 = vector.shape_cast %73 : vector<1x128x128xf32> to vector<128x128xf32>
    %cst_55 = arith.constant dense<0.000000e+00> : vector<8x128xf32>
    %75 = tpu.matmul %65, %74, %cst_55 {dimension_numbers = #tpu.dot_dimension_numbers<[1], [0], [0], [1], [0, 0, 1, 1], [], []>} : vector<8x128xf32>, vector<128x128xf32>, vector<8x128xf32> -> vector<8x128xf32>
    %76 = arith.addf %72, %75 : vector<8x128xf32>
    %77 = math.tanh %76 : vector<8x128xf32>
    %78 = arith.index_cast %c5_i32 : i32 to index
    %c0_56 = arith.constant 0 : index
    %c0_57 = arith.constant 0 : index
    %79 = vector.load %arg9[%78, %c0_56, %c0_57] : memref<8x8x128xf32, #tpu.memory_space<vmem>>, vector<1x8x128xf32>
    %80 = vector.shape_cast %79 : vector<1x8x128xf32> to vector<8x128xf32>
    %81 = vector.shape_cast %77 : vector<8x128xf32> to vector<1x8x128xf32>
    tpu.vector_store %arg9[%78, %c0_56, %c0_57], %81 {strides = array<i32>} : memref<8x8x128xf32, #tpu.memory_space<vmem>>, vector<1x8x128xf32>,
    %c6_i32 = arith.constant 6 : i32
    %82 = arith.index_cast %c6_i32 : i32 to index
    %c0_58 = arith.constant 0 : index
    %c0_59 = arith.constant 0 : index
    %83 = vector.load %arg9[%82, %c0_58, %c0_59] : memref<8x8x128xf32, #tpu.memory_space<vmem>>, vector<1x8x128xf32>
    %84 = vector.shape_cast %83 : vector<1x8x128xf32> to vector<8x128xf32>
    %c0_60 = arith.constant 0 : index
    %c0_61 = arith.constant 0 : index
    %c0_62 = arith.constant 0 : index
    %85 = vector.load %arg4[%c0_60, %c0_61, %c0_62] : memref<5x128x128xf32, #tpu.memory_space<vmem>>, vector<1x128x128xf32>
    %86 = vector.shape_cast %85 : vector<1x128x128xf32> to vector<128x128xf32>
    %cst_63 = arith.constant dense<0.000000e+00> : vector<8x128xf32>
    %87 = tpu.matmul %77, %86, %cst_63 {dimension_numbers = #tpu.dot_dimension_numbers<[1], [0], [0], [1], [0, 0, 1, 1], [], []>} : vector<8x128xf32>, vector<128x128xf32>, vector<8x128xf32> -> vector<8x128xf32>
    %88 = arith.addf %84, %87 : vector<8x128xf32>
    %89 = math.tanh %88 : vector<8x128xf32>
    %90 = arith.index_cast %c6_i32 : i32 to index
    %c0_64 = arith.constant 0 : index
    %c0_65 = arith.constant 0 : index
    %91 = vector.load %arg9[%90, %c0_64, %c0_65] : memref<8x8x128xf32, #tpu.memory_space<vmem>>, vector<1x8x128xf32>
    %92 = vector.shape_cast %91 : vector<1x8x128xf32> to vector<8x128xf32>
    %93 = vector.shape_cast %89 : vector<8x128xf32> to vector<1x8x128xf32>
    tpu.vector_store %arg9[%90, %c0_64, %c0_65], %93 {strides = array<i32>} : memref<8x8x128xf32, #tpu.memory_space<vmem>>, vector<1x8x128xf32>,
    %c7_i32 = arith.constant 7 : i32
    %94 = arith.index_cast %c7_i32 : i32 to index
    %c0_66 = arith.constant 0 : index
    %c0_67 = arith.constant 0 : index
    %95 = vector.load %arg9[%94, %c0_66, %c0_67] : memref<8x8x128xf32, #tpu.memory_space<vmem>>, vector<1x8x128xf32>
    %96 = vector.shape_cast %95 : vector<1x8x128xf32> to vector<8x128xf32>
    %c0_68 = arith.constant 0 : index
    %c0_69 = arith.constant 0 : index
    %c0_70 = arith.constant 0 : index
    %97 = vector.load %arg4[%c0_68, %c0_69, %c0_70] : memref<5x128x128xf32, #tpu.memory_space<vmem>>, vector<1x128x128xf32>
    %98 = vector.shape_cast %97 : vector<1x128x128xf32> to vector<128x128xf32>
    %cst_71 = arith.constant dense<0.000000e+00> : vector<8x128xf32>
    %99 = tpu.matmul %89, %98, %cst_71 {dimension_numbers = #tpu.dot_dimension_numbers<[1], [0], [0], [1], [0, 0, 1, 1], [], []>} : vector<8x128xf32>, vector<128x128xf32>, vector<8x128xf32> -> vector<8x128xf32>
    %100 = arith.addf %96, %99 : vector<8x128xf32>
    %101 = math.tanh %100 : vector<8x128xf32>
    %102 = arith.index_cast %c7_i32 : i32 to index
    %c0_72 = arith.constant 0 : index
    %c0_73 = arith.constant 0 : index
    %103 = vector.load %arg9[%102, %c0_72, %c0_73] : memref<8x8x128xf32, #tpu.memory_space<vmem>>, vector<1x8x128xf32>
    %104 = vector.shape_cast %103 : vector<1x8x128xf32> to vector<8x128xf32>
    %105 = vector.shape_cast %101 : vector<8x128xf32> to vector<1x8x128xf32>
    tpu.vector_store %arg9[%102, %c0_72, %c0_73], %105 {strides = array<i32>} : memref<8x8x128xf32, #tpu.memory_space<vmem>>, vector<1x8x128xf32>,
    %c8_i32 = arith.constant 8 : i32
    %c0_74 = arith.constant 0 : index
    %c0_75 = arith.constant 0 : index
    %c0_76 = arith.constant 0 : index
    %106 = vector.load %arg9[%c0_74, %c0_75, %c0_76] : memref<8x8x128xf32, #tpu.memory_space<vmem>>, vector<8x8x128xf32>
    %107 = vector.shape_cast %106 : vector<8x8x128xf32> to vector<64x128xf32>
    %c0_77 = arith.constant 0 : index
    %c0_78 = arith.constant 0 : index
    %c0_79 = arith.constant 0 : index
    %108 = vector.load %arg3[%c0_77, %c0_78, %c0_79] : memref<4x128x128xf32, #tpu.memory_space<vmem>>, vector<1x128x128xf32>
    %109 = vector.shape_cast %108 : vector<1x128x128xf32> to vector<128x128xf32>
    %cst_80 = arith.constant dense<0.000000e+00> : vector<64x128xf32>
    %110 = tpu.matmul %107, %109, %cst_80 {dimension_numbers = #tpu.dot_dimension_numbers<[1], [0], [0], [1], [0, 0, 1, 1], [], []>} : vector<64x128xf32>, vector<128x128xf32>, vector<64x128xf32> -> vector<64x128xf32>
    %c1 = arith.constant 1 : index
    %c0_81 = arith.constant 0 : index
    %c0_82 = arith.constant 0 : index
    %111 = vector.load %arg5[%c1, %c0_81, %c0_82] : memref<5x1x128xf32, #tpu.memory_space<vmem>>, vector<1x1x128xf32>
    %112 = vector.shape_cast %111 : vector<1x1x128xf32> to vector<1x128xf32>
    %113 = vector.broadcast %112 : vector<1x128xf32> to vector<64x128xf32>
    %114 = arith.addf %110, %113 : vector<64x128xf32>
    %115 = vector.shape_cast %114 : vector<64x128xf32> to vector<8x8x128xf32>
    %c0_83 = arith.constant 0 : index
    %c0_84 = arith.constant 0 : index
    %c0_85 = arith.constant 0 : index
    %116 = vector.load %arg9[%c0_83, %c0_84, %c0_85] : memref<8x8x128xf32, #tpu.memory_space<vmem>>, vector<8x8x128xf32>
    tpu.vector_store %arg9[%c0_83, %c0_84, %c0_85], %115 {strides = array<i32>} : memref<8x8x128xf32, #tpu.memory_space<vmem>>, vector<8x8x128xf32>,
    %cst_86 = arith.constant 0.000000e+00 : f32
    %117 = vector.broadcast %cst_86 : f32 to vector<8x128xf32>
    %c0_i32_87 = arith.constant 0 : i32
    %118 = arith.index_cast %c0_i32_87 : i32 to index
    %c0_88 = arith.constant 0 : index
    %c0_89 = arith.constant 0 : index
    %119 = vector.load %arg9[%118, %c0_88, %c0_89] : memref<8x8x128xf32, #tpu.memory_space<vmem>>, vector<1x8x128xf32>
    %120 = vector.shape_cast %119 : vector<1x8x128xf32> to vector<8x128xf32>
    %c1_90 = arith.constant 1 : index
    %c0_91 = arith.constant 0 : index
    %c0_92 = arith.constant 0 : index
    %121 = vector.load %arg4[%c1_90, %c0_91, %c0_92] : memref<5x128x128xf32, #tpu.memory_space<vmem>>, vector<1x128x128xf32>
    %122 = vector.shape_cast %121 : vector<1x128x128xf32> to vector<128x128xf32>
    %cst_93 = arith.constant dense<0.000000e+00> : vector<8x128xf32>
    %123 = tpu.matmul %117, %122, %cst_93 {dimension_numbers = #tpu.dot_dimension_numbers<[1], [0], [0], [1], [0, 0, 1, 1], [], []>} : vector<8x128xf32>, vector<128x128xf32>, vector<8x128xf32> -> vector<8x128xf32>
    %124 = arith.addf %120, %123 : vector<8x128xf32>
    %125 = math.tanh %124 : vector<8x128xf32>
    %126 = arith.index_cast %c0_i32_87 : i32 to index
    %c0_94 = arith.constant 0 : index
    %c0_95 = arith.constant 0 : index
    %127 = vector.load %arg9[%126, %c0_94, %c0_95] : memref<8x8x128xf32, #tpu.memory_space<vmem>>, vector<1x8x128xf32>
    %128 = vector.shape_cast %127 : vector<1x8x128xf32> to vector<8x128xf32>
    %129 = vector.shape_cast %125 : vector<8x128xf32> to vector<1x8x128xf32>
    tpu.vector_store %arg9[%126, %c0_94, %c0_95], %129 {strides = array<i32>} : memref<8x8x128xf32, #tpu.memory_space<vmem>>, vector<1x8x128xf32>,
    %c1_i32_96 = arith.constant 1 : i32
    %130 = arith.index_cast %c1_i32_96 : i32 to index
    %c0_97 = arith.constant 0 : index
    %c0_98 = arith.constant 0 : index
    %131 = vector.load %arg9[%130, %c0_97, %c0_98] : memref<8x8x128xf32, #tpu.memory_space<vmem>>, vector<1x8x128xf32>
    %132 = vector.shape_cast %131 : vector<1x8x128xf32> to vector<8x128xf32>
    %c1_99 = arith.constant 1 : index
    %c0_100 = arith.constant 0 : index
    %c0_101 = arith.constant 0 : index
    %133 = vector.load %arg4[%c1_99, %c0_100, %c0_101] : memref<5x128x128xf32, #tpu.memory_space<vmem>>, vector<1x128x128xf32>
    %134 = vector.shape_cast %133 : vector<1x128x128xf32> to vector<128x128xf32>
    %cst_102 = arith.constant dense<0.000000e+00> : vector<8x128xf32>
    %135 = tpu.matmul %125, %134, %cst_102 {dimension_numbers = #tpu.dot_dimension_numbers<[1], [0], [0], [1], [0, 0, 1, 1], [], []>} : vector<8x128xf32>, vector<128x128xf32>, vector<8x128xf32> -> vector<8x128xf32>
    %136 = arith.addf %132, %135 : vector<8x128xf32>
    %137 = math.tanh %136 : vector<8x128xf32>
    %138 = arith.index_cast %c1_i32_96 : i32 to index
    %c0_103 = arith.constant 0 : index
    %c0_104 = arith.constant 0 : index
    %139 = vector.load %arg9[%138, %c0_103, %c0_104] : memref<8x8x128xf32, #tpu.memory_space<vmem>>, vector<1x8x128xf32>
    %140 = vector.shape_cast %139 : vector<1x8x128xf32> to vector<8x128xf32>
    %141 = vector.shape_cast %137 : vector<8x128xf32> to vector<1x8x128xf32>
    tpu.vector_store %arg9[%138, %c0_103, %c0_104], %141 {strides = array<i32>} : memref<8x8x128xf32, #tpu.memory_space<vmem>>, vector<1x8x128xf32>,
    %c2_i32_105 = arith.constant 2 : i32
    %142 = arith.index_cast %c2_i32_105 : i32 to index
    %c0_106 = arith.constant 0 : index
    %c0_107 = arith.constant 0 : index
    %143 = vector.load %arg9[%142, %c0_106, %c0_107] : memref<8x8x128xf32, #tpu.memory_space<vmem>>, vector<1x8x128xf32>
    %144 = vector.shape_cast %143 : vector<1x8x128xf32> to vector<8x128xf32>
    %c1_108 = arith.constant 1 : index
    %c0_109 = arith.constant 0 : index
    %c0_110 = arith.constant 0 : index
    %145 = vector.load %arg4[%c1_108, %c0_109, %c0_110] : memref<5x128x128xf32, #tpu.memory_space<vmem>>, vector<1x128x128xf32>
    %146 = vector.shape_cast %145 : vector<1x128x128xf32> to vector<128x128xf32>
    %cst_111 = arith.constant dense<0.000000e+00> : vector<8x128xf32>
    %147 = tpu.matmul %137, %146, %cst_111 {dimension_numbers = #tpu.dot_dimension_numbers<[1], [0], [0], [1], [0, 0, 1, 1], [], []>} : vector<8x128xf32>, vector<128x128xf32>, vector<8x128xf32> -> vector<8x128xf32>
    %148 = arith.addf %144, %147 : vector<8x128xf32>
    %149 = math.tanh %148 : vector<8x128xf32>
    %150 = arith.index_cast %c2_i32_105 : i32 to index
    %c0_112 = arith.constant 0 : index
    %c0_113 = arith.constant 0 : index
    %151 = vector.load %arg9[%150, %c0_112, %c0_113] : memref<8x8x128xf32, #tpu.memory_space<vmem>>, vector<1x8x128xf32>
    %152 = vector.shape_cast %151 : vector<1x8x128xf32> to vector<8x128xf32>
    %153 = vector.shape_cast %149 : vector<8x128xf32> to vector<1x8x128xf32>
    tpu.vector_store %arg9[%150, %c0_112, %c0_113], %153 {strides = array<i32>} : memref<8x8x128xf32, #tpu.memory_space<vmem>>, vector<1x8x128xf32>,
    %c3_i32_114 = arith.constant 3 : i32
    %154 = arith.index_cast %c3_i32_114 : i32 to index
    %c0_115 = arith.constant 0 : index
    %c0_116 = arith.constant 0 : index
    %155 = vector.load %arg9[%154, %c0_115, %c0_116] : memref<8x8x128xf32, #tpu.memory_space<vmem>>, vector<1x8x128xf32>
    %156 = vector.shape_cast %155 : vector<1x8x128xf32> to vector<8x128xf32>
    %c1_117 = arith.constant 1 : index
    %c0_118 = arith.constant 0 : index
    %c0_119 = arith.constant 0 : index
    %157 = vector.load %arg4[%c1_117, %c0_118, %c0_119] : memref<5x128x128xf32, #tpu.memory_space<vmem>>, vector<1x128x128xf32>
    %158 = vector.shape_cast %157 : vector<1x128x128xf32> to vector<128x128xf32>
    %cst_120 = arith.constant dense<0.000000e+00> : vector<8x128xf32>
    %159 = tpu.matmul %149, %158, %cst_120 {dimension_numbers = #tpu.dot_dimension_numbers<[1], [0], [0], [1], [0, 0, 1, 1], [], []>} : vector<8x128xf32>, vector<128x128xf32>, vector<8x128xf32> -> vector<8x128xf32>
    %160 = arith.addf %156, %159 : vector<8x128xf32>
    %161 = math.tanh %160 : vector<8x128xf32>
    %162 = arith.index_cast %c3_i32_114 : i32 to index
    %c0_121 = arith.constant 0 : index
    %c0_122 = arith.constant 0 : index
    %163 = vector.load %arg9[%162, %c0_121, %c0_122] : memref<8x8x128xf32, #tpu.memory_space<vmem>>, vector<1x8x128xf32>
    %164 = vector.shape_cast %163 : vector<1x8x128xf32> to vector<8x128xf32>
    %165 = vector.shape_cast %161 : vector<8x128xf32> to vector<1x8x128xf32>
    tpu.vector_store %arg9[%162, %c0_121, %c0_122], %165 {strides = array<i32>} : memref<8x8x128xf32, #tpu.memory_space<vmem>>, vector<1x8x128xf32>,
    %c4_i32_123 = arith.constant 4 : i32
    %166 = arith.index_cast %c4_i32_123 : i32 to index
    %c0_124 = arith.constant 0 : index
    %c0_125 = arith.constant 0 : index
    %167 = vector.load %arg9[%166, %c0_124, %c0_125] : memref<8x8x128xf32, #tpu.memory_space<vmem>>, vector<1x8x128xf32>
    %168 = vector.shape_cast %167 : vector<1x8x128xf32> to vector<8x128xf32>
    %c1_126 = arith.constant 1 : index
    %c0_127 = arith.constant 0 : index
    %c0_128 = arith.constant 0 : index
    %169 = vector.load %arg4[%c1_126, %c0_127, %c0_128] : memref<5x128x128xf32, #tpu.memory_space<vmem>>, vector<1x128x128xf32>
    %170 = vector.shape_cast %169 : vector<1x128x128xf32> to vector<128x128xf32>
    %cst_129 = arith.constant dense<0.000000e+00> : vector<8x128xf32>
    %171 = tpu.matmul %161, %170, %cst_129 {dimension_numbers = #tpu.dot_dimension_numbers<[1], [0], [0], [1], [0, 0, 1, 1], [], []>} : vector<8x128xf32>, vector<128x128xf32>, vector<8x128xf32> -> vector<8x128xf32>
    %172 = arith.addf %168, %171 : vector<8x128xf32>
    %173 = math.tanh %172 : vector<8x128xf32>
    %174 = arith.index_cast %c4_i32_123 : i32 to index
    %c0_130 = arith.constant 0 : index
    %c0_131 = arith.constant 0 : index
    %175 = vector.load %arg9[%174, %c0_130, %c0_131] : memref<8x8x128xf32, #tpu.memory_space<vmem>>, vector<1x8x128xf32>
    %176 = vector.shape_cast %175 : vector<1x8x128xf32> to vector<8x128xf32>
    %177 = vector.shape_cast %173 : vector<8x128xf32> to vector<1x8x128xf32>
    tpu.vector_store %arg9[%174, %c0_130, %c0_131], %177 {strides = array<i32>} : memref<8x8x128xf32, #tpu.memory_space<vmem>>, vector<1x8x128xf32>,
    %c5_i32_132 = arith.constant 5 : i32
    %178 = arith.index_cast %c5_i32_132 : i32 to index
    %c0_133 = arith.constant 0 : index
    %c0_134 = arith.constant 0 : index
    %179 = vector.load %arg9[%178, %c0_133, %c0_134] : memref<8x8x128xf32, #tpu.memory_space<vmem>>, vector<1x8x128xf32>
    %180 = vector.shape_cast %179 : vector<1x8x128xf32> to vector<8x128xf32>
    %c1_135 = arith.constant 1 : index
    %c0_136 = arith.constant 0 : index
    %c0_137 = arith.constant 0 : index
    %181 = vector.load %arg4[%c1_135, %c0_136, %c0_137] : memref<5x128x128xf32, #tpu.memory_space<vmem>>, vector<1x128x128xf32>
    %182 = vector.shape_cast %181 : vector<1x128x128xf32> to vector<128x128xf32>
    %cst_138 = arith.constant dense<0.000000e+00> : vector<8x128xf32>
    %183 = tpu.matmul %173, %182, %cst_138 {dimension_numbers = #tpu.dot_dimension_numbers<[1], [0], [0], [1], [0, 0, 1, 1], [], []>} : vector<8x128xf32>, vector<128x128xf32>, vector<8x128xf32> -> vector<8x128xf32>
    %184 = arith.addf %180, %183 : vector<8x128xf32>
    %185 = math.tanh %184 : vector<8x128xf32>
    %186 = arith.index_cast %c5_i32_132 : i32 to index
    %c0_139 = arith.constant 0 : index
    %c0_140 = arith.constant 0 : index
    %187 = vector.load %arg9[%186, %c0_139, %c0_140] : memref<8x8x128xf32, #tpu.memory_space<vmem>>, vector<1x8x128xf32>
    %188 = vector.shape_cast %187 : vector<1x8x128xf32> to vector<8x128xf32>
    %189 = vector.shape_cast %185 : vector<8x128xf32> to vector<1x8x128xf32>
    tpu.vector_store %arg9[%186, %c0_139, %c0_140], %189 {strides = array<i32>} : memref<8x8x128xf32, #tpu.memory_space<vmem>>, vector<1x8x128xf32>,
    %c6_i32_141 = arith.constant 6 : i32
    %190 = arith.index_cast %c6_i32_141 : i32 to index
    %c0_142 = arith.constant 0 : index
    %c0_143 = arith.constant 0 : index
    %191 = vector.load %arg9[%190, %c0_142, %c0_143] : memref<8x8x128xf32, #tpu.memory_space<vmem>>, vector<1x8x128xf32>
    %192 = vector.shape_cast %191 : vector<1x8x128xf32> to vector<8x128xf32>
    %c1_144 = arith.constant 1 : index
    %c0_145 = arith.constant 0 : index
    %c0_146 = arith.constant 0 : index
    %193 = vector.load %arg4[%c1_144, %c0_145, %c0_146] : memref<5x128x128xf32, #tpu.memory_space<vmem>>, vector<1x128x128xf32>
    %194 = vector.shape_cast %193 : vector<1x128x128xf32> to vector<128x128xf32>
    %cst_147 = arith.constant dense<0.000000e+00> : vector<8x128xf32>
    %195 = tpu.matmul %185, %194, %cst_147 {dimension_numbers = #tpu.dot_dimension_numbers<[1], [0], [0], [1], [0, 0, 1, 1], [], []>} : vector<8x128xf32>, vector<128x128xf32>, vector<8x128xf32> -> vector<8x128xf32>
    %196 = arith.addf %192, %195 : vector<8x128xf32>
    %197 = math.tanh %196 : vector<8x128xf32>
    %198 = arith.index_cast %c6_i32_141 : i32 to index
    %c0_148 = arith.constant 0 : index
    %c0_149 = arith.constant 0 : index
    %199 = vector.load %arg9[%198, %c0_148, %c0_149] : memref<8x8x128xf32, #tpu.memory_space<vmem>>, vector<1x8x128xf32>
    %200 = vector.shape_cast %199 : vector<1x8x128xf32> to vector<8x128xf32>
    %201 = vector.shape_cast %197 : vector<8x128xf32> to vector<1x8x128xf32>
    tpu.vector_store %arg9[%198, %c0_148, %c0_149], %201 {strides = array<i32>} : memref<8x8x128xf32, #tpu.memory_space<vmem>>, vector<1x8x128xf32>,
    %c7_i32_150 = arith.constant 7 : i32
    %202 = arith.index_cast %c7_i32_150 : i32 to index
    %c0_151 = arith.constant 0 : index
    %c0_152 = arith.constant 0 : index
    %203 = vector.load %arg9[%202, %c0_151, %c0_152] : memref<8x8x128xf32, #tpu.memory_space<vmem>>, vector<1x8x128xf32>
    %204 = vector.shape_cast %203 : vector<1x8x128xf32> to vector<8x128xf32>
    %c1_153 = arith.constant 1 : index
    %c0_154 = arith.constant 0 : index
    %c0_155 = arith.constant 0 : index
    %205 = vector.load %arg4[%c1_153, %c0_154, %c0_155] : memref<5x128x128xf32, #tpu.memory_space<vmem>>, vector<1x128x128xf32>
    %206 = vector.shape_cast %205 : vector<1x128x128xf32> to vector<128x128xf32>
    %cst_156 = arith.constant dense<0.000000e+00> : vector<8x128xf32>
    %207 = tpu.matmul %197, %206, %cst_156 {dimension_numbers = #tpu.dot_dimension_numbers<[1], [0], [0], [1], [0, 0, 1, 1], [], []>} : vector<8x128xf32>, vector<128x128xf32>, vector<8x128xf32> -> vector<8x128xf32>
    %208 = arith.addf %204, %207 : vector<8x128xf32>
    %209 = math.tanh %208 : vector<8x128xf32>
    %210 = arith.index_cast %c7_i32_150 : i32 to index
    %c0_157 = arith.constant 0 : index
    %c0_158 = arith.constant 0 : index
    %211 = vector.load %arg9[%210, %c0_157, %c0_158] : memref<8x8x128xf32, #tpu.memory_space<vmem>>, vector<1x8x128xf32>
    %212 = vector.shape_cast %211 : vector<1x8x128xf32> to vector<8x128xf32>
    %213 = vector.shape_cast %209 : vector<8x128xf32> to vector<1x8x128xf32>
    tpu.vector_store %arg9[%210, %c0_157, %c0_158], %213 {strides = array<i32>} : memref<8x8x128xf32, #tpu.memory_space<vmem>>, vector<1x8x128xf32>,
    %c8_i32_159 = arith.constant 8 : i32
    %c0_160 = arith.constant 0 : index
    %c0_161 = arith.constant 0 : index
    %c0_162 = arith.constant 0 : index
    %214 = vector.load %arg9[%c0_160, %c0_161, %c0_162] : memref<8x8x128xf32, #tpu.memory_space<vmem>>, vector<8x8x128xf32>
    %215 = vector.shape_cast %214 : vector<8x8x128xf32> to vector<64x128xf32>
    %c1_163 = arith.constant 1 : index
    %c0_164 = arith.constant 0 : index
    %c0_165 = arith.constant 0 : index
    %216 = vector.load %arg3[%c1_163, %c0_164, %c0_165] : memref<4x128x128xf32, #tpu.memory_space<vmem>>, vector<1x128x128xf32>
    %217 = vector.shape_cast %216 : vector<1x128x128xf32> to vector<128x128xf32>
    %cst_166 = arith.constant dense<0.000000e+00> : vector<64x128xf32>
    %218 = tpu.matmul %215, %217, %cst_166 {dimension_numbers = #tpu.dot_dimension_numbers<[1], [0], [0], [1], [0, 0, 1, 1], [], []>} : vector<64x128xf32>, vector<128x128xf32>, vector<64x128xf32> -> vector<64x128xf32>
    %c2 = arith.constant 2 : index
    %c0_167 = arith.constant 0 : index
    %c0_168 = arith.constant 0 : index
    %219 = vector.load %arg5[%c2, %c0_167, %c0_168] : memref<5x1x128xf32, #tpu.memory_space<vmem>>, vector<1x1x128xf32>
    %220 = vector.shape_cast %219 : vector<1x1x128xf32> to vector<1x128xf32>
    %221 = vector.broadcast %220 : vector<1x128xf32> to vector<64x128xf32>
    %222 = arith.addf %218, %221 : vector<64x128xf32>
    %223 = vector.shape_cast %222 : vector<64x128xf32> to vector<8x8x128xf32>
    %c0_169 = arith.constant 0 : index
    %c0_170 = arith.constant 0 : index
    %c0_171 = arith.constant 0 : index
    %224 = vector.load %arg9[%c0_169, %c0_170, %c0_171] : memref<8x8x128xf32, #tpu.memory_space<vmem>>, vector<8x8x128xf32>
    tpu.vector_store %arg9[%c0_169, %c0_170, %c0_171], %223 {strides = array<i32>} : memref<8x8x128xf32, #tpu.memory_space<vmem>>, vector<8x8x128xf32>,
    %cst_172 = arith.constant 0.000000e+00 : f32
    %225 = vector.broadcast %cst_172 : f32 to vector<8x128xf32>
    %c0_i32_173 = arith.constant 0 : i32
    %226 = arith.index_cast %c0_i32_173 : i32 to index
    %c0_174 = arith.constant 0 : index
    %c0_175 = arith.constant 0 : index
    %227 = vector.load %arg9[%226, %c0_174, %c0_175] : memref<8x8x128xf32, #tpu.memory_space<vmem>>, vector<1x8x128xf32>
    %228 = vector.shape_cast %227 : vector<1x8x128xf32> to vector<8x128xf32>
    %c2_176 = arith.constant 2 : index
    %c0_177 = arith.constant 0 : index
    %c0_178 = arith.constant 0 : index
    %229 = vector.load %arg4[%c2_176, %c0_177, %c0_178] : memref<5x128x128xf32, #tpu.memory_space<vmem>>, vector<1x128x128xf32>
    %230 = vector.shape_cast %229 : vector<1x128x128xf32> to vector<128x128xf32>
    %cst_179 = arith.constant dense<0.000000e+00> : vector<8x128xf32>
    %231 = tpu.matmul %225, %230, %cst_179 {dimension_numbers = #tpu.dot_dimension_numbers<[1], [0], [0], [1], [0, 0, 1, 1], [], []>} : vector<8x128xf32>, vector<128x128xf32>, vector<8x128xf32> -> vector<8x128xf32>
    %232 = arith.addf %228, %231 : vector<8x128xf32>
    %233 = math.tanh %232 : vector<8x128xf32>
    %234 = arith.index_cast %c0_i32_173 : i32 to index
    %c0_180 = arith.constant 0 : index
    %c0_181 = arith.constant 0 : index
    %235 = vector.load %arg9[%234, %c0_180, %c0_181] : memref<8x8x128xf32, #tpu.memory_space<vmem>>, vector<1x8x128xf32>
    %236 = vector.shape_cast %235 : vector<1x8x128xf32> to vector<8x128xf32>
    %237 = vector.shape_cast %233 : vector<8x128xf32> to vector<1x8x128xf32>
    tpu.vector_store %arg9[%234, %c0_180, %c0_181], %237 {strides = array<i32>} : memref<8x8x128xf32, #tpu.memory_space<vmem>>, vector<1x8x128xf32>,
    %c1_i32_182 = arith.constant 1 : i32
    %238 = arith.index_cast %c1_i32_182 : i32 to index
    %c0_183 = arith.constant 0 : index
    %c0_184 = arith.constant 0 : index
    %239 = vector.load %arg9[%238, %c0_183, %c0_184] : memref<8x8x128xf32, #tpu.memory_space<vmem>>, vector<1x8x128xf32>
    %240 = vector.shape_cast %239 : vector<1x8x128xf32> to vector<8x128xf32>
    %c2_185 = arith.constant 2 : index
    %c0_186 = arith.constant 0 : index
    %c0_187 = arith.constant 0 : index
    %241 = vector.load %arg4[%c2_185, %c0_186, %c0_187] : memref<5x128x128xf32, #tpu.memory_space<vmem>>, vector<1x128x128xf32>
    %242 = vector.shape_cast %241 : vector<1x128x128xf32> to vector<128x128xf32>
    %cst_188 = arith.constant dense<0.000000e+00> : vector<8x128xf32>
    %243 = tpu.matmul %233, %242, %cst_188 {dimension_numbers = #tpu.dot_dimension_numbers<[1], [0], [0], [1], [0, 0, 1, 1], [], []>} : vector<8x128xf32>, vector<128x128xf32>, vector<8x128xf32> -> vector<8x128xf32>
    %244 = arith.addf %240, %243 : vector<8x128xf32>
    %245 = math.tanh %244 : vector<8x128xf32>
    %246 = arith.index_cast %c1_i32_182 : i32 to index
    %c0_189 = arith.constant 0 : index
    %c0_190 = arith.constant 0 : index
    %247 = vector.load %arg9[%246, %c0_189, %c0_190] : memref<8x8x128xf32, #tpu.memory_space<vmem>>, vector<1x8x128xf32>
    %248 = vector.shape_cast %247 : vector<1x8x128xf32> to vector<8x128xf32>
    %249 = vector.shape_cast %245 : vector<8x128xf32> to vector<1x8x128xf32>
    tpu.vector_store %arg9[%246, %c0_189, %c0_190], %249 {strides = array<i32>} : memref<8x8x128xf32, #tpu.memory_space<vmem>>, vector<1x8x128xf32>,
    %c2_i32_191 = arith.constant 2 : i32
    %250 = arith.index_cast %c2_i32_191 : i32 to index
    %c0_192 = arith.constant 0 : index
    %c0_193 = arith.constant 0 : index
    %251 = vector.load %arg9[%250, %c0_192, %c0_193] : memref<8x8x128xf32, #tpu.memory_space<vmem>>, vector<1x8x128xf32>
    %252 = vector.shape_cast %251 : vector<1x8x128xf32> to vector<8x128xf32>
    %c2_194 = arith.constant 2 : index
    %c0_195 = arith.constant 0 : index
    %c0_196 = arith.constant 0 : index
    %253 = vector.load %arg4[%c2_194, %c0_195, %c0_196] : memref<5x128x128xf32, #tpu.memory_space<vmem>>, vector<1x128x128xf32>
    %254 = vector.shape_cast %253 : vector<1x128x128xf32> to vector<128x128xf32>
    %cst_197 = arith.constant dense<0.000000e+00> : vector<8x128xf32>
    %255 = tpu.matmul %245, %254, %cst_197 {dimension_numbers = #tpu.dot_dimension_numbers<[1], [0], [0], [1], [0, 0, 1, 1], [], []>} : vector<8x128xf32>, vector<128x128xf32>, vector<8x128xf32> -> vector<8x128xf32>
    %256 = arith.addf %252, %255 : vector<8x128xf32>
    %257 = math.tanh %256 : vector<8x128xf32>
    %258 = arith.index_cast %c2_i32_191 : i32 to index
    %c0_198 = arith.constant 0 : index
    %c0_199 = arith.constant 0 : index
    %259 = vector.load %arg9[%258, %c0_198, %c0_199] : memref<8x8x128xf32, #tpu.memory_space<vmem>>, vector<1x8x128xf32>
    %260 = vector.shape_cast %259 : vector<1x8x128xf32> to vector<8x128xf32>
    %261 = vector.shape_cast %257 : vector<8x128xf32> to vector<1x8x128xf32>
    tpu.vector_store %arg9[%258, %c0_198, %c0_199], %261 {strides = array<i32>} : memref<8x8x128xf32, #tpu.memory_space<vmem>>, vector<1x8x128xf32>,
    %c3_i32_200 = arith.constant 3 : i32
    %262 = arith.index_cast %c3_i32_200 : i32 to index
    %c0_201 = arith.constant 0 : index
    %c0_202 = arith.constant 0 : index
    %263 = vector.load %arg9[%262, %c0_201, %c0_202] : memref<8x8x128xf32, #tpu.memory_space<vmem>>, vector<1x8x128xf32>
    %264 = vector.shape_cast %263 : vector<1x8x128xf32> to vector<8x128xf32>
    %c2_203 = arith.constant 2 : index
    %c0_204 = arith.constant 0 : index
    %c0_205 = arith.constant 0 : index
    %265 = vector.load %arg4[%c2_203, %c0_204, %c0_205] : memref<5x128x128xf32, #tpu.memory_space<vmem>>, vector<1x128x128xf32>
    %266 = vector.shape_cast %265 : vector<1x128x128xf32> to vector<128x128xf32>
    %cst_206 = arith.constant dense<0.000000e+00> : vector<8x128xf32>
    %267 = tpu.matmul %257, %266, %cst_206 {dimension_numbers = #tpu.dot_dimension_numbers<[1], [0], [0], [1], [0, 0, 1, 1], [], []>} : vector<8x128xf32>, vector<128x128xf32>, vector<8x128xf32> -> vector<8x128xf32>
    %268 = arith.addf %264, %267 : vector<8x128xf32>
    %269 = math.tanh %268 : vector<8x128xf32>
    %270 = arith.index_cast %c3_i32_200 : i32 to index
    %c0_207 = arith.constant 0 : index
    %c0_208 = arith.constant 0 : index
    %271 = vector.load %arg9[%270, %c0_207, %c0_208] : memref<8x8x128xf32, #tpu.memory_space<vmem>>, vector<1x8x128xf32>
    %272 = vector.shape_cast %271 : vector<1x8x128xf32> to vector<8x128xf32>
    %273 = vector.shape_cast %269 : vector<8x128xf32> to vector<1x8x128xf32>
    tpu.vector_store %arg9[%270, %c0_207, %c0_208], %273 {strides = array<i32>} : memref<8x8x128xf32, #tpu.memory_space<vmem>>, vector<1x8x128xf32>,
    %c4_i32_209 = arith.constant 4 : i32
    %274 = arith.index_cast %c4_i32_209 : i32 to index
    %c0_210 = arith.constant 0 : index
    %c0_211 = arith.constant 0 : index
    %275 = vector.load %arg9[%274, %c0_210, %c0_211] : memref<8x8x128xf32, #tpu.memory_space<vmem>>, vector<1x8x128xf32>
    %276 = vector.shape_cast %275 : vector<1x8x128xf32> to vector<8x128xf32>
    %c2_212 = arith.constant 2 : index
    %c0_213 = arith.constant 0 : index
    %c0_214 = arith.constant 0 : index
    %277 = vector.load %arg4[%c2_212, %c0_213, %c0_214] : memref<5x128x128xf32, #tpu.memory_space<vmem>>, vector<1x128x128xf32>
    %278 = vector.shape_cast %277 : vector<1x128x128xf32> to vector<128x128xf32>
    %cst_215 = arith.constant dense<0.000000e+00> : vector<8x128xf32>
    %279 = tpu.matmul %269, %278, %cst_215 {dimension_numbers = #tpu.dot_dimension_numbers<[1], [0], [0], [1], [0, 0, 1, 1], [], []>} : vector<8x128xf32>, vector<128x128xf32>, vector<8x128xf32> -> vector<8x128xf32>
    %280 = arith.addf %276, %279 : vector<8x128xf32>
    %281 = math.tanh %280 : vector<8x128xf32>
    %282 = arith.index_cast %c4_i32_209 : i32 to index
    %c0_216 = arith.constant 0 : index
    %c0_217 = arith.constant 0 : index
    %283 = vector.load %arg9[%282, %c0_216, %c0_217] : memref<8x8x128xf32, #tpu.memory_space<vmem>>, vector<1x8x128xf32>
    %284 = vector.shape_cast %283 : vector<1x8x128xf32> to vector<8x128xf32>
    %285 = vector.shape_cast %281 : vector<8x128xf32> to vector<1x8x128xf32>
    tpu.vector_store %arg9[%282, %c0_216, %c0_217], %285 {strides = array<i32>} : memref<8x8x128xf32, #tpu.memory_space<vmem>>, vector<1x8x128xf32>,
    %c5_i32_218 = arith.constant 5 : i32
    %286 = arith.index_cast %c5_i32_218 : i32 to index
    %c0_219 = arith.constant 0 : index
    %c0_220 = arith.constant 0 : index
    %287 = vector.load %arg9[%286, %c0_219, %c0_220] : memref<8x8x128xf32, #tpu.memory_space<vmem>>, vector<1x8x128xf32>
    %288 = vector.shape_cast %287 : vector<1x8x128xf32> to vector<8x128xf32>
    %c2_221 = arith.constant 2 : index
    %c0_222 = arith.constant 0 : index
    %c0_223 = arith.constant 0 : index
    %289 = vector.load %arg4[%c2_221, %c0_222, %c0_223] : memref<5x128x128xf32, #tpu.memory_space<vmem>>, vector<1x128x128xf32>
    %290 = vector.shape_cast %289 : vector<1x128x128xf32> to vector<128x128xf32>
    %cst_224 = arith.constant dense<0.000000e+00> : vector<8x128xf32>
    %291 = tpu.matmul %281, %290, %cst_224 {dimension_numbers = #tpu.dot_dimension_numbers<[1], [0], [0], [1], [0, 0, 1, 1], [], []>} : vector<8x128xf32>, vector<128x128xf32>, vector<8x128xf32> -> vector<8x128xf32>
    %292 = arith.addf %288, %291 : vector<8x128xf32>
    %293 = math.tanh %292 : vector<8x128xf32>
    %294 = arith.index_cast %c5_i32_218 : i32 to index
    %c0_225 = arith.constant 0 : index
    %c0_226 = arith.constant 0 : index
    %295 = vector.load %arg9[%294, %c0_225, %c0_226] : memref<8x8x128xf32, #tpu.memory_space<vmem>>, vector<1x8x128xf32>
    %296 = vector.shape_cast %295 : vector<1x8x128xf32> to vector<8x128xf32>
    %297 = vector.shape_cast %293 : vector<8x128xf32> to vector<1x8x128xf32>
    tpu.vector_store %arg9[%294, %c0_225, %c0_226], %297 {strides = array<i32>} : memref<8x8x128xf32, #tpu.memory_space<vmem>>, vector<1x8x128xf32>,
    %c6_i32_227 = arith.constant 6 : i32
    %298 = arith.index_cast %c6_i32_227 : i32 to index
    %c0_228 = arith.constant 0 : index
    %c0_229 = arith.constant 0 : index
    %299 = vector.load %arg9[%298, %c0_228, %c0_229] : memref<8x8x128xf32, #tpu.memory_space<vmem>>, vector<1x8x128xf32>
    %300 = vector.shape_cast %299 : vector<1x8x128xf32> to vector<8x128xf32>
    %c2_230 = arith.constant 2 : index
    %c0_231 = arith.constant 0 : index
    %c0_232 = arith.constant 0 : index
    %301 = vector.load %arg4[%c2_230, %c0_231, %c0_232] : memref<5x128x128xf32, #tpu.memory_space<vmem>>, vector<1x128x128xf32>
    %302 = vector.shape_cast %301 : vector<1x128x128xf32> to vector<128x128xf32>
    %cst_233 = arith.constant dense<0.000000e+00> : vector<8x128xf32>
    %303 = tpu.matmul %293, %302, %cst_233 {dimension_numbers = #tpu.dot_dimension_numbers<[1], [0], [0], [1], [0, 0, 1, 1], [], []>} : vector<8x128xf32>, vector<128x128xf32>, vector<8x128xf32> -> vector<8x128xf32>
    %304 = arith.addf %300, %303 : vector<8x128xf32>
    %305 = math.tanh %304 : vector<8x128xf32>
    %306 = arith.index_cast %c6_i32_227 : i32 to index
    %c0_234 = arith.constant 0 : index
    %c0_235 = arith.constant 0 : index
    %307 = vector.load %arg9[%306, %c0_234, %c0_235] : memref<8x8x128xf32, #tpu.memory_space<vmem>>, vector<1x8x128xf32>
    %308 = vector.shape_cast %307 : vector<1x8x128xf32> to vector<8x128xf32>
    %309 = vector.shape_cast %305 : vector<8x128xf32> to vector<1x8x128xf32>
    tpu.vector_store %arg9[%306, %c0_234, %c0_235], %309 {strides = array<i32>} : memref<8x8x128xf32, #tpu.memory_space<vmem>>, vector<1x8x128xf32>,
    %c7_i32_236 = arith.constant 7 : i32
    %310 = arith.index_cast %c7_i32_236 : i32 to index
    %c0_237 = arith.constant 0 : index
    %c0_238 = arith.constant 0 : index
    %311 = vector.load %arg9[%310, %c0_237, %c0_238] : memref<8x8x128xf32, #tpu.memory_space<vmem>>, vector<1x8x128xf32>
    %312 = vector.shape_cast %311 : vector<1x8x128xf32> to vector<8x128xf32>
    %c2_239 = arith.constant 2 : index
    %c0_240 = arith.constant 0 : index
    %c0_241 = arith.constant 0 : index
    %313 = vector.load %arg4[%c2_239, %c0_240, %c0_241] : memref<5x128x128xf32, #tpu.memory_space<vmem>>, vector<1x128x128xf32>
    %314 = vector.shape_cast %313 : vector<1x128x128xf32> to vector<128x128xf32>
    %cst_242 = arith.constant dense<0.000000e+00> : vector<8x128xf32>
    %315 = tpu.matmul %305, %314, %cst_242 {dimension_numbers = #tpu.dot_dimension_numbers<[1], [0], [0], [1], [0, 0, 1, 1], [], []>} : vector<8x128xf32>, vector<128x128xf32>, vector<8x128xf32> -> vector<8x128xf32>
    %316 = arith.addf %312, %315 : vector<8x128xf32>
    %317 = math.tanh %316 : vector<8x128xf32>
    %318 = arith.index_cast %c7_i32_236 : i32 to index
    %c0_243 = arith.constant 0 : index
    %c0_244 = arith.constant 0 : index
    %319 = vector.load %arg9[%318, %c0_243, %c0_244] : memref<8x8x128xf32, #tpu.memory_space<vmem>>, vector<1x8x128xf32>
    %320 = vector.shape_cast %319 : vector<1x8x128xf32> to vector<8x128xf32>
    %321 = vector.shape_cast %317 : vector<8x128xf32> to vector<1x8x128xf32>
    tpu.vector_store %arg9[%318, %c0_243, %c0_244], %321 {strides = array<i32>} : memref<8x8x128xf32, #tpu.memory_space<vmem>>, vector<1x8x128xf32>,
    %c8_i32_245 = arith.constant 8 : i32
    %c0_246 = arith.constant 0 : index
    %c0_247 = arith.constant 0 : index
    %c0_248 = arith.constant 0 : index
    %322 = vector.load %arg9[%c0_246, %c0_247, %c0_248] : memref<8x8x128xf32, #tpu.memory_space<vmem>>, vector<8x8x128xf32>
    %323 = vector.shape_cast %322 : vector<8x8x128xf32> to vector<64x128xf32>
    %c2_249 = arith.constant 2 : index
    %c0_250 = arith.constant 0 : index
    %c0_251 = arith.constant 0 : index
    %324 = vector.load %arg3[%c2_249, %c0_250, %c0_251] : memref<4x128x128xf32, #tpu.memory_space<vmem>>, vector<1x128x128xf32>
    %325 = vector.shape_cast %324 : vector<1x128x128xf32> to vector<128x128xf32>
    %cst_252 = arith.constant dense<0.000000e+00> : vector<64x128xf32>
    %326 = tpu.matmul %323, %325, %cst_252 {dimension_numbers = #tpu.dot_dimension_numbers<[1], [0], [0], [1], [0, 0, 1, 1], [], []>} : vector<64x128xf32>, vector<128x128xf32>, vector<64x128xf32> -> vector<64x128xf32>
    %c3 = arith.constant 3 : index
    %c0_253 = arith.constant 0 : index
    %c0_254 = arith.constant 0 : index
    %327 = vector.load %arg5[%c3, %c0_253, %c0_254] : memref<5x1x128xf32, #tpu.memory_space<vmem>>, vector<1x1x128xf32>
    %328 = vector.shape_cast %327 : vector<1x1x128xf32> to vector<1x128xf32>
    %329 = vector.broadcast %328 : vector<1x128xf32> to vector<64x128xf32>
    %330 = arith.addf %326, %329 : vector<64x128xf32>
    %331 = vector.shape_cast %330 : vector<64x128xf32> to vector<8x8x128xf32>
    %c0_255 = arith.constant 0 : index
    %c0_256 = arith.constant 0 : index
    %c0_257 = arith.constant 0 : index
    %332 = vector.load %arg9[%c0_255, %c0_256, %c0_257] : memref<8x8x128xf32, #tpu.memory_space<vmem>>, vector<8x8x128xf32>
    tpu.vector_store %arg9[%c0_255, %c0_256, %c0_257], %331 {strides = array<i32>} : memref<8x8x128xf32, #tpu.memory_space<vmem>>, vector<8x8x128xf32>,
    %cst_258 = arith.constant 0.000000e+00 : f32
    %333 = vector.broadcast %cst_258 : f32 to vector<8x128xf32>
    %c0_i32_259 = arith.constant 0 : i32
    %334 = arith.index_cast %c0_i32_259 : i32 to index
    %c0_260 = arith.constant 0 : index
    %c0_261 = arith.constant 0 : index
    %335 = vector.load %arg9[%334, %c0_260, %c0_261] : memref<8x8x128xf32, #tpu.memory_space<vmem>>, vector<1x8x128xf32>
    %336 = vector.shape_cast %335 : vector<1x8x128xf32> to vector<8x128xf32>
    %c3_262 = arith.constant 3 : index
    %c0_263 = arith.constant 0 : index
    %c0_264 = arith.constant 0 : index
    %337 = vector.load %arg4[%c3_262, %c0_263, %c0_264] : memref<5x128x128xf32, #tpu.memory_space<vmem>>, vector<1x128x128xf32>
    %338 = vector.shape_cast %337 : vector<1x128x128xf32> to vector<128x128xf32>
    %cst_265 = arith.constant dense<0.000000e+00> : vector<8x128xf32>
    %339 = tpu.matmul %333, %338, %cst_265 {dimension_numbers = #tpu.dot_dimension_numbers<[1], [0], [0], [1], [0, 0, 1, 1], [], []>} : vector<8x128xf32>, vector<128x128xf32>, vector<8x128xf32> -> vector<8x128xf32>
    %340 = arith.addf %336, %339 : vector<8x128xf32>
    %341 = math.tanh %340 : vector<8x128xf32>
    %342 = arith.index_cast %c0_i32_259 : i32 to index
    %c0_266 = arith.constant 0 : index
    %c0_267 = arith.constant 0 : index
    %343 = vector.load %arg9[%342, %c0_266, %c0_267] : memref<8x8x128xf32, #tpu.memory_space<vmem>>, vector<1x8x128xf32>
    %344 = vector.shape_cast %343 : vector<1x8x128xf32> to vector<8x128xf32>
    %345 = vector.shape_cast %341 : vector<8x128xf32> to vector<1x8x128xf32>
    tpu.vector_store %arg9[%342, %c0_266, %c0_267], %345 {strides = array<i32>} : memref<8x8x128xf32, #tpu.memory_space<vmem>>, vector<1x8x128xf32>,
    %c1_i32_268 = arith.constant 1 : i32
    %346 = arith.index_cast %c1_i32_268 : i32 to index
    %c0_269 = arith.constant 0 : index
    %c0_270 = arith.constant 0 : index
    %347 = vector.load %arg9[%346, %c0_269, %c0_270] : memref<8x8x128xf32, #tpu.memory_space<vmem>>, vector<1x8x128xf32>
    %348 = vector.shape_cast %347 : vector<1x8x128xf32> to vector<8x128xf32>
    %c3_271 = arith.constant 3 : index
    %c0_272 = arith.constant 0 : index
    %c0_273 = arith.constant 0 : index
    %349 = vector.load %arg4[%c3_271, %c0_272, %c0_273] : memref<5x128x128xf32, #tpu.memory_space<vmem>>, vector<1x128x128xf32>
    %350 = vector.shape_cast %349 : vector<1x128x128xf32> to vector<128x128xf32>
    %cst_274 = arith.constant dense<0.000000e+00> : vector<8x128xf32>
    %351 = tpu.matmul %341, %350, %cst_274 {dimension_numbers = #tpu.dot_dimension_numbers<[1], [0], [0], [1], [0, 0, 1, 1], [], []>} : vector<8x128xf32>, vector<128x128xf32>, vector<8x128xf32> -> vector<8x128xf32>
    %352 = arith.addf %348, %351 : vector<8x128xf32>
    %353 = math.tanh %352 : vector<8x128xf32>
    %354 = arith.index_cast %c1_i32_268 : i32 to index
    %c0_275 = arith.constant 0 : index
    %c0_276 = arith.constant 0 : index
    %355 = vector.load %arg9[%354, %c0_275, %c0_276] : memref<8x8x128xf32, #tpu.memory_space<vmem>>, vector<1x8x128xf32>
    %356 = vector.shape_cast %355 : vector<1x8x128xf32> to vector<8x128xf32>
    %357 = vector.shape_cast %353 : vector<8x128xf32> to vector<1x8x128xf32>
    tpu.vector_store %arg9[%354, %c0_275, %c0_276], %357 {strides = array<i32>} : memref<8x8x128xf32, #tpu.memory_space<vmem>>, vector<1x8x128xf32>,
    %c2_i32_277 = arith.constant 2 : i32
    %358 = arith.index_cast %c2_i32_277 : i32 to index
    %c0_278 = arith.constant 0 : index
    %c0_279 = arith.constant 0 : index
    %359 = vector.load %arg9[%358, %c0_278, %c0_279] : memref<8x8x128xf32, #tpu.memory_space<vmem>>, vector<1x8x128xf32>
    %360 = vector.shape_cast %359 : vector<1x8x128xf32> to vector<8x128xf32>
    %c3_280 = arith.constant 3 : index
    %c0_281 = arith.constant 0 : index
    %c0_282 = arith.constant 0 : index
    %361 = vector.load %arg4[%c3_280, %c0_281, %c0_282] : memref<5x128x128xf32, #tpu.memory_space<vmem>>, vector<1x128x128xf32>
    %362 = vector.shape_cast %361 : vector<1x128x128xf32> to vector<128x128xf32>
    %cst_283 = arith.constant dense<0.000000e+00> : vector<8x128xf32>
    %363 = tpu.matmul %353, %362, %cst_283 {dimension_numbers = #tpu.dot_dimension_numbers<[1], [0], [0], [1], [0, 0, 1, 1], [], []>} : vector<8x128xf32>, vector<128x128xf32>, vector<8x128xf32> -> vector<8x128xf32>
    %364 = arith.addf %360, %363 : vector<8x128xf32>
    %365 = math.tanh %364 : vector<8x128xf32>
    %366 = arith.index_cast %c2_i32_277 : i32 to index
    %c0_284 = arith.constant 0 : index
    %c0_285 = arith.constant 0 : index
    %367 = vector.load %arg9[%366, %c0_284, %c0_285] : memref<8x8x128xf32, #tpu.memory_space<vmem>>, vector<1x8x128xf32>
    %368 = vector.shape_cast %367 : vector<1x8x128xf32> to vector<8x128xf32>
    %369 = vector.shape_cast %365 : vector<8x128xf32> to vector<1x8x128xf32>
    tpu.vector_store %arg9[%366, %c0_284, %c0_285], %369 {strides = array<i32>} : memref<8x8x128xf32, #tpu.memory_space<vmem>>, vector<1x8x128xf32>,
    %c3_i32_286 = arith.constant 3 : i32
    %370 = arith.index_cast %c3_i32_286 : i32 to index
    %c0_287 = arith.constant 0 : index
    %c0_288 = arith.constant 0 : index
    %371 = vector.load %arg9[%370, %c0_287, %c0_288] : memref<8x8x128xf32, #tpu.memory_space<vmem>>, vector<1x8x128xf32>
    %372 = vector.shape_cast %371 : vector<1x8x128xf32> to vector<8x128xf32>
    %c3_289 = arith.constant 3 : index
    %c0_290 = arith.constant 0 : index
    %c0_291 = arith.constant 0 : index
    %373 = vector.load %arg4[%c3_289, %c0_290, %c0_291] : memref<5x128x128xf32, #tpu.memory_space<vmem>>, vector<1x128x128xf32>
    %374 = vector.shape_cast %373 : vector<1x128x128xf32> to vector<128x128xf32>
    %cst_292 = arith.constant dense<0.000000e+00> : vector<8x128xf32>
    %375 = tpu.matmul %365, %374, %cst_292 {dimension_numbers = #tpu.dot_dimension_numbers<[1], [0], [0], [1], [0, 0, 1, 1], [], []>} : vector<8x128xf32>, vector<128x128xf32>, vector<8x128xf32> -> vector<8x128xf32>
    %376 = arith.addf %372, %375 : vector<8x128xf32>
    %377 = math.tanh %376 : vector<8x128xf32>
    %378 = arith.index_cast %c3_i32_286 : i32 to index
    %c0_293 = arith.constant 0 : index
    %c0_294 = arith.constant 0 : index
    %379 = vector.load %arg9[%378, %c0_293, %c0_294] : memref<8x8x128xf32, #tpu.memory_space<vmem>>, vector<1x8x128xf32>
    %380 = vector.shape_cast %379 : vector<1x8x128xf32> to vector<8x128xf32>
    %381 = vector.shape_cast %377 : vector<8x128xf32> to vector<1x8x128xf32>
    tpu.vector_store %arg9[%378, %c0_293, %c0_294], %381 {strides = array<i32>} : memref<8x8x128xf32, #tpu.memory_space<vmem>>, vector<1x8x128xf32>,
    %c4_i32_295 = arith.constant 4 : i32
    %382 = arith.index_cast %c4_i32_295 : i32 to index
    %c0_296 = arith.constant 0 : index
    %c0_297 = arith.constant 0 : index
    %383 = vector.load %arg9[%382, %c0_296, %c0_297] : memref<8x8x128xf32, #tpu.memory_space<vmem>>, vector<1x8x128xf32>
    %384 = vector.shape_cast %383 : vector<1x8x128xf32> to vector<8x128xf32>
    %c3_298 = arith.constant 3 : index
    %c0_299 = arith.constant 0 : index
    %c0_300 = arith.constant 0 : index
    %385 = vector.load %arg4[%c3_298, %c0_299, %c0_300] : memref<5x128x128xf32, #tpu.memory_space<vmem>>, vector<1x128x128xf32>
    %386 = vector.shape_cast %385 : vector<1x128x128xf32> to vector<128x128xf32>
    %cst_301 = arith.constant dense<0.000000e+00> : vector<8x128xf32>
    %387 = tpu.matmul %377, %386, %cst_301 {dimension_numbers = #tpu.dot_dimension_numbers<[1], [0], [0], [1], [0, 0, 1, 1], [], []>} : vector<8x128xf32>, vector<128x128xf32>, vector<8x128xf32> -> vector<8x128xf32>
    %388 = arith.addf %384, %387 : vector<8x128xf32>
    %389 = math.tanh %388 : vector<8x128xf32>
    %390 = arith.index_cast %c4_i32_295 : i32 to index
    %c0_302 = arith.constant 0 : index
    %c0_303 = arith.constant 0 : index
    %391 = vector.load %arg9[%390, %c0_302, %c0_303] : memref<8x8x128xf32, #tpu.memory_space<vmem>>, vector<1x8x128xf32>
    %392 = vector.shape_cast %391 : vector<1x8x128xf32> to vector<8x128xf32>
    %393 = vector.shape_cast %389 : vector<8x128xf32> to vector<1x8x128xf32>
    tpu.vector_store %arg9[%390, %c0_302, %c0_303], %393 {strides = array<i32>} : memref<8x8x128xf32, #tpu.memory_space<vmem>>, vector<1x8x128xf32>,
    %c5_i32_304 = arith.constant 5 : i32
    %394 = arith.index_cast %c5_i32_304 : i32 to index
    %c0_305 = arith.constant 0 : index
    %c0_306 = arith.constant 0 : index
    %395 = vector.load %arg9[%394, %c0_305, %c0_306] : memref<8x8x128xf32, #tpu.memory_space<vmem>>, vector<1x8x128xf32>
    %396 = vector.shape_cast %395 : vector<1x8x128xf32> to vector<8x128xf32>
    %c3_307 = arith.constant 3 : index
    %c0_308 = arith.constant 0 : index
    %c0_309 = arith.constant 0 : index
    %397 = vector.load %arg4[%c3_307, %c0_308, %c0_309] : memref<5x128x128xf32, #tpu.memory_space<vmem>>, vector<1x128x128xf32>
    %398 = vector.shape_cast %397 : vector<1x128x128xf32> to vector<128x128xf32>
    %cst_310 = arith.constant dense<0.000000e+00> : vector<8x128xf32>
    %399 = tpu.matmul %389, %398, %cst_310 {dimension_numbers = #tpu.dot_dimension_numbers<[1], [0], [0], [1], [0, 0, 1, 1], [], []>} : vector<8x128xf32>, vector<128x128xf32>, vector<8x128xf32> -> vector<8x128xf32>
    %400 = arith.addf %396, %399 : vector<8x128xf32>
    %401 = math.tanh %400 : vector<8x128xf32>
    %402 = arith.index_cast %c5_i32_304 : i32 to index
    %c0_311 = arith.constant 0 : index
    %c0_312 = arith.constant 0 : index
    %403 = vector.load %arg9[%402, %c0_311, %c0_312] : memref<8x8x128xf32, #tpu.memory_space<vmem>>, vector<1x8x128xf32>
    %404 = vector.shape_cast %403 : vector<1x8x128xf32> to vector<8x128xf32>
    %405 = vector.shape_cast %401 : vector<8x128xf32> to vector<1x8x128xf32>
    tpu.vector_store %arg9[%402, %c0_311, %c0_312], %405 {strides = array<i32>} : memref<8x8x128xf32, #tpu.memory_space<vmem>>, vector<1x8x128xf32>,
    %c6_i32_313 = arith.constant 6 : i32
    %406 = arith.index_cast %c6_i32_313 : i32 to index
    %c0_314 = arith.constant 0 : index
    %c0_315 = arith.constant 0 : index
    %407 = vector.load %arg9[%406, %c0_314, %c0_315] : memref<8x8x128xf32, #tpu.memory_space<vmem>>, vector<1x8x128xf32>
    %408 = vector.shape_cast %407 : vector<1x8x128xf32> to vector<8x128xf32>
    %c3_316 = arith.constant 3 : index
    %c0_317 = arith.constant 0 : index
    %c0_318 = arith.constant 0 : index
    %409 = vector.load %arg4[%c3_316, %c0_317, %c0_318] : memref<5x128x128xf32, #tpu.memory_space<vmem>>, vector<1x128x128xf32>
    %410 = vector.shape_cast %409 : vector<1x128x128xf32> to vector<128x128xf32>
    %cst_319 = arith.constant dense<0.000000e+00> : vector<8x128xf32>
    %411 = tpu.matmul %401, %410, %cst_319 {dimension_numbers = #tpu.dot_dimension_numbers<[1], [0], [0], [1], [0, 0, 1, 1], [], []>} : vector<8x128xf32>, vector<128x128xf32>, vector<8x128xf32> -> vector<8x128xf32>
    %412 = arith.addf %408, %411 : vector<8x128xf32>
    %413 = math.tanh %412 : vector<8x128xf32>
    %414 = arith.index_cast %c6_i32_313 : i32 to index
    %c0_320 = arith.constant 0 : index
    %c0_321 = arith.constant 0 : index
    %415 = vector.load %arg9[%414, %c0_320, %c0_321] : memref<8x8x128xf32, #tpu.memory_space<vmem>>, vector<1x8x128xf32>
    %416 = vector.shape_cast %415 : vector<1x8x128xf32> to vector<8x128xf32>
    %417 = vector.shape_cast %413 : vector<8x128xf32> to vector<1x8x128xf32>
    tpu.vector_store %arg9[%414, %c0_320, %c0_321], %417 {strides = array<i32>} : memref<8x8x128xf32, #tpu.memory_space<vmem>>, vector<1x8x128xf32>,
    %c7_i32_322 = arith.constant 7 : i32
    %418 = arith.index_cast %c7_i32_322 : i32 to index
    %c0_323 = arith.constant 0 : index
    %c0_324 = arith.constant 0 : index
    %419 = vector.load %arg9[%418, %c0_323, %c0_324] : memref<8x8x128xf32, #tpu.memory_space<vmem>>, vector<1x8x128xf32>
    %420 = vector.shape_cast %419 : vector<1x8x128xf32> to vector<8x128xf32>
    %c3_325 = arith.constant 3 : index
    %c0_326 = arith.constant 0 : index
    %c0_327 = arith.constant 0 : index
    %421 = vector.load %arg4[%c3_325, %c0_326, %c0_327] : memref<5x128x128xf32, #tpu.memory_space<vmem>>, vector<1x128x128xf32>
    %422 = vector.shape_cast %421 : vector<1x128x128xf32> to vector<128x128xf32>
    %cst_328 = arith.constant dense<0.000000e+00> : vector<8x128xf32>
    %423 = tpu.matmul %413, %422, %cst_328 {dimension_numbers = #tpu.dot_dimension_numbers<[1], [0], [0], [1], [0, 0, 1, 1], [], []>} : vector<8x128xf32>, vector<128x128xf32>, vector<8x128xf32> -> vector<8x128xf32>
    %424 = arith.addf %420, %423 : vector<8x128xf32>
    %425 = math.tanh %424 : vector<8x128xf32>
    %426 = arith.index_cast %c7_i32_322 : i32 to index
    %c0_329 = arith.constant 0 : index
    %c0_330 = arith.constant 0 : index
    %427 = vector.load %arg9[%426, %c0_329, %c0_330] : memref<8x8x128xf32, #tpu.memory_space<vmem>>, vector<1x8x128xf32>
    %428 = vector.shape_cast %427 : vector<1x8x128xf32> to vector<8x128xf32>
    %429 = vector.shape_cast %425 : vector<8x128xf32> to vector<1x8x128xf32>
    tpu.vector_store %arg9[%426, %c0_329, %c0_330], %429 {strides = array<i32>} : memref<8x8x128xf32, #tpu.memory_space<vmem>>, vector<1x8x128xf32>,
    %c8_i32_331 = arith.constant 8 : i32
    %c0_332 = arith.constant 0 : index
    %c0_333 = arith.constant 0 : index
    %c0_334 = arith.constant 0 : index
    %430 = vector.load %arg9[%c0_332, %c0_333, %c0_334] : memref<8x8x128xf32, #tpu.memory_space<vmem>>, vector<8x8x128xf32>
    %431 = vector.shape_cast %430 : vector<8x8x128xf32> to vector<64x128xf32>
    %c3_335 = arith.constant 3 : index
    %c0_336 = arith.constant 0 : index
    %c0_337 = arith.constant 0 : index
    %432 = vector.load %arg3[%c3_335, %c0_336, %c0_337] : memref<4x128x128xf32, #tpu.memory_space<vmem>>, vector<1x128x128xf32>
    %433 = vector.shape_cast %432 : vector<1x128x128xf32> to vector<128x128xf32>
    %cst_338 = arith.constant dense<0.000000e+00> : vector<64x128xf32>
    %434 = tpu.matmul %431, %433, %cst_338 {dimension_numbers = #tpu.dot_dimension_numbers<[1], [0], [0], [1], [0, 0, 1, 1], [], []>} : vector<64x128xf32>, vector<128x128xf32>, vector<64x128xf32> -> vector<64x128xf32>
    %c4 = arith.constant 4 : index
    %c0_339 = arith.constant 0 : index
    %c0_340 = arith.constant 0 : index
    %435 = vector.load %arg5[%c4, %c0_339, %c0_340] : memref<5x1x128xf32, #tpu.memory_space<vmem>>, vector<1x1x128xf32>
    %436 = vector.shape_cast %435 : vector<1x1x128xf32> to vector<1x128xf32>
    %437 = vector.broadcast %436 : vector<1x128xf32> to vector<64x128xf32>
    %438 = arith.addf %434, %437 : vector<64x128xf32>
    %439 = vector.shape_cast %438 : vector<64x128xf32> to vector<8x8x128xf32>
    %c0_341 = arith.constant 0 : index
    %c0_342 = arith.constant 0 : index
    %c0_343 = arith.constant 0 : index
    %440 = vector.load %arg9[%c0_341, %c0_342, %c0_343] : memref<8x8x128xf32, #tpu.memory_space<vmem>>, vector<8x8x128xf32>
    tpu.vector_store %arg9[%c0_341, %c0_342, %c0_343], %439 {strides = array<i32>} : memref<8x8x128xf32, #tpu.memory_space<vmem>>, vector<8x8x128xf32>,
    %cst_344 = arith.constant 0.000000e+00 : f32
    %441 = vector.broadcast %cst_344 : f32 to vector<8x128xf32>
    %c0_i32_345 = arith.constant 0 : i32
    %442 = arith.index_cast %c0_i32_345 : i32 to index
    %c0_346 = arith.constant 0 : index
    %c0_347 = arith.constant 0 : index
    %443 = vector.load %arg9[%442, %c0_346, %c0_347] : memref<8x8x128xf32, #tpu.memory_space<vmem>>, vector<1x8x128xf32>
    %444 = vector.shape_cast %443 : vector<1x8x128xf32> to vector<8x128xf32>
    %c4_348 = arith.constant 4 : index
    %c0_349 = arith.constant 0 : index
    %c0_350 = arith.constant 0 : index
    %445 = vector.load %arg4[%c4_348, %c0_349, %c0_350] : memref<5x128x128xf32, #tpu.memory_space<vmem>>, vector<1x128x128xf32>
    %446 = vector.shape_cast %445 : vector<1x128x128xf32> to vector<128x128xf32>
    %cst_351 = arith.constant dense<0.000000e+00> : vector<8x128xf32>
    %447 = tpu.matmul %441, %446, %cst_351 {dimension_numbers = #tpu.dot_dimension_numbers<[1], [0], [0], [1], [0, 0, 1, 1], [], []>} : vector<8x128xf32>, vector<128x128xf32>, vector<8x128xf32> -> vector<8x128xf32>
    %448 = arith.addf %444, %447 : vector<8x128xf32>
    %449 = math.tanh %448 : vector<8x128xf32>
    %c1_i32_352 = arith.constant 1 : i32
    %450 = arith.index_cast %c1_i32_352 : i32 to index
    %c0_353 = arith.constant 0 : index
    %c0_354 = arith.constant 0 : index
    %451 = vector.load %arg9[%450, %c0_353, %c0_354] : memref<8x8x128xf32, #tpu.memory_space<vmem>>, vector<1x8x128xf32>
    %452 = vector.shape_cast %451 : vector<1x8x128xf32> to vector<8x128xf32>
    %c4_355 = arith.constant 4 : index
    %c0_356 = arith.constant 0 : index
    %c0_357 = arith.constant 0 : index
    %453 = vector.load %arg4[%c4_355, %c0_356, %c0_357] : memref<5x128x128xf32, #tpu.memory_space<vmem>>, vector<1x128x128xf32>
    %454 = vector.shape_cast %453 : vector<1x128x128xf32> to vector<128x128xf32>
    %cst_358 = arith.constant dense<0.000000e+00> : vector<8x128xf32>
    %455 = tpu.matmul %449, %454, %cst_358 {dimension_numbers = #tpu.dot_dimension_numbers<[1], [0], [0], [1], [0, 0, 1, 1], [], []>} : vector<8x128xf32>, vector<128x128xf32>, vector<8x128xf32> -> vector<8x128xf32>
    %456 = arith.addf %452, %455 : vector<8x128xf32>
    %457 = math.tanh %456 : vector<8x128xf32>
    %c2_i32_359 = arith.constant 2 : i32
    %458 = arith.index_cast %c2_i32_359 : i32 to index
    %c0_360 = arith.constant 0 : index
    %c0_361 = arith.constant 0 : index
    %459 = vector.load %arg9[%458, %c0_360, %c0_361] : memref<8x8x128xf32, #tpu.memory_space<vmem>>, vector<1x8x128xf32>
    %460 = vector.shape_cast %459 : vector<1x8x128xf32> to vector<8x128xf32>
    %c4_362 = arith.constant 4 : index
    %c0_363 = arith.constant 0 : index
    %c0_364 = arith.constant 0 : index
    %461 = vector.load %arg4[%c4_362, %c0_363, %c0_364] : memref<5x128x128xf32, #tpu.memory_space<vmem>>, vector<1x128x128xf32>
    %462 = vector.shape_cast %461 : vector<1x128x128xf32> to vector<128x128xf32>
    %cst_365 = arith.constant dense<0.000000e+00> : vector<8x128xf32>
    %463 = tpu.matmul %457, %462, %cst_365 {dimension_numbers = #tpu.dot_dimension_numbers<[1], [0], [0], [1], [0, 0, 1, 1], [], []>} : vector<8x128xf32>, vector<128x128xf32>, vector<8x128xf32> -> vector<8x128xf32>
    %464 = arith.addf %460, %463 : vector<8x128xf32>
    %465 = math.tanh %464 : vector<8x128xf32>
    %c3_i32_366 = arith.constant 3 : i32
    %466 = arith.index_cast %c3_i32_366 : i32 to index
    %c0_367 = arith.constant 0 : index
    %c0_368 = arith.constant 0 : index
    %467 = vector.load %arg9[%466, %c0_367, %c0_368] : memref<8x8x128xf32, #tpu.memory_space<vmem>>, vector<1x8x128xf32>
    %468 = vector.shape_cast %467 : vector<1x8x128xf32> to vector<8x128xf32>
    %c4_369 = arith.constant 4 : index
    %c0_370 = arith.constant 0 : index
    %c0_371 = arith.constant 0 : index
    %469 = vector.load %arg4[%c4_369, %c0_370, %c0_371] : memref<5x128x128xf32, #tpu.memory_space<vmem>>, vector<1x128x128xf32>
    %470 = vector.shape_cast %469 : vector<1x128x128xf32> to vector<128x128xf32>
    %cst_372 = arith.constant dense<0.000000e+00> : vector<8x128xf32>
    %471 = tpu.matmul %465, %470, %cst_372 {dimension_numbers = #tpu.dot_dimension_numbers<[1], [0], [0], [1], [0, 0, 1, 1], [], []>} : vector<8x128xf32>, vector<128x128xf32>, vector<8x128xf32> -> vector<8x128xf32>
    %472 = arith.addf %468, %471 : vector<8x128xf32>
    %473 = math.tanh %472 : vector<8x128xf32>
    %c4_i32_373 = arith.constant 4 : i32
    %474 = arith.index_cast %c4_i32_373 : i32 to index
    %c0_374 = arith.constant 0 : index
    %c0_375 = arith.constant 0 : index
    %475 = vector.load %arg9[%474, %c0_374, %c0_375] : memref<8x8x128xf32, #tpu.memory_space<vmem>>, vector<1x8x128xf32>
    %476 = vector.shape_cast %475 : vector<1x8x128xf32> to vector<8x128xf32>
    %c4_376 = arith.constant 4 : index
    %c0_377 = arith.constant 0 : index
    %c0_378 = arith.constant 0 : index
    %477 = vector.load %arg4[%c4_376, %c0_377, %c0_378] : memref<5x128x128xf32, #tpu.memory_space<vmem>>, vector<1x128x128xf32>
    %478 = vector.shape_cast %477 : vector<1x128x128xf32> to vector<128x128xf32>
    %cst_379 = arith.constant dense<0.000000e+00> : vector<8x128xf32>
    %479 = tpu.matmul %473, %478, %cst_379 {dimension_numbers = #tpu.dot_dimension_numbers<[1], [0], [0], [1], [0, 0, 1, 1], [], []>} : vector<8x128xf32>, vector<128x128xf32>, vector<8x128xf32> -> vector<8x128xf32>
    %480 = arith.addf %476, %479 : vector<8x128xf32>
    %481 = math.tanh %480 : vector<8x128xf32>
    %c5_i32_380 = arith.constant 5 : i32
    %482 = arith.index_cast %c5_i32_380 : i32 to index
    %c0_381 = arith.constant 0 : index
    %c0_382 = arith.constant 0 : index
    %483 = vector.load %arg9[%482, %c0_381, %c0_382] : memref<8x8x128xf32, #tpu.memory_space<vmem>>, vector<1x8x128xf32>
    %484 = vector.shape_cast %483 : vector<1x8x128xf32> to vector<8x128xf32>
    %c4_383 = arith.constant 4 : index
    %c0_384 = arith.constant 0 : index
    %c0_385 = arith.constant 0 : index
    %485 = vector.load %arg4[%c4_383, %c0_384, %c0_385] : memref<5x128x128xf32, #tpu.memory_space<vmem>>, vector<1x128x128xf32>
    %486 = vector.shape_cast %485 : vector<1x128x128xf32> to vector<128x128xf32>
    %cst_386 = arith.constant dense<0.000000e+00> : vector<8x128xf32>
    %487 = tpu.matmul %481, %486, %cst_386 {dimension_numbers = #tpu.dot_dimension_numbers<[1], [0], [0], [1], [0, 0, 1, 1], [], []>} : vector<8x128xf32>, vector<128x128xf32>, vector<8x128xf32> -> vector<8x128xf32>
    %488 = arith.addf %484, %487 : vector<8x128xf32>
    %489 = math.tanh %488 : vector<8x128xf32>
    %c6_i32_387 = arith.constant 6 : i32
    %490 = arith.index_cast %c6_i32_387 : i32 to index
    %c0_388 = arith.constant 0 : index
    %c0_389 = arith.constant 0 : index
    %491 = vector.load %arg9[%490, %c0_388, %c0_389] : memref<8x8x128xf32, #tpu.memory_space<vmem>>, vector<1x8x128xf32>
    %492 = vector.shape_cast %491 : vector<1x8x128xf32> to vector<8x128xf32>
    %c4_390 = arith.constant 4 : index
    %c0_391 = arith.constant 0 : index
    %c0_392 = arith.constant 0 : index
    %493 = vector.load %arg4[%c4_390, %c0_391, %c0_392] : memref<5x128x128xf32, #tpu.memory_space<vmem>>, vector<1x128x128xf32>
    %494 = vector.shape_cast %493 : vector<1x128x128xf32> to vector<128x128xf32>
    %cst_393 = arith.constant dense<0.000000e+00> : vector<8x128xf32>
    %495 = tpu.matmul %489, %494, %cst_393 {dimension_numbers = #tpu.dot_dimension_numbers<[1], [0], [0], [1], [0, 0, 1, 1], [], []>} : vector<8x128xf32>, vector<128x128xf32>, vector<8x128xf32> -> vector<8x128xf32>
    %496 = arith.addf %492, %495 : vector<8x128xf32>
    %497 = math.tanh %496 : vector<8x128xf32>
    %c7_i32_394 = arith.constant 7 : i32
    %498 = arith.index_cast %c7_i32_394 : i32 to index
    %c0_395 = arith.constant 0 : index
    %c0_396 = arith.constant 0 : index
    %499 = vector.load %arg9[%498, %c0_395, %c0_396] : memref<8x8x128xf32, #tpu.memory_space<vmem>>, vector<1x8x128xf32>
    %500 = vector.shape_cast %499 : vector<1x8x128xf32> to vector<8x128xf32>
    %c4_397 = arith.constant 4 : index
    %c0_398 = arith.constant 0 : index
    %c0_399 = arith.constant 0 : index
    %501 = vector.load %arg4[%c4_397, %c0_398, %c0_399] : memref<5x128x128xf32, #tpu.memory_space<vmem>>, vector<1x128x128xf32>
    %502 = vector.shape_cast %501 : vector<1x128x128xf32> to vector<128x128xf32>
    %cst_400 = arith.constant dense<0.000000e+00> : vector<8x128xf32>
    %503 = tpu.matmul %497, %502, %cst_400 {dimension_numbers = #tpu.dot_dimension_numbers<[1], [0], [0], [1], [0, 0, 1, 1], [], []>} : vector<8x128xf32>, vector<128x128xf32>, vector<8x128xf32> -> vector<8x128xf32>
    %504 = arith.addf %500, %503 : vector<8x128xf32>
    %505 = math.tanh %504 : vector<8x128xf32>
    %c8_i32_401 = arith.constant 8 : i32
    %c0_402 = arith.constant 0 : index
    %c0_403 = arith.constant 0 : index
    %506 = vector.load %arg6[%c0_402, %c0_403] : memref<128x128xf32, #tpu.memory_space<vmem>>, vector<128x128xf32>
    %cst_404 = arith.constant dense<0.000000e+00> : vector<8x128xf32>
    %507 = tpu.matmul %505, %506, %cst_404 {dimension_numbers = #tpu.dot_dimension_numbers<[1], [0], [0], [1], [0, 0, 1, 1], [], []>} : vector<8x128xf32>, vector<128x128xf32>, vector<8x128xf32> -> vector<8x128xf32>
    %c0_405 = arith.constant 0 : index
    %c0_406 = arith.constant 0 : index
    %508 = vector.load %arg7[%c0_405, %c0_406] : memref<1x128xf32, #tpu.memory_space<vmem>>, vector<1x128xf32>
    %509 = vector.broadcast %508 : vector<1x128xf32> to vector<8x128xf32>
    %510 = arith.addf %507, %509 : vector<8x128xf32>
    %c0_407 = arith.constant 0 : index
    %c0_408 = arith.constant 0 : index
    %511 = vector.load %arg8[%c0_407, %c0_408] : memref<8x128xf32, #tpu.memory_space<vmem>>, vector<8x128xf32>
    tpu.vector_store %arg8[%c0_407, %c0_408], %510 {strides = array<i32>} : memref<8x128xf32, #tpu.memory_space<vmem>>, vector<8x128xf32>,
    return
  }
  func.func @transform_0(%arg0: i32) -> (i32, i32) {
    %c0_i32 = arith.constant 0 : i32
    %c0_i32_0 = arith.constant 0 : i32
    %c0_i32_1 = arith.constant 0 : i32
    return %c0_i32, %c0_i32_0 : i32, i32
  }
  func.func @transform_1(%arg0: i32) -> (i32, i32) {
    %c0_i32 = arith.constant 0 : i32
    %c0_i32_0 = arith.constant 0 : i32
    %c0_i32_1 = arith.constant 0 : i32
    return %c0_i32, %c0_i32_0 : i32, i32
  }
  func.func @transform_2(%arg0: i32) -> (i32, i32, i32) {
    %c0_i32 = arith.constant 0 : i32
    %c0_i32_0 = arith.constant 0 : i32
    %c0_i32_1 = arith.constant 0 : i32
    %c0_i32_2 = arith.constant 0 : i32
    return %c0_i32, %c0_i32_0, %c0_i32_1 : i32, i32, i32
  }
  func.func @transform_3(%arg0: i32) -> (i32, i32, i32) {
    %c0_i32 = arith.constant 0 : i32
    %c0_i32_0 = arith.constant 0 : i32
    %c0_i32_1 = arith.constant 0 : i32
    %c0_i32_2 = arith.constant 0 : i32
    return %c0_i32, %c0_i32_0, %c0_i32_1 : i32, i32, i32
  }
  func.func @transform_4(%arg0: i32) -> (i32, i32, i32) {
    %c0_i32 = arith.constant 0 : i32
    %c0_i32_0 = arith.constant 0 : i32
    %c0_i32_1 = arith.constant 0 : i32
    %c0_i32_2 = arith.constant 0 : i32
    return %c0_i32, %c0_i32_0, %c0_i32_1 : i32, i32, i32
  }
  func.func @transform_5(%arg0: i32) -> (i32, i32) {
    %c0_i32 = arith.constant 0 : i32
    %c0_i32_0 = arith.constant 0 : i32
    %c0_i32_1 = arith.constant 0 : i32
    return %c0_i32, %c0_i32_0 : i32, i32
  }
  func.func @transform_6(%arg0: i32) -> (i32, i32) {
    %c0_i32 = arith.constant 0 : i32
    %c0_i32_0 = arith.constant 0 : i32
    %c0_i32_1 = arith.constant 0 : i32
    return %c0_i32, %c0_i32_0 : i32, i32
  }
  func.func @transform_7(%arg0: i32) -> (i32, i32) {
    %c0_i32 = arith.constant 0 : i32
    %c0_i32_0 = arith.constant 0 : i32
    %c0_i32_1 = arith.constant 0 : i32
    return %c0_i32, %c0_i32_0 : i32, i32
  }
}

</mosaic_0001>

<bundles_post_ra>
// kernel: tpu_custom_call.1
= control target key start
LH: loop header
LB: loop body
LE: loop exit
PB: predicated region body
PF: predicated region fallthrough
CT: control target
= control target key end

     0   :  { %12 = vsyncpa [#allocation4], 0  ;;  %s9378_s0 = inlined_call_operand.vmem [shape: f32[64,22], index: 0, kind: input, shape index: {}]   ;;  %s9379_s1 = inlined_call_operand.vmem [shape: f32[22,128], index: 1, kind: input, shape index: {}]   ;;  %s9380_s2 = inlined_call_operand.hbm [shape: f32[4,128,128], index: 2, kind: input, shape index: {}]   ;;  %s9381_s3 = inlined_call_operand.hbm [shape: f32[5,128,128], index: 3, kind: input, shape index: {}]   ;;  %s9382_s4 = inlined_call_operand.vmem [shape: f32[5,1,128], index: 4, kind: input, shape index: {}]   ;;  %s9383_s5 = inlined_call_operand.hbm [shape: f32[128,128], index: 5, kind: input, shape index: {}]   ;;  %s9384_s6 = inlined_call_operand.vmem [shape: f32[1,128], index: 6, kind: input, shape index: {}]   ;;  %s9385_s7 = inlined_call_operand.hbm [shape: f32[8,128], index: 7, kind: output, shape index: {}]  }
   0x1   :  { %13 = vsyncpa [#allocation7], 0 }
   0x2   :  { %14 = vsyncpa [#allocation5], 0  ;;  %s8163_s24 = smov [#allocation6]   ;;  %s8164_s26 = smov [#allocation3]  }
   0x3   :  { %s36_s25 = sshll.u32 %s8163_s24, 4  ;;  %s24_s27 = sshll.u32 %s8164_s26, 4  ;;  %s37_s25 = int_to_ptr.vmem [resolvable:$true] %s36_s25  ;;  %s8212_s27 = int_to_ptr.vmem [resolvable:$true] %s24_s27 }
   0x4   :  { %s8069_s30 = scalar_lea.hbm %s9381_s3, 10240 }
   0x5   :  { %p8070_p0 = scmp.ne.s32.totalorder %s9381_s3, %s8069_s30  ;;  %p8073_p1 = scmp.lt.u32.totalorder %s8069_s30, %s9381_s3 }
   0x7   :  { %p8075_p2 = pnand %p8073_p1, %p8070_p0 }
   0x9   :  { %8078 = shalt.err (!%p8075_p2)
}
   0xa   :  { %s8079_s12 = scalar_lea.vmem %s37_s25, 10240  ;;  %p8084_p4 = scmp.lt.s32.totalorder %s37_s25, %s37_s25 }
   0xb   :  { %p8080_p3 = scmp.ne.s32.totalorder %s37_s25, %s8079_s12  ;;  %p8085_p5 = scmp.lt.s32.totalorder %s8079_s12, %s8079_s12 }
   0xd   :  { %p8086_p6 = por %p8085_p5, %p8084_p4 }
   0xf   :  { %p8087_p7 = pnand %p8086_p6, %p8080_p3 }
  0x11   :  { %8090 = shalt.err (!%p8087_p7)
}
  0x12   :  { %s8165_s13 = smov 128   ;;  %s8166_s14 = smov 8  }
  0x13   :  { %42 = dma.hbm_to_vmem [thread:$0]  %s9381_s3, 10240, %s37_s25, [#allocation7], %s8165_s13, %s8165_s13, %s8166_s14  }
  0x14   :  { %s8091_s19 = scalar_lea.hbm %s9380_s2, 8192 }
  0x15   :  { %p8092_p8 = scmp.ne.s32.totalorder %s9380_s2, %s8091_s19  ;;  %p8095_p9 = scmp.lt.u32.totalorder %s8091_s19, %s9380_s2 }
  0x17   :  { %p8097_p10 = pnand %p8095_p9, %p8092_p8 }
  0x19   :  { %8100 = shalt.err (!%p8097_p10)
}
  0x1a   :  { %s8101_s24 = scalar_lea.vmem %s8212_s27, 8192  ;;  %p8106_p12 = scmp.lt.s32.totalorder %s8212_s27, %s8212_s27 }
  0x1b   :  { %p8102_p11 = scmp.ne.s32.totalorder %s8212_s27, %s8101_s24  ;;  %p8107_p13 = scmp.lt.s32.totalorder %s8101_s24, %s8101_s24 }
  0x1d   :  { %p8108_p0 = por %p8107_p13, %p8106_p12 }
  0x1f   :  { %p8109_p1 = pnand %p8108_p0, %p8102_p11 }
  0x21   :  { %8112 = shalt.err (!%p8109_p1)
}
  0x22   :  { %30 = dma.hbm_to_vmem [thread:$0]  %s9380_s2, 8192, %s8212_s27, [#allocation4], %s8165_s13, %s8165_s13, %s8166_s14  }
  0x23   :  { %s8167_s26 = smov [#allocation8]   ;;  %s8113_s8 = scalar_lea.hbm %s9383_s5, 2048 }
  0x24   :  { %s50_s28 = sshll.u32 %s8167_s26, 4  ;;  %p8114_p2 = scmp.ne.s32.totalorder %s9383_s5, %s8113_s8  ;;  %s51_s28 = int_to_ptr.vmem [resolvable:$true] %s50_s28 }
  0x25   :  { %p8117_p3 = scmp.lt.u32.totalorder %s8113_s8, %s9383_s5 }
  0x27   :  { %p8119_p4 = pnand %p8117_p3, %p8114_p2 }
  0x29   :  { %8122 = shalt.err (!%p8119_p4)
}
  0x2a   :  { %s8123_s15 = scalar_lea.vmem %s51_s28, 2048  ;;  %p8128_p6 = scmp.lt.s32.totalorder %s51_s28, %s51_s28 }
  0x2b   :  { %p8124_p5 = scmp.ne.s32.totalorder %s51_s28, %s8123_s15  ;;  %p8129_p7 = scmp.lt.s32.totalorder %s8123_s15, %s8123_s15 }
  0x2d   :  { %p8130_p8 = por %p8129_p7, %p8128_p6 }
  0x2f   :  { %p8131_p9 = pnand %p8130_p8, %p8124_p5 }
  0x31   :  { %8134 = shalt.err (!%p8131_p9)
}
  0x32   :  { %56 = dma.hbm_to_vmem [thread:$0]  %s9383_s5, 2048, %s51_s28, [#allocation7], %s8165_s13, %s8165_s13, %s8166_s14  }
  0x33   :  { %8157 = dma.done.wait [#allocation4], 8192  }
  0x34   :  { %8158 = vsyncadd [#allocation4], 4294959104 }
  0x35   :  { %8159 = dma.done.wait [#allocation7], 12288  }
  0x36   :  { %8160 = vsyncadd [#allocation7], 4294955008  ;;  %v8168_v0 = vmov 0.0|0.0   ;;  %vm8169_vm0 = vmmov 0   ;;  %v8170_v1 = vmov 0.0   ;;  %v229_v2 = vld [vmem:[#allocation6] sm:$0xff] }
  0x37   :  { %6868 = vmatprep.subr.bf16.mxu1 %v8168_v0  ;;  %5285 = vmatprep.mubr.msk.f32.mxu1 %vm8169_vm0, %v8170_v1  ;;  %v230_v3 = vld [vmem:[#allocation6 + $0x8] sm:$0xff]  ;;  %v231_v4 = vld [vmem:[#allocation6 + $0x10] sm:$0xff]  ;;  %v232_v6 = vld [vmem:[#allocation6 + $0x18] sm:$0xff]  ;;  %vm86_vm1 = vcmask 179200   ;;  %vm111_vm2 = vcmask 1045504   ;;  %s8171_s18 = smov [#allocation9]  }
  0x38   :  { %v8267_v5 = vpack.c.bf16 %v230_v3, %v229_v2  ;;  %v8270_v7 = vpack.c.bf16 %v232_v6, %v231_v4  ;;  %v233_v8 = vld [vmem:[#allocation6 + $0x20] sm:$0xff]  ;;  %v234_v9 = vld [vmem:[#allocation6 + $0x28] sm:$0xff]  ;;  %v78_v14 = vld [vmem:[%s9379_s1 + $0x10] sm:$0x3f]  ;;  %s4402_s19 = sshll.u32 %s8171_s18, 4  ;;  %s4403_s19 = int_to_ptr.vmem [resolvable:$true] %s4402_s19 }
  0x39   :  { %v76_v10 = vld [vmem:[%s9379_s1] sm:$0xff]  ;;  %v77_v11 = vld [vmem:[%s9379_s1 + $0x8] sm:$0xff]  ;;  %v8287_v15 = vpack.c.bf16 %v234_v9, %v233_v8  ;;  %v235_v16 = vld [vmem:[#allocation6 + $0x30] sm:$0xff]  ;;  %s8135_s20 = scalar_lea.vmem %s4403_s19, 128  ;;  %p8140_p11 = scmp.lt.s32.totalorder %s4403_s19, %s4403_s19 }
  0x3a   :  { %6870 = vmatpush3.bf16.msra.mxu1 %v8267_v5  ;;  %v6864_v12 = vpack.c.bf16 %v77_v11, %v76_v10  ;;  %v68_v13 = vld [vmem:[%s9378_s0] sm:$0xff]  ;;  %v236_v17 = vld [vmem:[#allocation6 + $0x38] sm:$0xff]  ;;  %v69_v18 = vld [vmem:[%s9378_s0 + $0x8] sm:$0xff]  ;;  %p8136_p10 = scmp.ne.s32.totalorder %s4403_s19, %s8135_s20  ;;  %p8141_p12 = scmp.lt.s32.totalorder %s8135_s20, %s8135_s20 }
  0x3b   :  { %6871 = vmatprep.subr.bf16.mxu1 %v8168_v0  ;;  %5241 = vmatprep.mubr.msk.f32.mxu0 %vm86_vm1, %v68_v13  ;;  %v8295_v19 = vpack.c.bf16 %v236_v17, %v235_v16  ;;  %v237_v20 = vld [vmem:[#allocation6 + $0x40] sm:$0xff]  ;;  %v238_v21 = vld [vmem:[#allocation6 + $0x48] sm:$0xff]  ;;  %v239_v23 = vld [vmem:[#allocation6 + $0x50] sm:$0xff] }
  0x3c   :  { %6865 = vmatprep.subr.bf16.mxu0 %v6864_v12  ;;  %v8303_v22 = vpack.c.bf16 %v238_v21, %v237_v20  ;;  %v240_v24 = vld [vmem:[#allocation6 + $0x58] sm:$0xff]  ;;  %v241_v26 = vld [vmem:[#allocation6 + $0x60] sm:$0xff]  ;;  %v242_v27 = vld [vmem:[#allocation6 + $0x68] sm:$0xff]  ;;  %p8142_p13 = por %p8141_p12, %p8140_p11 }
  0x3d   :  { %6867 = vmatpush3.bf16.msra.mxu0 %v6864_v12  ;;  %v8309_v25 = vpack.c.bf16 %v240_v24, %v239_v23  ;;  %v8315_v28 = vpack.c.bf16 %v242_v27, %v241_v26  ;;  %v243_v29 = vld [vmem:[#allocation6 + $0x70] sm:$0xff]  ;;  %v244_v30 = vld [vmem:[#allocation6 + $0x78] sm:$0xff]  ;;  %v72_v34 = vld [vmem:[%s9378_s0 + $0x20] sm:$0xff] }
  0x3e   :  { %6873 = vmatpush3.bf16.msra.mxu1 %v8270_v7  ;;  %5239 = vmatprep.subr.msk.mxu0 %vm111_vm2, %v78_v14  ;;  %v8321_v31 = vpack.c.bf16 %v244_v30, %v243_v29  ;;  %v70_v32 = vld [vmem:[%s9378_s0 + $0x10] sm:$0xff]  ;;  %v71_v33 = vld [vmem:[%s9378_s0 + $0x18] sm:$0xff]  ;;  %v73_v35 = vld [vmem:[%s9378_s0 + $0x28] sm:$0xff]  ;;  %p8143_p0 = pnand %p8142_p13, %p8136_p10 }
  0x3f   :  { %6874 = vmatprep.subr.bf16.mxu1 %v8168_v0  ;;  %v74_v36 = vld [vmem:[%s9378_s0 + $0x30] sm:$0xff]  ;;  %v75_v37 = vld [vmem:[%s9378_s0 + $0x38] sm:$0xff]  ;;  %v8383_v40 = vld [vmem:[%s9382_s4] ss:$0 sm:$0xff] }
  0x40   :  { %v965_v17 = vld [vmem:[#allocation3 + $0x10] sm:$0xff]  ;;  %v967_v21 = vld [vmem:[#allocation3 + $0x20] sm:$0xff] }
  0x41   :  { %5240 = vmatpush3.msk.msra.mxu0 %vm111_vm2, %v78_v14  ;;  %v969_v24 = vld [vmem:[#allocation3 + $0x30] sm:$0xff]  ;;  %v971_v27 = vld [vmem:[#allocation3 + $0x40] sm:$0xff] }
  0x42   :  { %6876 = vmatpush3.bf16.msra.mxu1 %v8287_v15  ;;  %5242 = vmatmul.mubr.msk.f32.vlgmr.msra.gmra.mrb[0].mxu0 %vm86_vm1, %v69_v18  ;;  %v966_v18 = vld [vmem:[#allocation3 + $0x18] sm:$0xff]  ;;  %v973_v30 = vld [vmem:[#allocation3 + $0x50] sm:$0xff] }
  0x43   :  { %6877 = vmatprep.subr.bf16.mxu1 %v8168_v0  ;;  %6892 = vmatprep.subr.bf16.mxu0 %v8168_v0 }
  0x44   :  { %6894 = vmatpush3.bf16.msra.mxu0 %v8267_v5  ;;  %5244 = vmatprep.mubr.msk.f32.mxu0 %vm86_vm1, %v70_v32 }
  0x45   :  { %6895 = vmatprep.subr.bf16.mxu0 %v8168_v0 }
  0x46   :  { %6879 = vmatpush3.bf16.msra.mxu1 %v8295_v19  ;;  %5245 = vmatmul.mubr.msk.f32.gmra.mrb[2].mxu0 %vm86_vm1, %v71_v33  ;;  %v975_v33 = vld [vmem:[#allocation3 + $0x60] sm:$0xff] }
  0x47   :  { %6880 = vmatprep.subr.bf16.mxu1 %v8168_v0  ;;  %5247 = vmatprep.mubr.msk.f32.mxu0 %vm86_vm1, %v72_v34  ;;  %v976_v34 = vld [vmem:[#allocation3 + $0x68] sm:$0xff] }
  0x48   :  { %6897 = vmatpush3.bf16.msra.mxu0 %v8270_v7 }
  0x49   :  { %6898 = vmatprep.subr.bf16.mxu0 %v8168_v0 }
  0x4a   :  { %6882 = vmatpush3.bf16.msra.mxu1 %v8303_v22  ;;  %5248 = vmatmul.mubr.msk.f32.gmra.mrb[4].mxu0 %vm86_vm1, %v73_v35  ;;  %v7084_v35 = vpack.c.bf16 %v976_v34, %v975_v33 }
  0x4b   :  { %6883 = vmatprep.subr.bf16.mxu1 %v8168_v0  ;;  %5250 = vmatprep.mubr.msk.f32.mxu0 %vm86_vm1, %v74_v36  ;;  %v977_v36 = vld [vmem:[#allocation3 + $0x70] sm:$0xff] }
  0x4c   :  { %6900 = vmatpush3.bf16.msra.mxu0 %v8287_v15 }
  0x4d   :  { %6901 = vmatprep.subr.bf16.mxu0 %v8168_v0 }
  0x4e   :  { %6885 = vmatpush3.bf16.msra.mxu1 %v8309_v25  ;;  %5251 = vmatmul.mubr.msk.f32.gmra.mrb[6].mxu0 %vm86_vm1, %v75_v37  ;;  %v978_v37 = vld [vmem:[#allocation3 + $0x78] sm:$0xff] }
  0x4f   :  { %6886 = vmatprep.subr.bf16.mxu1 %v8168_v0  ;;  %5320 = vmatprep.mubr.msk.f32.mxu0 %vm8169_vm0, %v8170_v1 }
  0x50   :  { %6903 = vmatpush3.bf16.msra.mxu0 %v8295_v19 }
  0x51   :  { %6904 = vmatprep.subr.bf16.mxu0 %v8168_v0 }
  0x52   :  { %6888 = vmatpush3.bf16.msra.mxu1 %v8315_v28 }
  0x53   :  { %6889 = vmatprep.subr.bf16.mxu1 %v8168_v0 }
  0x54   :  { %6906 = vmatpush3.bf16.msra.mxu0 %v8303_v22 }
  0x55   :  { %6907 = vmatprep.subr.bf16.mxu0 %v8168_v0 }
  0x56   :  { %6891 = vmatpush3.bf16.msra.mxu1 %v8321_v31 }
  0x57   :  { %6916 = vmatprep.subr.bf16.mxu1 %v8168_v0 }
  0x58   :  { %6909 = vmatpush3.bf16.msra.mxu0 %v8309_v25 }
  0x59   :  { %5286 = vmatmul.mubr.f32.vlgmr.msra.gmra.mrb[0].mxu1 %v8170_v1  ;;  %6910 = vmatprep.subr.bf16.mxu0 %v8168_v0 }
  0x5a   :  { %6918 = vmatpush3.bf16.msra.mxu1 %v8267_v5  ;;  %5355 = vmatprep.mubr.msk.f32.mxu1 %vm8169_vm0, %v8170_v1 }
  0x5b   :  { %6919 = vmatprep.subr.bf16.mxu1 %v8168_v0 }
  0x5c   :  { %6912 = vmatpush3.bf16.msra.mxu0 %v8315_v28 }
  0x5d   :  { %6913 = vmatprep.subr.bf16.mxu0 %v8168_v0 }
  0x5e   :  { %6921 = vmatpush3.bf16.msra.mxu1 %v8270_v7 }
  0x5f   :  { %6922 = vmatprep.subr.bf16.mxu1 %v8168_v0 }
  0x60   :  { %6915 = vmatpush3.bf16.msra.mxu0 %v8321_v31 }
  0x61   :  { %6940 = vmatprep.subr.bf16.mxu0 %v8168_v0 }
  0x62   :  { %6924 = vmatpush3.bf16.msra.mxu1 %v8287_v15 }
  0x63   :  { %6925 = vmatprep.subr.bf16.mxu1 %v8168_v0 }
  0x66   :  { %6927 = vmatpush3.bf16.msra.mxu1 %v8295_v19 }
  0x67   :  { %6928 = vmatprep.subr.bf16.mxu1 %v8168_v0 }
  0x6a   :  { %6930 = vmatpush3.bf16.msra.mxu1 %v8303_v22 }
  0x6b   :  { %6931 = vmatprep.subr.bf16.mxu1 %v8168_v0 }
  0x6e   :  { %6933 = vmatpush3.bf16.msra.mxu1 %v8309_v25 }
  0x6f   :  { %6934 = vmatprep.subr.bf16.mxu1 %v8168_v0 }
  0x72   :  { %6936 = vmatpush3.bf16.msra.mxu1 %v8315_v28 }
  0x73   :  { %6937 = vmatprep.subr.bf16.mxu1 %v8168_v0 }
  0x76   :  { %6939 = vmatpush3.bf16.msra.mxu1 %v8321_v31 }
  0x77   :  { %6964 = vmatprep.subr.bf16.mxu1 %v8168_v0 }
 0x115   :  { %v5243_v38 = vpop.f32.mrb[0].mxu0 }
 0x116   :  { %v181_v39 = vpop.f32.mrb[1].mxu0  ;;  %v187_v52 = vadd.f32 %v5243_v38, %v8383_v40  ;;  %v7088_v38 = vpack.c.bf16 %v978_v37, %v977_v36 }
 0x117   :  { %v182_v41 = vadd.f32 %v8383_v40, %v181_v39  ;;  %v1102_v39 = vld [vmem:[#allocation6 + $0x80] sm:$0xff] }
 0x119   :  { %v5246_v46 = vpop.f32.mrb[2].mxu0 }
 0x11a   :  { %v191_v47 = vpop.f32.mrb[3].mxu0  ;;  %v197_v62 = vadd.f32 %v5246_v46, %v8383_v40  ;;  %v1106_v46 = vld [vmem:[#allocation6 + $0xa0] sm:$0xff] }
 0x11b   :  { %v192_v57 = vadd.f32 %v8383_v40, %v191_v47  ;;  %v1107_v47 = vld [vmem:[#allocation6 + $0xa8] sm:$0xff] }
 0x11d   :  { %v8407_v48 = vpop.f32.mrb[4].mxu0 }
 0x11e   :  { %v8409_v49 = vpop.f32.mrb[5].mxu0  ;;  %v207_v13 = vadd.f32 %v8407_v48, %v8383_v40  ;;  %v8519_v48 = vpack.c.bf16 %v1107_v47, %v1106_v46 }
 0x11f   :  { %v202_v6 = vadd.f32 %v8383_v40, %v8409_v49  ;;  %v1108_v49 = vld [vmem:[#allocation6 + $0xb0] sm:$0xff] }
 0x121   :  { %v8411_v50 = vpop.f32.mrb[6].mxu0 }
 0x122   :  { %v8413_v51 = vpop.f32.mrb[7].mxu0 }
 0x12c   :  { %v311_v42 = vpop.f32.mrb[0].mxu1 }
 0x12d   :  { %v315_v43 = vadd.f32 %v311_v42, %v182_v41  ;;  %v5287_v44 = vpop.f32.mrb[1].mxu1  ;;  %v1103_v41 = vld [vmem:[#allocation6 + $0x88] sm:$0xff] }
 0x12e   :  { %v8511_v42 = vpack.c.bf16 %v1103_v41, %v1102_v39  ;;  %v1105_v44 = vld [vmem:[#allocation6 + $0x98] sm:$0xff] }
 0x12f   :  { %7989 = vtanh.f32 %v315_v43  ;;  %v1104_v43 = vld [vmem:[#allocation6 + $0x90] sm:$0xff] }
 0x139   :  { %v8386_v45 = vpop.eup %7989 }
 0x13a   :  { %5321 = vmatmul.mubr.f32.vlgmr.msra.gmra.mrb[8].mxu0 %v8386_v45 }
 0x13b   :  { %6942 = vmatpush3.bf16.msra.mxu0 %v8267_v5  ;;  %5390 = vmatprep.mubr.msk.f32.mxu0 %vm8169_vm0, %v8170_v1 }
 0x13c   :  { %6943 = vmatprep.subr.bf16.mxu0 %v8168_v0 }
 0x13f   :  { %6945 = vmatpush3.bf16.msra.mxu0 %v8270_v7 }
 0x140   :  { %6946 = vmatprep.subr.bf16.mxu0 %v8168_v0 }
 0x143   :  { %6948 = vmatpush3.bf16.msra.mxu0 %v8287_v15 }
 0x144   :  { %6949 = vmatprep.subr.bf16.mxu0 %v8168_v0 }
 0x147   :  { %6951 = vmatpush3.bf16.msra.mxu0 %v8295_v19 }
 0x148   :  { %6952 = vmatprep.subr.bf16.mxu0 %v8168_v0 }
 0x14b   :  { %6954 = vmatpush3.bf16.msra.mxu0 %v8303_v22 }
 0x14c   :  { %6955 = vmatprep.subr.bf16.mxu0 %v8168_v0 }
 0x14f   :  { %6957 = vmatpush3.bf16.msra.mxu0 %v8309_v25 }
 0x150   :  { %6958 = vmatprep.subr.bf16.mxu0 %v8168_v0 }
 0x153   :  { %6960 = vmatpush3.bf16.msra.mxu0 %v8315_v28 }
 0x154   :  { %6961 = vmatprep.subr.bf16.mxu0 %v8168_v0 }
 0x157   :  { %6963 = vmatpush3.bf16.msra.mxu0 %v8321_v31 }
 0x158   :  { %6988 = vmatprep.subr.bf16.mxu0 %v8168_v0 }
 0x20d   :  { %v402_v53 = vpop.f32.mrb[8].mxu0 }
 0x20e   :  { %v406_v54 = vadd.f32 %v402_v53, %v187_v52  ;;  %v5322_v55 = vpop.f32.mrb[9].mxu0  ;;  %v1109_v52 = vld [vmem:[#allocation6 + $0xb8] sm:$0xff] }
 0x20f   :  { %v8523_v53 = vpack.c.bf16 %v1109_v52, %v1108_v49  ;;  %v1111_v55 = vld [vmem:[#allocation6 + $0xc8] sm:$0xff] }
 0x210   :  { %7991 = vtanh.f32 %v406_v54  ;;  %v1110_v54 = vld [vmem:[#allocation6 + $0xc0] sm:$0xff] }
 0x21a   :  { %v8416_v56 = vpop.eup %7991 }
 0x21b   :  { %5356 = vmatmul.mubr.f32.vlgmr.msra.gmra.mrb[2].mxu1 %v8416_v56 }
 0x21c   :  { %6966 = vmatpush3.bf16.msra.mxu1 %v8267_v5  ;;  %5425 = vmatprep.mubr.msk.f32.mxu1 %vm8169_vm0, %v8170_v1 }
 0x21d   :  { %6967 = vmatprep.subr.bf16.mxu1 %v8168_v0 }
 0x220   :  { %6969 = vmatpush3.bf16.msra.mxu1 %v8270_v7 }
 0x221   :  { %6970 = vmatprep.subr.bf16.mxu1 %v8168_v0 }
 0x224   :  { %6972 = vmatpush3.bf16.msra.mxu1 %v8287_v15 }
 0x225   :  { %6973 = vmatprep.subr.bf16.mxu1 %v8168_v0 }
 0x228   :  { %6975 = vmatpush3.bf16.msra.mxu1 %v8295_v19 }
 0x229   :  { %6976 = vmatprep.subr.bf16.mxu1 %v8168_v0 }
 0x22c   :  { %6978 = vmatpush3.bf16.msra.mxu1 %v8303_v22 }
 0x22d   :  { %6979 = vmatprep.subr.bf16.mxu1 %v8168_v0 }
 0x230   :  { %6981 = vmatpush3.bf16.msra.mxu1 %v8309_v25 }
 0x231   :  { %6982 = vmatprep.subr.bf16.mxu1 %v8168_v0 }
 0x234   :  { %6984 = vmatpush3.bf16.msra.mxu1 %v8315_v28 }
 0x235   :  { %6985 = vmatprep.subr.bf16.mxu1 %v8168_v0 }
 0x238   :  { %6987 = vmatpush3.bf16.msra.mxu1 %v8321_v31 }
 0x239   :  { %7012 = vmatprep.subr.bf16.mxu1 %v8168_v0 }
 0x2ee   :  { %v493_v58 = vpop.f32.mrb[2].mxu1 }
 0x2ef   :  { %v497_v59 = vadd.f32 %v493_v58, %v192_v57  ;;  %v5357_v60 = vpop.f32.mrb[3].mxu1  ;;  %v1112_v57 = vld [vmem:[#allocation6 + $0xd0] sm:$0xff]  ;;  %v1113_v58 = vld [vmem:[#allocation6 + $0xd8] sm:$0xff] }
 0x2f0   :  { %v1114_v60 = vld [vmem:[#allocation6 + $0xe0] sm:$0xff] }
 0x2f1   :  { %7993 = vtanh.f32 %v497_v59  ;;  %v8531_v59 = vpack.c.bf16 %v1113_v58, %v1112_v57 }
 0x2fb   :  { %v8438_v61 = vpop.eup %7993 }
 0x2fc   :  { %5391 = vmatmul.mubr.f32.vlgmr.msra.gmra.mrb[10].mxu0 %v8438_v61 }
 0x2fd   :  { %6990 = vmatpush3.bf16.msra.mxu0 %v8267_v5  ;;  %5460 = vmatprep.mubr.msk.f32.mxu0 %vm8169_vm0, %v8170_v1 }
 0x2fe   :  { %6991 = vmatprep.subr.bf16.mxu0 %v8168_v0 }
 0x301   :  { %6993 = vmatpush3.bf16.msra.mxu0 %v8270_v7 }
 0x302   :  { %6994 = vmatprep.subr.bf16.mxu0 %v8168_v0 }
 0x305   :  { %6996 = vmatpush3.bf16.msra.mxu0 %v8287_v15 }
 0x306   :  { %6997 = vmatprep.subr.bf16.mxu0 %v8168_v0 }
 0x309   :  { %6999 = vmatpush3.bf16.msra.mxu0 %v8295_v19 }
 0x30a   :  { %7000 = vmatprep.subr.bf16.mxu0 %v8168_v0 }
 0x30d   :  { %7002 = vmatpush3.bf16.msra.mxu0 %v8303_v22 }
 0x30e   :  { %7003 = vmatprep.subr.bf16.mxu0 %v8168_v0 }
 0x311   :  { %7005 = vmatpush3.bf16.msra.mxu0 %v8309_v25 }
 0x312   :  { %7006 = vmatprep.subr.bf16.mxu0 %v8168_v0 }
 0x315   :  { %7008 = vmatpush3.bf16.msra.mxu0 %v8315_v28 }
 0x316   :  { %7009 = vmatprep.subr.bf16.mxu0 %v8168_v0 }
 0x319   :  { %7011 = vmatpush3.bf16.msra.mxu0 %v8321_v31 }
 0x31a   :  { %7036 = vmatprep.subr.bf16.mxu0 %v8168_v0 }
 0x3cf   :  { %v584_v63 = vpop.f32.mrb[10].mxu0 }
 0x3d0   :  { %v588_v2 = vadd.f32 %v584_v63, %v197_v62  ;;  %v5392_v3 = vpop.f32.mrb[11].mxu0  ;;  %v1116_v63 = vld [vmem:[#allocation6 + $0xf0] sm:$0xff] }
 0x3d2   :  { %7995 = vtanh.f32 %v588_v2  ;;  %v1117_v2 = vld [vmem:[#allocation6 + $0xf8] sm:$0xff] }
 0x3d3   :  { %v8539_v3 = vpack.c.bf16 %v1117_v2, %v1116_v63  ;;  %v1837_v63 = vld [vmem:[#allocation3 + $0xb8] sm:$0xff] }
 0x3dc   :  { %v8460_v4 = vpop.eup %7995 }
 0x3dd   :  { %5426 = vmatmul.mubr.f32.vlgmr.msra.gmra.mrb[4].mxu1 %v8460_v4 }
 0x3de   :  { %7014 = vmatpush3.bf16.msra.mxu1 %v8267_v5  ;;  %5495 = vmatprep.mubr.msk.f32.mxu1 %vm8169_vm0, %v8170_v1 }
 0x3df   :  { %7015 = vmatprep.subr.bf16.mxu1 %v8168_v0 }
 0x3e2   :  { %7017 = vmatpush3.bf16.msra.mxu1 %v8270_v7 }
 0x3e3   :  { %7018 = vmatprep.subr.bf16.mxu1 %v8168_v0 }
 0x3e6   :  { %7020 = vmatpush3.bf16.msra.mxu1 %v8287_v15 }
 0x3e7   :  { %7021 = vmatprep.subr.bf16.mxu1 %v8168_v0 }
 0x3ea   :  { %7023 = vmatpush3.bf16.msra.mxu1 %v8295_v19 }
 0x3eb   :  { %7024 = vmatprep.subr.bf16.mxu1 %v8168_v0 }
 0x3ee   :  { %7026 = vmatpush3.bf16.msra.mxu1 %v8303_v22 }
 0x3ef   :  { %7027 = vmatprep.subr.bf16.mxu1 %v8168_v0 }
 0x3f2   :  { %7029 = vmatpush3.bf16.msra.mxu1 %v8309_v25 }
 0x3f3   :  { %7030 = vmatprep.subr.bf16.mxu1 %v8168_v0 }
 0x3f6   :  { %7032 = vmatpush3.bf16.msra.mxu1 %v8315_v28 }
 0x3f7   :  { %7033 = vmatprep.subr.bf16.mxu1 %v8168_v0 }
 0x3fa   :  { %7035 = vmatpush3.bf16.msra.mxu1 %v8321_v31 }
 0x4b0   :  { %v675_v8 = vpop.f32.mrb[4].mxu1 }
 0x4b1   :  { %v679_v9 = vadd.f32 %v675_v8, %v202_v6  ;;  %v5427_v10 = vpop.f32.mrb[5].mxu1 }
 0x4b3   :  { %7997 = vtanh.f32 %v679_v9 }
 0x4bd   :  { %v8482_v11 = vpop.eup %7997 }
 0x4be   :  { %5461 = vmatmul.mubr.f32.vlgmr.msra.gmra.mrb[12].mxu0 %v8482_v11 }
 0x4bf   :  { %7038 = vmatpush3.bf16.msra.mxu0 %v8267_v5  ;;  %5530 = vmatprep.mubr.msk.f32.mxu0 %vm8169_vm0, %v8170_v1  ;;  %v963_v5 = vld [vmem:[#allocation3] sm:$0xff] }
 0x4c0   :  { %7039 = vmatprep.subr.bf16.mxu0 %v8168_v0 }
 0x4c3   :  { %7041 = vmatpush3.bf16.msra.mxu0 %v8270_v7  ;;  %v964_v7 = vld [vmem:[#allocation3 + $0x8] sm:$0xff] }
 0x4c4   :  { %7042 = vmatprep.subr.bf16.mxu0 %v8168_v0  ;;  %v7060_v12 = vpack.c.bf16 %v964_v7, %v963_v5 }
 0x4c6   :  { %7061 = vmatprep.subr.bf16.mxu1 %v7060_v12 }
 0x4c7   :  { %7044 = vmatpush3.bf16.msra.mxu0 %v8287_v15 }
 0x4c8   :  { %7045 = vmatprep.subr.bf16.mxu0 %v8168_v0 }
 0x4cb   :  { %7047 = vmatpush3.bf16.msra.mxu0 %v8295_v19  ;;  %v7064_v19 = vpack.c.bf16 %v966_v18, %v965_v17 }
 0x4cc   :  { %7048 = vmatprep.subr.bf16.mxu0 %v8168_v0 }
 0x4cf   :  { %7050 = vmatpush3.bf16.msra.mxu0 %v8303_v22  ;;  %v968_v22 = vld [vmem:[#allocation3 + $0x28] sm:$0xff] }
 0x4d0   :  { %7051 = vmatprep.subr.bf16.mxu0 %v8168_v0  ;;  %v7068_v23 = vpack.c.bf16 %v968_v22, %v967_v21 }
 0x4d3   :  { %7053 = vmatpush3.bf16.msra.mxu0 %v8309_v25  ;;  %v970_v25 = vld [vmem:[#allocation3 + $0x38] sm:$0xff] }
 0x4d4   :  { %7054 = vmatprep.subr.bf16.mxu0 %v8168_v0  ;;  %v7072_v26 = vpack.c.bf16 %v970_v25, %v969_v24 }
 0x4d7   :  { %7056 = vmatpush3.bf16.msra.mxu0 %v8315_v28  ;;  %v972_v28 = vld [vmem:[#allocation3 + $0x48] sm:$0xff] }
 0x4d8   :  { %7057 = vmatprep.subr.bf16.mxu0 %v8168_v0  ;;  %v7076_v29 = vpack.c.bf16 %v972_v28, %v971_v27 }
 0x4db   :  { %7059 = vmatpush3.bf16.msra.mxu0 %v8321_v31  ;;  %v974_v31 = vld [vmem:[#allocation3 + $0x58] sm:$0xff] }
 0x4dc   :  { %7092 = vmatprep.subr.bf16.mxu0 %v8168_v0  ;;  %v7080_v32 = vpack.c.bf16 %v974_v31, %v973_v30 }
 0x591   :  { %v766_v14 = vpop.f32.mrb[12].mxu0 }
 0x592   :  { %v770_v15 = vadd.f32 %v766_v14, %v207_v13  ;;  %v5462_v16 = vpop.f32.mrb[13].mxu0  ;;  %v217_v14 = vadd.f32 %v8411_v50, %v8383_v40 }
 0x594   :  { %7999 = vtanh.f32 %v770_v15 }
 0x59e   :  { %v8000_v20 = vpop.eup %7999 }
 0x59f   :  { %5496 = vmatmul.mubr.f32.vlgmr.msra.gmra.mrb[6].mxu1 %v8000_v20 }
 0x5a0   :  { %7063 = vmatpush3.bf16.msra.mxu1 %v7060_v12  ;;  %5565 = vmatprep.mubr.f32.mxu1 %v8386_v45  ;;  %v8515_v45 = vpack.c.bf16 %v1105_v44, %v1104_v43 }
 0x5a1   :  { %7065 = vmatprep.subr.bf16.mxu1 %v7064_v19 }
 0x5a4   :  { %7067 = vmatpush3.bf16.msra.mxu1 %v7064_v19  ;;  %v8599_v19 = vld [vmem:[%s9382_s4 + $0x1] ss:$0 sm:$0xff] }
 0x5a5   :  { %7069 = vmatprep.subr.bf16.mxu1 %v7068_v23 }
 0x5a8   :  { %7071 = vmatpush3.bf16.msra.mxu1 %v7068_v23 }
 0x5a9   :  { %7073 = vmatprep.subr.bf16.mxu1 %v7072_v26 }
 0x5ac   :  { %7075 = vmatpush3.bf16.msra.mxu1 %v7072_v26 }
 0x5ad   :  { %7077 = vmatprep.subr.bf16.mxu1 %v7076_v29 }
 0x5b0   :  { %7079 = vmatpush3.bf16.msra.mxu1 %v7076_v29 }
 0x5b1   :  { %7081 = vmatprep.subr.bf16.mxu1 %v7080_v32 }
 0x5b4   :  { %7083 = vmatpush3.bf16.msra.mxu1 %v7080_v32 }
 0x5b5   :  { %7085 = vmatprep.subr.bf16.mxu1 %v7084_v35 }
 0x5b8   :  { %7087 = vmatpush3.bf16.msra.mxu1 %v7084_v35 }
 0x5b9   :  { %7089 = vmatprep.subr.bf16.mxu1 %v7088_v38 }
 0x5bc   :  { %7091 = vmatpush3.bf16.msra.mxu1 %v7088_v38 }
 0x5bd   :  { %7116 = vmatprep.subr.bf16.mxu1 %v8168_v0 }
 0x5bf   :  { %5566 = vmatmul.mubr.f32.vlgmr.msra.gmra.mrb[8].mxu1 %v8416_v56  ;;  %v8527_v56 = vpack.c.bf16 %v1111_v55, %v1110_v54  ;;  %v1832_v55 = vld [vmem:[#allocation3 + $0x90] sm:$0xff] }
 0x5c0   :  { %5568 = vmatprep.mubr.f32.mxu1 %v8438_v61  ;;  %7118 = vmatpush3.bf16.msra.mxu1 %v8511_v42  ;;  %v1115_v61 = vld [vmem:[#allocation6 + $0xe8] sm:$0xff] }
 0x5c1   :  { %7119 = vmatprep.subr.bf16.mxu1 %v8168_v0  ;;  %v8535_v62 = vpack.c.bf16 %v1115_v61, %v1114_v60  ;;  %v1835_v60 = vld [vmem:[#allocation3 + $0xa8] sm:$0xff] }
 0x5c3   :  { %5569 = vmatmul.mubr.f32.gmra.mrb[10].mxu1 %v8460_v4  ;;  %v212_v4 = vadd.f32 %v8383_v40, %v8413_v51 }
 0x5c4   :  { %5571 = vmatprep.mubr.f32.mxu1 %v8482_v11  ;;  %7121 = vmatpush3.bf16.msra.mxu1 %v8515_v45 }
 0x5c5   :  { %7122 = vmatprep.subr.bf16.mxu1 %v8168_v0 }
 0x5c7   :  { %5572 = vmatmul.mubr.f32.gmra.mrb[12].mxu1 %v8000_v20 }
 0x5c8   :  { %7124 = vmatpush3.bf16.msra.mxu1 %v8519_v48 }
 0x5c9   :  { %7125 = vmatprep.subr.bf16.mxu1 %v8168_v0 }
 0x5cc   :  { %7127 = vmatpush3.bf16.msra.mxu1 %v8523_v53 }
 0x5cd   :  { %7128 = vmatprep.subr.bf16.mxu1 %v8168_v0 }
 0x5d0   :  { %7130 = vmatpush3.bf16.msra.mxu1 %v8527_v56 }
 0x5d1   :  { %7131 = vmatprep.subr.bf16.mxu1 %v8168_v0 }
 0x5d4   :  { %7133 = vmatpush3.bf16.msra.mxu1 %v8531_v59 }
 0x5d5   :  { %7134 = vmatprep.subr.bf16.mxu1 %v8168_v0 }
 0x5d8   :  { %7136 = vmatpush3.bf16.msra.mxu1 %v8535_v62 }
 0x5d9   :  { %7137 = vmatprep.subr.bf16.mxu1 %v8168_v0 }
 0x5dc   :  { %7139 = vmatpush3.bf16.msra.mxu1 %v8539_v3 }
 0x5dd   :  { %7164 = vmatprep.subr.bf16.mxu1 %v8168_v0 }
 0x672   :  { %v857_v6 = vpop.f32.mrb[6].mxu1 }
 0x673   :  { %v861_v8 = vadd.f32 %v857_v6, %v212_v4  ;;  %v5497_v9 = vpop.f32.mrb[7].mxu1  ;;  %v1839_v4 = vld [vmem:[#allocation3 + $0xc8] sm:$0xff] }
 0x674   :  { %v1841_v9 = vld [vmem:[#allocation3 + $0xd8] sm:$0xff] }
 0x675   :  { %8001 = vtanh.f32 %v861_v8  ;;  %v1840_v8 = vld [vmem:[#allocation3 + $0xd0] sm:$0xff] }
 0x67f   :  { %v8002_v10 = vpop.eup %8001 }
 0x680   :  { %5531 = vmatmul.mubr.f32.vlgmr.msra.gmra.mrb[14].mxu0 %v8002_v10  ;;  %5574 = vmatprep.mubr.f32.mxu1 %v8002_v10  ;;  %v7304_v10 = vpack.c.bf16 %v1841_v9, %v1840_v8 }
 0x681   :  { %7094 = vmatpush3.bf16.msra.mxu0 %v8511_v42  ;;  %5609 = vmatprep.mubr.msk.f32.mxu0 %vm8169_vm0, %v8170_v1 }
 0x682   :  { %7095 = vmatprep.subr.bf16.mxu0 %v8168_v0 }
 0x685   :  { %7097 = vmatpush3.bf16.msra.mxu0 %v8515_v45 }
 0x686   :  { %7098 = vmatprep.subr.bf16.mxu0 %v8168_v0 }
 0x689   :  { %7100 = vmatpush3.bf16.msra.mxu0 %v8519_v48 }
 0x68a   :  { %7101 = vmatprep.subr.bf16.mxu0 %v8168_v0 }
 0x68d   :  { %7103 = vmatpush3.bf16.msra.mxu0 %v8523_v53 }
 0x68e   :  { %7104 = vmatprep.subr.bf16.mxu0 %v8168_v0 }
 0x691   :  { %7106 = vmatpush3.bf16.msra.mxu0 %v8527_v56 }
 0x692   :  { %v8556_v51 = vpop.f32.mrb[8].mxu1  ;;  %7107 = vmatprep.subr.bf16.mxu0 %v8168_v0 }
 0x693   :  { %v1053_v11 = vpop.f32.mrb[9].mxu1  ;;  %v1059_v25 = vadd.f32 %v8556_v51, %v8599_v19  ;;  %v1842_v51 = vld [vmem:[#allocation3 + $0xe0] sm:$0xff] }
 0x694   :  { %v1054_v20 = vadd.f32 %v8599_v19, %v1053_v11  ;;  %v1843_v11 = vld [vmem:[#allocation3 + $0xe8] sm:$0xff] }
 0x695   :  { %7109 = vmatpush3.bf16.msra.mxu0 %v8531_v59 }
 0x696   :  { %v8560_v5 = vpop.f32.mrb[10].mxu1  ;;  %7110 = vmatprep.subr.bf16.mxu0 %v8168_v0 }
 0x697   :  { %v8563_v7 = vpop.f32.mrb[11].mxu1  ;;  %v1069_v35 = vadd.f32 %v8560_v5, %v8599_v19  ;;  %v7308_v5 = vpack.c.bf16 %v1843_v11, %v1842_v51 }
 0x698   :  { %v1064_v30 = vadd.f32 %v8599_v19, %v8563_v7  ;;  %v1844_v7 = vld [vmem:[#allocation3 + $0xf0] sm:$0xff] }
 0x699   :  { %7112 = vmatpush3.bf16.msra.mxu0 %v8535_v62 }
 0x69a   :  { %v8566_v12 = vpop.f32.mrb[12].mxu1  ;;  %7113 = vmatprep.subr.bf16.mxu0 %v8168_v0 }
 0x69b   :  { %v8569_v13 = vpop.f32.mrb[13].mxu1  ;;  %v1079_v49 = vadd.f32 %v8566_v12, %v8599_v19  ;;  %v1845_v12 = vld [vmem:[#allocation3 + $0xf8] sm:$0xff] }
 0x69c   :  { %v1074_v41 = vadd.f32 %v8599_v19, %v8569_v13  ;;  %v7312_v13 = vpack.c.bf16 %v1845_v12, %v1844_v7 }
 0x69d   :  { %7115 = vmatpush3.bf16.msra.mxu0 %v8539_v3 }
 0x69e   :  { %7140 = vmatprep.subr.bf16.mxu0 %v8168_v0 }
 0x6a0   :  { %5610 = vmatmul.mubr.f32.vlgmr.msra.gmra.mrb[16].mxu0 %v8170_v1 }
 0x6a1   :  { %7142 = vmatpush3.bf16.msra.mxu0 %v8511_v42  ;;  %5679 = vmatprep.mubr.msk.f32.mxu0 %vm8169_vm0, %v8170_v1 }
 0x6a2   :  { %7143 = vmatprep.subr.bf16.mxu0 %v8168_v0 }
 0x6a5   :  { %7145 = vmatpush3.bf16.msra.mxu0 %v8515_v45 }
 0x6a6   :  { %7146 = vmatprep.subr.bf16.mxu0 %v8168_v0 }
 0x6a9   :  { %7148 = vmatpush3.bf16.msra.mxu0 %v8519_v48 }
 0x6aa   :  { %7149 = vmatprep.subr.bf16.mxu0 %v8168_v0 }
 0x6ad   :  { %7151 = vmatpush3.bf16.msra.mxu0 %v8523_v53 }
 0x6ae   :  { %7152 = vmatprep.subr.bf16.mxu0 %v8168_v0 }
 0x6b1   :  { %7154 = vmatpush3.bf16.msra.mxu0 %v8527_v56 }
 0x6b2   :  { %7155 = vmatprep.subr.bf16.mxu0 %v8168_v0 }
 0x6b5   :  { %7157 = vmatpush3.bf16.msra.mxu0 %v8531_v59 }
 0x6b6   :  { %7158 = vmatprep.subr.bf16.mxu0 %v8168_v0 }
 0x6b9   :  { %7160 = vmatpush3.bf16.msra.mxu0 %v8535_v62 }
 0x6ba   :  { %7161 = vmatprep.subr.bf16.mxu0 %v8168_v0 }
 0x6bd   :  { %7163 = vmatpush3.bf16.msra.mxu0 %v8539_v3 }
 0x6be   :  { %7188 = vmatprep.subr.bf16.mxu0 %v8168_v0 }
 0x753   :  { %v948_v15 = vpop.f32.mrb[14].mxu0 }
 0x754   :  { %v952_v16 = vadd.f32 %v948_v15, %v217_v14  ;;  %v5532_v17 = vpop.f32.mrb[15].mxu0  ;;  %v1969_v14 = vld [vmem:[#allocation6 + $0x100] sm:$0xff]  ;;  %v1970_v15 = vld [vmem:[#allocation6 + $0x108] sm:$0xff] }
 0x755   :  { %v1971_v17 = vld [vmem:[#allocation6 + $0x110] sm:$0xff] }
 0x756   :  { %8003 = vtanh.f32 %v952_v16  ;;  %v8726_v16 = vpack.c.bf16 %v1970_v15, %v1969_v14 }
 0x760   :  { %v8004_v18 = vpop.eup %8003 }
 0x761   :  { %5575 = vmatmul.mubr.f32.gmra.mrb[14].mxu1 %v8004_v18  ;;  %v1972_v18 = vld [vmem:[#allocation6 + $0x118] sm:$0xff] }
 0x762   :  { %5644 = vmatprep.mubr.msk.f32.mxu1 %vm8169_vm0, %v8170_v1 }
 0x773   :  { %v1184_v21 = vpop.f32.mrb[16].mxu0 }
 0x774   :  { %v1188_v22 = vadd.f32 %v1184_v21, %v1054_v20  ;;  %v5611_v23 = vpop.f32.mrb[17].mxu0  ;;  %v8730_v20 = vpack.c.bf16 %v1972_v18, %v1971_v17  ;;  %v1973_v21 = vld [vmem:[#allocation6 + $0x120] sm:$0xff] }
 0x776   :  { %8005 = vtanh.f32 %v1188_v22  ;;  %v1974_v22 = vld [vmem:[#allocation6 + $0x128] sm:$0xff] }
 0x777   :  { %v8734_v23 = vpack.c.bf16 %v1974_v22, %v1973_v21 }
 0x780   :  { %v8602_v40 = vpop.eup %8005 }
 0x781   :  { %5645 = vmatmul.mubr.f32.vlgmr.msra.gmra.mrb[16].mxu1 %v8602_v40 }
 0x782   :  { %7166 = vmatpush3.bf16.msra.mxu1 %v8511_v42  ;;  %5714 = vmatprep.mubr.msk.f32.mxu1 %vm8169_vm0, %v8170_v1 }
 0x783   :  { %7167 = vmatprep.subr.bf16.mxu1 %v8168_v0 }
 0x786   :  { %7169 = vmatpush3.bf16.msra.mxu1 %v8515_v45 }
 0x787   :  { %7170 = vmatprep.subr.bf16.mxu1 %v8168_v0 }
 0x78a   :  { %7172 = vmatpush3.bf16.msra.mxu1 %v8519_v48 }
 0x78b   :  { %7173 = vmatprep.subr.bf16.mxu1 %v8168_v0 }
 0x78e   :  { %7175 = vmatpush3.bf16.msra.mxu1 %v8523_v53 }
 0x78f   :  { %7176 = vmatprep.subr.bf16.mxu1 %v8168_v0 }
 0x792   :  { %7178 = vmatpush3.bf16.msra.mxu1 %v8527_v56 }
 0x793   :  { %7179 = vmatprep.subr.bf16.mxu1 %v8168_v0 }
 0x796   :  { %7181 = vmatpush3.bf16.msra.mxu1 %v8531_v59 }
 0x797   :  { %7182 = vmatprep.subr.bf16.mxu1 %v8168_v0 }
 0x79a   :  { %7184 = vmatpush3.bf16.msra.mxu1 %v8535_v62 }
 0x79b   :  { %7185 = vmatprep.subr.bf16.mxu1 %v8168_v0 }
 0x79e   :  { %7187 = vmatpush3.bf16.msra.mxu1 %v8539_v3 }
 0x79f   :  { %7212 = vmatprep.subr.bf16.mxu1 %v8168_v0 }
 0x834   :  { %v8623_v50 = vpop.f32.mrb[14].mxu1 }
 0x835   :  { %v8625_v24 = vpop.f32.mrb[15].mxu1 }
 0x854   :  { %v1274_v26 = vpop.f32.mrb[16].mxu1 }
 0x855   :  { %v1278_v27 = vadd.f32 %v1274_v26, %v1059_v25  ;;  %v5646_v28 = vpop.f32.mrb[17].mxu1  ;;  %v1976_v25 = vld [vmem:[#allocation6 + $0x138] sm:$0xff] }
 0x856   :  { %v1978_v28 = vld [vmem:[#allocation6 + $0x148] sm:$0xff] }
 0x857   :  { %8007 = vtanh.f32 %v1278_v27  ;;  %v1977_v27 = vld [vmem:[#allocation6 + $0x140] sm:$0xff] }
 0x861   :  { %v8629_v29 = vpop.eup %8007 }
 0x862   :  { %5680 = vmatmul.mubr.f32.vlgmr.msra.gmra.mrb[18].mxu0 %v8629_v29 }
 0x863   :  { %7190 = vmatpush3.bf16.msra.mxu0 %v8511_v42  ;;  %5749 = vmatprep.mubr.msk.f32.mxu0 %vm8169_vm0, %v8170_v1 }
 0x864   :  { %7191 = vmatprep.subr.bf16.mxu0 %v8168_v0 }
 0x867   :  { %7193 = vmatpush3.bf16.msra.mxu0 %v8515_v45 }
 0x868   :  { %7194 = vmatprep.subr.bf16.mxu0 %v8168_v0 }
 0x86b   :  { %7196 = vmatpush3.bf16.msra.mxu0 %v8519_v48 }
 0x86c   :  { %7197 = vmatprep.subr.bf16.mxu0 %v8168_v0 }
 0x86f   :  { %7199 = vmatpush3.bf16.msra.mxu0 %v8523_v53 }
 0x870   :  { %7200 = vmatprep.subr.bf16.mxu0 %v8168_v0 }
 0x873   :  { %7202 = vmatpush3.bf16.msra.mxu0 %v8527_v56 }
 0x874   :  { %7203 = vmatprep.subr.bf16.mxu0 %v8168_v0 }
 0x877   :  { %7205 = vmatpush3.bf16.msra.mxu0 %v8531_v59 }
 0x878   :  { %7206 = vmatprep.subr.bf16.mxu0 %v8168_v0 }
 0x87b   :  { %7208 = vmatpush3.bf16.msra.mxu0 %v8535_v62 }
 0x87c   :  { %7209 = vmatprep.subr.bf16.mxu0 %v8168_v0 }
 0x87f   :  { %7211 = vmatpush3.bf16.msra.mxu0 %v8539_v3 }
 0x880   :  { %7236 = vmatprep.subr.bf16.mxu0 %v8168_v0 }
 0x935   :  { %v1364_v31 = vpop.f32.mrb[18].mxu0 }
 0x936   :  { %v1368_v32 = vadd.f32 %v1364_v31, %v1064_v30  ;;  %v5681_v33 = vpop.f32.mrb[19].mxu0  ;;  %v1979_v30 = vld [vmem:[#allocation6 + $0x150] sm:$0xff]  ;;  %v1980_v31 = vld [vmem:[#allocation6 + $0x158] sm:$0xff] }
 0x937   :  { %v1981_v33 = vld [vmem:[#allocation6 + $0x160] sm:$0xff] }
 0x938   :  { %8009 = vtanh.f32 %v1368_v32  ;;  %v8746_v32 = vpack.c.bf16 %v1980_v31, %v1979_v30 }
 0x942   :  { %v8652_v34 = vpop.eup %8009 }
 0x943   :  { %5715 = vmatmul.mubr.f32.vlgmr.msra.gmra.mrb[18].mxu1 %v8652_v34 }
 0x944   :  { %7214 = vmatpush3.bf16.msra.mxu1 %v8511_v42  ;;  %5784 = vmatprep.mubr.msk.f32.mxu1 %vm8169_vm0, %v8170_v1 }
 0x945   :  { %7215 = vmatprep.subr.bf16.mxu1 %v8168_v0 }
 0x948   :  { %7217 = vmatpush3.bf16.msra.mxu1 %v8515_v45 }
 0x949   :  { %7218 = vmatprep.subr.bf16.mxu1 %v8168_v0 }
 0x94c   :  { %7220 = vmatpush3.bf16.msra.mxu1 %v8519_v48 }
 0x94d   :  { %7221 = vmatprep.subr.bf16.mxu1 %v8168_v0 }
 0x950   :  { %7223 = vmatpush3.bf16.msra.mxu1 %v8523_v53 }
 0x951   :  { %7224 = vmatprep.subr.bf16.mxu1 %v8168_v0 }
 0x954   :  { %7226 = vmatpush3.bf16.msra.mxu1 %v8527_v56 }
 0x955   :  { %7227 = vmatprep.subr.bf16.mxu1 %v8168_v0 }
 0x958   :  { %7229 = vmatpush3.bf16.msra.mxu1 %v8531_v59 }
 0x959   :  { %7230 = vmatprep.subr.bf16.mxu1 %v8168_v0 }
 0x95c   :  { %7232 = vmatpush3.bf16.msra.mxu1 %v8535_v62 }
 0x95d   :  { %7233 = vmatprep.subr.bf16.mxu1 %v8168_v0 }
 0x960   :  { %7235 = vmatpush3.bf16.msra.mxu1 %v8539_v3 }
 0x961   :  { %7260 = vmatprep.subr.bf16.mxu1 %v8168_v0 }
 0xa16   :  { %v1454_v36 = vpop.f32.mrb[18].mxu1 }
 0xa17   :  { %v1458_v37 = vadd.f32 %v1454_v36, %v1069_v35  ;;  %v5716_v38 = vpop.f32.mrb[19].mxu1  ;;  %v1983_v36 = vld [vmem:[#allocation6 + $0x170] sm:$0xff] }
 0xa19   :  { %8011 = vtanh.f32 %v1458_v37  ;;  %v1984_v37 = vld [vmem:[#allocation6 + $0x178] sm:$0xff] }
 0xa1a   :  { %v8754_v38 = vpack.c.bf16 %v1984_v37, %v1983_v36  ;;  %v2704_v36 = vld [vmem:[#allocation3 + $0x138] sm:$0xff] }
 0xa23   :  { %v8675_v39 = vpop.eup %8011 }
 0xa24   :  { %5750 = vmatmul.mubr.f32.vlgmr.msra.gmra.mrb[20].mxu0 %v8675_v39 }
 0xa25   :  { %7238 = vmatpush3.bf16.msra.mxu0 %v8511_v42  ;;  %5819 = vmatprep.mubr.msk.f32.mxu0 %vm8169_vm0, %v8170_v1 }
 0xa26   :  { %7239 = vmatprep.subr.bf16.mxu0 %v8168_v0 }
 0xa29   :  { %7241 = vmatpush3.bf16.msra.mxu0 %v8515_v45 }
 0xa2a   :  { %7242 = vmatprep.subr.bf16.mxu0 %v8168_v0 }
 0xa2d   :  { %7244 = vmatpush3.bf16.msra.mxu0 %v8519_v48 }
 0xa2e   :  { %7245 = vmatprep.subr.bf16.mxu0 %v8168_v0 }
 0xa31   :  { %7247 = vmatpush3.bf16.msra.mxu0 %v8523_v53 }
 0xa32   :  { %7248 = vmatprep.subr.bf16.mxu0 %v8168_v0 }
 0xa35   :  { %7250 = vmatpush3.bf16.msra.mxu0 %v8527_v56 }
 0xa36   :  { %7251 = vmatprep.subr.bf16.mxu0 %v8168_v0 }
 0xa39   :  { %7253 = vmatpush3.bf16.msra.mxu0 %v8531_v59 }
 0xa3a   :  { %7254 = vmatprep.subr.bf16.mxu0 %v8168_v0 }
 0xa3d   :  { %7256 = vmatpush3.bf16.msra.mxu0 %v8535_v62 }
 0xa3e   :  { %7257 = vmatprep.subr.bf16.mxu0 %v8168_v0 }
 0xa41   :  { %7259 = vmatpush3.bf16.msra.mxu0 %v8539_v3 }
 0xaf7   :  { %v1544_v43 = vpop.f32.mrb[20].mxu0 }
 0xaf8   :  { %v1548_v44 = vadd.f32 %v1544_v43, %v1074_v41  ;;  %v5751_v46 = vpop.f32.mrb[21].mxu0 }
 0xafa   :  { %8013 = vtanh.f32 %v1548_v44 }
 0xb04   :  { %v8697_v47 = vpop.eup %8013 }
 0xb05   :  { %5785 = vmatmul.mubr.f32.vlgmr.msra.gmra.mrb[20].mxu1 %v8697_v47 }
 0xb06   :  { %7262 = vmatpush3.bf16.msra.mxu1 %v8511_v42  ;;  %5854 = vmatprep.mubr.msk.f32.mxu1 %vm8169_vm0, %v8170_v1  ;;  %v1830_v42 = vld [vmem:[#allocation3 + $0x80] sm:$0xff] }
 0xb07   :  { %7263 = vmatprep.subr.bf16.mxu1 %v8168_v0 }
 0xb0a   :  { %7265 = vmatpush3.bf16.msra.mxu1 %v8515_v45  ;;  %v1831_v45 = vld [vmem:[#allocation3 + $0x88] sm:$0xff] }
 0xb0b   :  { %7266 = vmatprep.subr.bf16.mxu1 %v8168_v0 }
 0xb0e   :  { %7268 = vmatpush3.bf16.msra.mxu1 %v8519_v48  ;;  %v7284_v48 = vpack.c.bf16 %v1831_v45, %v1830_v42 }
 0xb0f   :  { %7269 = vmatprep.subr.bf16.mxu1 %v8168_v0 }
 0xb10   :  { %7285 = vmatprep.subr.bf16.mxu0 %v7284_v48 }
 0xb12   :  { %7271 = vmatpush3.bf16.msra.mxu1 %v8523_v53 }
 0xb13   :  { %7272 = vmatprep.subr.bf16.mxu1 %v8168_v0 }
 0xb16   :  { %7274 = vmatpush3.bf16.msra.mxu1 %v8527_v56  ;;  %v1833_v56 = vld [vmem:[#allocation3 + $0x98] sm:$0xff] }
 0xb17   :  { %7275 = vmatprep.subr.bf16.mxu1 %v8168_v0  ;;  %v7288_v57 = vpack.c.bf16 %v1833_v56, %v1832_v55 }
 0xb1a   :  { %7277 = vmatpush3.bf16.msra.mxu1 %v8531_v59  ;;  %v1834_v59 = vld [vmem:[#allocation3 + $0xa0] sm:$0xff] }
 0xb1b   :  { %7278 = vmatprep.subr.bf16.mxu1 %v8168_v0  ;;  %v7292_v61 = vpack.c.bf16 %v1835_v60, %v1834_v59 }
 0xb1e   :  { %7280 = vmatpush3.bf16.msra.mxu1 %v8535_v62  ;;  %v1836_v62 = vld [vmem:[#allocation3 + $0xb0] sm:$0xff] }
 0xb1f   :  { %7281 = vmatprep.subr.bf16.mxu1 %v8168_v0  ;;  %v7296_v2 = vpack.c.bf16 %v1837_v63, %v1836_v62 }
 0xb22   :  { %7283 = vmatpush3.bf16.msra.mxu1 %v8539_v3  ;;  %v1838_v3 = vld [vmem:[#allocation3 + $0xc0] sm:$0xff] }
 0xb23   :  { %7316 = vmatprep.subr.bf16.mxu1 %v8168_v0  ;;  %v7300_v6 = vpack.c.bf16 %v1839_v4, %v1838_v3 }
 0xbd8   :  { %v1634_v52 = vpop.f32.mrb[20].mxu1 }
 0xbd9   :  { %v1638_v53 = vadd.f32 %v1634_v52, %v1079_v49  ;;  %v5786_v54 = vpop.f32.mrb[21].mxu1  ;;  %v1089_v52 = vadd.f32 %v8623_v50, %v8599_v19 }
 0xbdb   :  { %8015 = vtanh.f32 %v1638_v53 }
 0xbe5   :  { %v8016_v58 = vpop.eup %8015 }
 0xbe6   :  { %5820 = vmatmul.mubr.f32.vlgmr.msra.gmra.mrb[22].mxu0 %v8016_v58 }
 0xbe7   :  { %7287 = vmatpush3.bf16.msra.mxu0 %v7284_v48  ;;  %5889 = vmatprep.mubr.f32.mxu0 %v8602_v40  ;;  %v1975_v40 = vld [vmem:[#allocation6 + $0x130] sm:$0xff] }
 0xbe8   :  { %7289 = vmatprep.subr.bf16.mxu0 %v7288_v57  ;;  %v8738_v26 = vpack.c.bf16 %v1976_v25, %v1975_v40 }
 0xbeb   :  { %7291 = vmatpush3.bf16.msra.mxu0 %v7288_v57  ;;  %v8814_v57 = vld [vmem:[%s9382_s4 + $0x2] ss:$0 sm:$0xff] }
 0xbec   :  { %7293 = vmatprep.subr.bf16.mxu0 %v7292_v61 }
 0xbef   :  { %7295 = vmatpush3.bf16.msra.mxu0 %v7292_v61 }
 0xbf0   :  { %7297 = vmatprep.subr.bf16.mxu0 %v7296_v2 }
 0xbf3   :  { %7299 = vmatpush3.bf16.msra.mxu0 %v7296_v2 }
 0xbf4   :  { %7301 = vmatprep.subr.bf16.mxu0 %v7300_v6 }
 0xbf7   :  { %7303 = vmatpush3.bf16.msra.mxu0 %v7300_v6 }
 0xbf8   :  { %7305 = vmatprep.subr.bf16.mxu0 %v7304_v10 }
 0xbfb   :  { %7307 = vmatpush3.bf16.msra.mxu0 %v7304_v10 }
 0xbfc   :  { %7309 = vmatprep.subr.bf16.mxu0 %v7308_v5 }
 0xbff   :  { %7311 = vmatpush3.bf16.msra.mxu0 %v7308_v5 }
 0xc00   :  { %7313 = vmatprep.subr.bf16.mxu0 %v7312_v13 }
 0xc03   :  { %7315 = vmatpush3.bf16.msra.mxu0 %v7312_v13 }
 0xc04   :  { %7340 = vmatprep.subr.bf16.mxu0 %v8168_v0 }
 0xc06   :  { %5890 = vmatmul.mubr.f32.vlgmr.msra.gmra.mrb[24].mxu0 %v8629_v29  ;;  %v8742_v29 = vpack.c.bf16 %v1978_v28, %v1977_v27  ;;  %v2699_v28 = vld [vmem:[#allocation3 + $0x110] sm:$0xff] }
 0xc07   :  { %5892 = vmatprep.mubr.f32.mxu0 %v8652_v34  ;;  %7342 = vmatpush3.bf16.msra.mxu0 %v8726_v16  ;;  %v1982_v34 = vld [vmem:[#allocation6 + $0x168] sm:$0xff] }
 0xc08   :  { %7343 = vmatprep.subr.bf16.mxu0 %v8168_v0  ;;  %v8750_v35 = vpack.c.bf16 %v1982_v34, %v1981_v33  ;;  %v2702_v33 = vld [vmem:[#allocation3 + $0x128] sm:$0xff] }
 0xc0a   :  { %5893 = vmatmul.mubr.f32.gmra.mrb[26].mxu0 %v8675_v39  ;;  %v1084_v39 = vadd.f32 %v8599_v19, %v8625_v24 }
 0xc0b   :  { %5895 = vmatprep.mubr.f32.mxu0 %v8697_v47  ;;  %7345 = vmatpush3.bf16.msra.mxu0 %v8730_v20 }
 0xc0c   :  { %7346 = vmatprep.subr.bf16.mxu0 %v8168_v0 }
 0xc0e   :  { %5896 = vmatmul.mubr.f32.gmra.mrb[28].mxu0 %v8016_v58 }
 0xc0f   :  { %7348 = vmatpush3.bf16.msra.mxu0 %v8734_v23 }
 0xc10   :  { %7349 = vmatprep.subr.bf16.mxu0 %v8168_v0 }
 0xc13   :  { %7351 = vmatpush3.bf16.msra.mxu0 %v8738_v26 }
 0xc14   :  { %7352 = vmatprep.subr.bf16.mxu0 %v8168_v0 }
 0xc17   :  { %7354 = vmatpush3.bf16.msra.mxu0 %v8742_v29 }
 0xc18   :  { %7355 = vmatprep.subr.bf16.mxu0 %v8168_v0 }
 0xc1b   :  { %7357 = vmatpush3.bf16.msra.mxu0 %v8746_v32 }
 0xc1c   :  { %7358 = vmatprep.subr.bf16.mxu0 %v8168_v0 }
 0xc1f   :  { %7360 = vmatpush3.bf16.msra.mxu0 %v8750_v35 }
 0xc20   :  { %7361 = vmatprep.subr.bf16.mxu0 %v8168_v0 }
 0xc23   :  { %7363 = vmatpush3.bf16.msra.mxu0 %v8754_v38 }
 0xc24   :  { %7388 = vmatprep.subr.bf16.mxu0 %v8168_v0 }
 0xcb9   :  { %v1724_v41 = vpop.f32.mrb[22].mxu0 }
 0xcba   :  { %v1728_v43 = vadd.f32 %v1724_v41, %v1084_v39  ;;  %v5821_v44 = vpop.f32.mrb[23].mxu0  ;;  %v2706_v39 = vld [vmem:[#allocation3 + $0x148] sm:$0xff] }
 0xcbb   :  { %v2708_v44 = vld [vmem:[#allocation3 + $0x158] sm:$0xff] }
 0xcbc   :  { %8017 = vtanh.f32 %v1728_v43  ;;  %v2707_v43 = vld [vmem:[#allocation3 + $0x150] sm:$0xff] }
 0xcc6   :  { %v8018_v46 = vpop.eup %8017 }
 0xcc7   :  { %5855 = vmatmul.mubr.f32.vlgmr.msra.gmra.mrb[22].mxu1 %v8018_v46  ;;  %5898 = vmatprep.mubr.f32.mxu0 %v8018_v46  ;;  %v7528_v46 = vpack.c.bf16 %v2708_v44, %v2707_v43 }
 0xcc8   :  { %7318 = vmatpush3.bf16.msra.mxu1 %v8726_v16  ;;  %5933 = vmatprep.mubr.msk.f32.mxu1 %vm8169_vm0, %v8170_v1 }
 0xcc9   :  { %7319 = vmatprep.subr.bf16.mxu1 %v8168_v0 }
 0xccc   :  { %7321 = vmatpush3.bf16.msra.mxu1 %v8730_v20 }
 0xccd   :  { %7322 = vmatprep.subr.bf16.mxu1 %v8168_v0 }
 0xcd0   :  { %7324 = vmatpush3.bf16.msra.mxu1 %v8734_v23 }
 0xcd1   :  { %7325 = vmatprep.subr.bf16.mxu1 %v8168_v0 }
 0xcd4   :  { %7327 = vmatpush3.bf16.msra.mxu1 %v8738_v26 }
 0xcd5   :  { %7328 = vmatprep.subr.bf16.mxu1 %v8168_v0 }
 0xcd8   :  { %7330 = vmatpush3.bf16.msra.mxu1 %v8742_v29 }
 0xcd9   :  { %v8771_v24 = vpop.f32.mrb[24].mxu0  ;;  %7331 = vmatprep.subr.bf16.mxu1 %v8168_v0 }
 0xcda   :  { %v1920_v47 = vpop.f32.mrb[25].mxu0  ;;  %v1926_v63 = vadd.f32 %v8771_v24, %v8814_v57  ;;  %v2709_v24 = vld [vmem:[#allocation3 + $0x160] sm:$0xff] }
 0xcdb   :  { %v1921_v58 = vadd.f32 %v8814_v57, %v1920_v47  ;;  %v2710_v47 = vld [vmem:[#allocation3 + $0x168] sm:$0xff] }
 0xcdc   :  { %7333 = vmatpush3.bf16.msra.mxu1 %v8746_v32 }
 0xcdd   :  { %v8775_v42 = vpop.f32.mrb[26].mxu0  ;;  %7334 = vmatprep.subr.bf16.mxu1 %v8168_v0 }
 0xcde   :  { %v8778_v45 = vpop.f32.mrb[27].mxu0  ;;  %v1936_v5 = vadd.f32 %v8775_v42, %v8814_v57  ;;  %v7532_v42 = vpack.c.bf16 %v2710_v47, %v2709_v24 }
 0xcdf   :  { %v1931_v8 = vadd.f32 %v8814_v57, %v8778_v45  ;;  %v2711_v45 = vld [vmem:[#allocation3 + $0x170] sm:$0xff] }
 0xce0   :  { %7336 = vmatpush3.bf16.msra.mxu1 %v8750_v35 }
 0xce1   :  { %v8781_v48 = vpop.f32.mrb[28].mxu0  ;;  %7337 = vmatprep.subr.bf16.mxu1 %v8168_v0 }
 0xce2   :  { %v8784_v49 = vpop.f32.mrb[29].mxu0  ;;  %v1946_v40 = vadd.f32 %v8781_v48, %v8814_v57  ;;  %v2712_v48 = vld [vmem:[#allocation3 + $0x178] sm:$0xff] }
 0xce3   :  { %v1941_v15 = vadd.f32 %v8814_v57, %v8784_v49  ;;  %v7536_v49 = vpack.c.bf16 %v2712_v48, %v2711_v45 }
 0xce4   :  { %7339 = vmatpush3.bf16.msra.mxu1 %v8754_v38 }
 0xce5   :  { %7364 = vmatprep.subr.bf16.mxu1 %v8168_v0 }
 0xce7   :  { %5934 = vmatmul.mubr.f32.vlgmr.msra.gmra.mrb[24].mxu1 %v8170_v1 }
 0xce8   :  { %7366 = vmatpush3.bf16.msra.mxu1 %v8726_v16  ;;  %6003 = vmatprep.mubr.msk.f32.mxu1 %vm8169_vm0, %v8170_v1 }
 0xce9   :  { %7367 = vmatprep.subr.bf16.mxu1 %v8168_v0 }
 0xcec   :  { %7369 = vmatpush3.bf16.msra.mxu1 %v8730_v20 }
 0xced   :  { %7370 = vmatprep.subr.bf16.mxu1 %v8168_v0 }
 0xcf0   :  { %7372 = vmatpush3.bf16.msra.mxu1 %v8734_v23 }
 0xcf1   :  { %7373 = vmatprep.subr.bf16.mxu1 %v8168_v0 }
 0xcf4   :  { %7375 = vmatpush3.bf16.msra.mxu1 %v8738_v26 }
 0xcf5   :  { %7376 = vmatprep.subr.bf16.mxu1 %v8168_v0 }
 0xcf8   :  { %7378 = vmatpush3.bf16.msra.mxu1 %v8742_v29 }
 0xcf9   :  { %7379 = vmatprep.subr.bf16.mxu1 %v8168_v0 }
 0xcfc   :  { %7381 = vmatpush3.bf16.msra.mxu1 %v8746_v32 }
 0xcfd   :  { %7382 = vmatprep.subr.bf16.mxu1 %v8168_v0 }
 0xd00   :  { %7384 = vmatpush3.bf16.msra.mxu1 %v8750_v35 }
 0xd01   :  { %7385 = vmatprep.subr.bf16.mxu1 %v8168_v0 }
 0xd04   :  { %7387 = vmatpush3.bf16.msra.mxu1 %v8754_v38 }
 0xd05   :  { %7412 = vmatprep.subr.bf16.mxu1 %v8168_v0 }
 0xd9a   :  { %v1814_v53 = vpop.f32.mrb[22].mxu1 }
 0xd9b   :  { %v1818_v54 = vadd.f32 %v1814_v53, %v1089_v52  ;;  %v5856_v55 = vpop.f32.mrb[23].mxu1  ;;  %v2836_v52 = vld [vmem:[#allocation6 + $0x180] sm:$0xff]  ;;  %v2837_v53 = vld [vmem:[#allocation6 + $0x188] sm:$0xff] }
 0xd9c   :  { %v2838_v55 = vld [vmem:[#allocation6 + $0x190] sm:$0xff] }
 0xd9d   :  { %8019 = vtanh.f32 %v1818_v54  ;;  %v8941_v54 = vpack.c.bf16 %v2837_v53, %v2836_v52 }
 0xda7   :  { %v8020_v56 = vpop.eup %8019 }
 0xda8   :  { %5899 = vmatmul.mubr.f32.gmra.mrb[30].mxu0 %v8020_v56  ;;  %v2839_v56 = vld [vmem:[#allocation6 + $0x198] sm:$0xff] }
 0xda9   :  { %5968 = vmatprep.mubr.msk.f32.mxu0 %vm8169_vm0, %v8170_v1 }
 0xdba   :  { %v2051_v59 = vpop.f32.mrb[24].mxu1 }
 0xdbb   :  { %v2055_v60 = vadd.f32 %v2051_v59, %v1921_v58  ;;  %v5935_v61 = vpop.f32.mrb[25].mxu1  ;;  %v8945_v58 = vpack.c.bf16 %v2839_v56, %v2838_v55  ;;  %v2840_v59 = vld [vmem:[#allocation6 + $0x1a0] sm:$0xff] }
 0xdbd   :  { %8021 = vtanh.f32 %v2055_v60  ;;  %v2841_v60 = vld [vmem:[#allocation6 + $0x1a8] sm:$0xff] }
 0xdbe   :  { %v8949_v61 = vpack.c.bf16 %v2841_v60, %v2840_v59 }
 0xdc7   :  { %v8817_v19 = vpop.eup %8021 }
 0xdc8   :  { %5969 = vmatmul.mubr.f32.vlgmr.msra.gmra.mrb[32].mxu0 %v8817_v19 }
 0xdc9   :  { %7390 = vmatpush3.bf16.msra.mxu0 %v8726_v16  ;;  %6038 = vmatprep.mubr.msk.f32.mxu0 %vm8169_vm0, %v8170_v1 }
 0xdca   :  { %7391 = vmatprep.subr.bf16.mxu0 %v8168_v0 }
 0xdcd   :  { %7393 = vmatpush3.bf16.msra.mxu0 %v8730_v20 }
 0xdce   :  { %7394 = vmatprep.subr.bf16.mxu0 %v8168_v0 }
 0xdd1   :  { %7396 = vmatpush3.bf16.msra.mxu0 %v8734_v23 }
 0xdd2   :  { %7397 = vmatprep.subr.bf16.mxu0 %v8168_v0 }
 0xdd5   :  { %7399 = vmatpush3.bf16.msra.mxu0 %v8738_v26 }
 0xdd6   :  { %7400 = vmatprep.subr.bf16.mxu0 %v8168_v0 }
 0xdd9   :  { %7402 = vmatpush3.bf16.msra.mxu0 %v8742_v29 }
 0xdda   :  { %7403 = vmatprep.subr.bf16.mxu0 %v8168_v0 }
 0xddd   :  { %7405 = vmatpush3.bf16.msra.mxu0 %v8746_v32 }
 0xdde   :  { %7406 = vmatprep.subr.bf16.mxu0 %v8168_v0 }
 0xde1   :  { %7408 = vmatpush3.bf16.msra.mxu0 %v8750_v35 }
 0xde2   :  { %7409 = vmatprep.subr.bf16.mxu0 %v8168_v0 }
 0xde5   :  { %7411 = vmatpush3.bf16.msra.mxu0 %v8754_v38 }
 0xde6   :  { %7436 = vmatprep.subr.bf16.mxu0 %v8168_v0 }
 0xe7b   :  { %v8838_v50 = vpop.f32.mrb[30].mxu0 }
 0xe7c   :  { %v8840_v62 = vpop.f32.mrb[31].mxu0 }
 0xe9b   :  { %v2141_v2 = vpop.f32.mrb[32].mxu0 }
 0xe9c   :  { %v2145_v3 = vadd.f32 %v2141_v2, %v1926_v63  ;;  %v5970_v4 = vpop.f32.mrb[33].mxu0  ;;  %v2843_v63 = vld [vmem:[#allocation6 + $0x1b8] sm:$0xff] }
 0xe9d   :  { %v2845_v4 = vld [vmem:[#allocation6 + $0x1c8] sm:$0xff] }
 0xe9e   :  { %8023 = vtanh.f32 %v2145_v3  ;;  %v2844_v3 = vld [vmem:[#allocation6 + $0x1c0] sm:$0xff] }
 0xea8   :  { %v8844_v6 = vpop.eup %8023 }
 0xea9   :  { %6004 = vmatmul.mubr.f32.vlgmr.msra.gmra.mrb[26].mxu1 %v8844_v6 }
 0xeaa   :  { %7414 = vmatpush3.bf16.msra.mxu1 %v8726_v16  ;;  %6073 = vmatprep.mubr.msk.f32.mxu1 %vm8169_vm0, %v8170_v1 }
 0xeab   :  { %7415 = vmatprep.subr.bf16.mxu1 %v8168_v0 }
 0xeae   :  { %7417 = vmatpush3.bf16.msra.mxu1 %v8730_v20 }
 0xeaf   :  { %7418 = vmatprep.subr.bf16.mxu1 %v8168_v0 }
 0xeb2   :  { %7420 = vmatpush3.bf16.msra.mxu1 %v8734_v23 }
 0xeb3   :  { %7421 = vmatprep.subr.bf16.mxu1 %v8168_v0 }
 0xeb6   :  { %7423 = vmatpush3.bf16.msra.mxu1 %v8738_v26 }
 0xeb7   :  { %7424 = vmatprep.subr.bf16.mxu1 %v8168_v0 }
 0xeba   :  { %7426 = vmatpush3.bf16.msra.mxu1 %v8742_v29 }
 0xebb   :  { %7427 = vmatprep.subr.bf16.mxu1 %v8168_v0 }
 0xebe   :  { %7429 = vmatpush3.bf16.msra.mxu1 %v8746_v32 }
 0xebf   :  { %7430 = vmatprep.subr.bf16.mxu1 %v8168_v0 }
 0xec2   :  { %7432 = vmatpush3.bf16.msra.mxu1 %v8750_v35 }
 0xec3   :  { %7433 = vmatprep.subr.bf16.mxu1 %v8168_v0 }
 0xec6   :  { %7435 = vmatpush3.bf16.msra.mxu1 %v8754_v38 }
 0xec7   :  { %7460 = vmatprep.subr.bf16.mxu1 %v8168_v0 }
 0xf7c   :  { %v2231_v9 = vpop.f32.mrb[26].mxu1 }
 0xf7d   :  { %v2235_v10 = vadd.f32 %v2231_v9, %v1931_v8  ;;  %v6005_v51 = vpop.f32.mrb[27].mxu1  ;;  %v2846_v8 = vld [vmem:[#allocation6 + $0x1d0] sm:$0xff]  ;;  %v2847_v9 = vld [vmem:[#allocation6 + $0x1d8] sm:$0xff] }
 0xf7e   :  { %v2848_v51 = vld [vmem:[#allocation6 + $0x1e0] sm:$0xff] }
 0xf7f   :  { %8025 = vtanh.f32 %v2235_v10  ;;  %v8961_v10 = vpack.c.bf16 %v2847_v9, %v2846_v8 }
 0xf89   :  { %v8867_v11 = vpop.eup %8025 }
 0xf8a   :  { %6039 = vmatmul.mubr.f32.vlgmr.msra.gmra.mrb[34].mxu0 %v8867_v11 }
 0xf8b   :  { %7438 = vmatpush3.bf16.msra.mxu0 %v8726_v16  ;;  %6108 = vmatprep.mubr.msk.f32.mxu0 %vm8169_vm0, %v8170_v1 }
 0xf8c   :  { %7439 = vmatprep.subr.bf16.mxu0 %v8168_v0 }
 0xf8f   :  { %7441 = vmatpush3.bf16.msra.mxu0 %v8730_v20 }
 0xf90   :  { %7442 = vmatprep.subr.bf16.mxu0 %v8168_v0 }
 0xf93   :  { %7444 = vmatpush3.bf16.msra.mxu0 %v8734_v23 }
 0xf94   :  { %7445 = vmatprep.subr.bf16.mxu0 %v8168_v0 }
 0xf97   :  { %7447 = vmatpush3.bf16.msra.mxu0 %v8738_v26 }
 0xf98   :  { %7448 = vmatprep.subr.bf16.mxu0 %v8168_v0 }
 0xf9b   :  { %7450 = vmatpush3.bf16.msra.mxu0 %v8742_v29 }
 0xf9c   :  { %7451 = vmatprep.subr.bf16.mxu0 %v8168_v0 }
 0xf9f   :  { %7453 = vmatpush3.bf16.msra.mxu0 %v8746_v32 }
 0xfa0   :  { %7454 = vmatprep.subr.bf16.mxu0 %v8168_v0 }
 0xfa3   :  { %7456 = vmatpush3.bf16.msra.mxu0 %v8750_v35 }
 0xfa4   :  { %7457 = vmatprep.subr.bf16.mxu0 %v8168_v0 }
 0xfa7   :  { %7459 = vmatpush3.bf16.msra.mxu0 %v8754_v38 }
 0xfa8   :  { %7484 = vmatprep.subr.bf16.mxu0 %v8168_v0 }
0x105d   :  { %v2321_v7 = vpop.f32.mrb[34].mxu0 }
0x105e   :  { %v2325_v12 = vadd.f32 %v2321_v7, %v1936_v5  ;;  %v6040_v13 = vpop.f32.mrb[35].mxu0  ;;  %v2850_v7 = vld [vmem:[#allocation6 + $0x1f0] sm:$0xff] }
0x1060   :  { %8027 = vtanh.f32 %v2325_v12  ;;  %v2851_v12 = vld [vmem:[#allocation6 + $0x1f8] sm:$0xff] }
0x1061   :  { %v8969_v13 = vpack.c.bf16 %v2851_v12, %v2850_v7  ;;  %v3571_v7 = vld [vmem:[#allocation3 + $0x1b8] sm:$0xff] }
0x106a   :  { %v8890_v14 = vpop.eup %8027 }
0x106b   :  { %6074 = vmatmul.mubr.f32.vlgmr.msra.gmra.mrb[28].mxu1 %v8890_v14 }
0x106c   :  { %7462 = vmatpush3.bf16.msra.mxu1 %v8726_v16  ;;  %6143 = vmatprep.mubr.msk.f32.mxu1 %vm8169_vm0, %v8170_v1 }
0x106d   :  { %7463 = vmatprep.subr.bf16.mxu1 %v8168_v0 }
0x1070   :  { %7465 = vmatpush3.bf16.msra.mxu1 %v8730_v20 }
0x1071   :  { %7466 = vmatprep.subr.bf16.mxu1 %v8168_v0 }
0x1074   :  { %7468 = vmatpush3.bf16.msra.mxu1 %v8734_v23 }
0x1075   :  { %7469 = vmatprep.subr.bf16.mxu1 %v8168_v0 }
0x1078   :  { %7471 = vmatpush3.bf16.msra.mxu1 %v8738_v26 }
0x1079   :  { %7472 = vmatprep.subr.bf16.mxu1 %v8168_v0 }
0x107c   :  { %7474 = vmatpush3.bf16.msra.mxu1 %v8742_v29 }
0x107d   :  { %7475 = vmatprep.subr.bf16.mxu1 %v8168_v0 }
0x1080   :  { %7477 = vmatpush3.bf16.msra.mxu1 %v8746_v32 }
0x1081   :  { %7478 = vmatprep.subr.bf16.mxu1 %v8168_v0 }
0x1084   :  { %7480 = vmatpush3.bf16.msra.mxu1 %v8750_v35 }
0x1085   :  { %7481 = vmatprep.subr.bf16.mxu1 %v8168_v0 }
0x1088   :  { %7483 = vmatpush3.bf16.msra.mxu1 %v8754_v38 }
0x113e   :  { %v2411_v17 = vpop.f32.mrb[28].mxu1 }
0x113f   :  { %v2415_v18 = vadd.f32 %v2411_v17, %v1941_v15  ;;  %v6075_v21 = vpop.f32.mrb[29].mxu1 }
0x1141   :  { %8029 = vtanh.f32 %v2415_v18 }
0x114b   :  { %v8912_v22 = vpop.eup %8029 }
0x114c   :  { %6109 = vmatmul.mubr.f32.vlgmr.msra.gmra.mrb[36].mxu0 %v8912_v22 }
0x114d   :  { %7486 = vmatpush3.bf16.msra.mxu0 %v8726_v16  ;;  %6178 = vmatprep.mubr.msk.f32.mxu0 %vm8169_vm0, %v8170_v1  ;;  %v2697_v16 = vld [vmem:[#allocation3 + $0x100] sm:$0xff] }
0x114e   :  { %7487 = vmatprep.subr.bf16.mxu0 %v8168_v0 }
0x1151   :  { %7489 = vmatpush3.bf16.msra.mxu0 %v8730_v20  ;;  %v2698_v20 = vld [vmem:[#allocation3 + $0x108] sm:$0xff] }
0x1152   :  { %7490 = vmatprep.subr.bf16.mxu0 %v8168_v0 }
0x1155   :  { %7492 = vmatpush3.bf16.msra.mxu0 %v8734_v23  ;;  %v7508_v23 = vpack.c.bf16 %v2698_v20, %v2697_v16 }
0x1156   :  { %7493 = vmatprep.subr.bf16.mxu0 %v8168_v0 }
0x1157   :  { %7509 = vmatprep.subr.bf16.mxu1 %v7508_v23 }
0x1159   :  { %7495 = vmatpush3.bf16.msra.mxu0 %v8738_v26 }
0x115a   :  { %7496 = vmatprep.subr.bf16.mxu0 %v8168_v0 }
0x115d   :  { %7498 = vmatpush3.bf16.msra.mxu0 %v8742_v29  ;;  %v2700_v29 = vld [vmem:[#allocation3 + $0x118] sm:$0xff] }
0x115e   :  { %7499 = vmatprep.subr.bf16.mxu0 %v8168_v0  ;;  %v7512_v30 = vpack.c.bf16 %v2700_v29, %v2699_v28 }
0x1161   :  { %7501 = vmatpush3.bf16.msra.mxu0 %v8746_v32  ;;  %v2701_v32 = vld [vmem:[#allocation3 + $0x120] sm:$0xff] }
0x1162   :  { %7502 = vmatprep.subr.bf16.mxu0 %v8168_v0  ;;  %v7516_v34 = vpack.c.bf16 %v2702_v33, %v2701_v32 }
0x1165   :  { %7504 = vmatpush3.bf16.msra.mxu0 %v8750_v35  ;;  %v2703_v35 = vld [vmem:[#allocation3 + $0x130] sm:$0xff] }
0x1166   :  { %7505 = vmatprep.subr.bf16.mxu0 %v8168_v0  ;;  %v7520_v37 = vpack.c.bf16 %v2704_v36, %v2703_v35 }
0x1169   :  { %7507 = vmatpush3.bf16.msra.mxu0 %v8754_v38  ;;  %v2705_v38 = vld [vmem:[#allocation3 + $0x140] sm:$0xff] }
0x116a   :  { %7540 = vmatprep.subr.bf16.mxu0 %v8168_v0  ;;  %v7524_v41 = vpack.c.bf16 %v2706_v39, %v2705_v38 }
0x121f   :  { %v2501_v25 = vpop.f32.mrb[36].mxu0 }
0x1220   :  { %v2505_v26 = vadd.f32 %v2501_v25, %v1946_v40  ;;  %v6110_v27 = vpop.f32.mrb[37].mxu0  ;;  %v1956_v25 = vadd.f32 %v8838_v50, %v8814_v57 }
0x1222   :  { %8031 = vtanh.f32 %v2505_v26 }
0x122c   :  { %v8032_v31 = vpop.eup %8031 }
0x122d   :  { %6144 = vmatmul.mubr.f32.vlgmr.msra.gmra.mrb[30].mxu1 %v8032_v31 }
0x122e   :  { %7511 = vmatpush3.bf16.msra.mxu1 %v7508_v23  ;;  %6213 = vmatprep.mubr.f32.mxu1 %v8817_v19  ;;  %v2842_v19 = vld [vmem:[#allocation6 + $0x1b0] sm:$0xff] }
0x122f   :  { %7513 = vmatprep.subr.bf16.mxu1 %v7512_v30  ;;  %v8953_v2 = vpack.c.bf16 %v2843_v63, %v2842_v19 }
0x1232   :  { %7515 = vmatpush3.bf16.msra.mxu1 %v7512_v30  ;;  %v9029_v30 = vld [vmem:[%s9382_s4 + $0x3] ss:$0 sm:$0xff] }
0x1233   :  { %7517 = vmatprep.subr.bf16.mxu1 %v7516_v34 }
0x1236   :  { %7519 = vmatpush3.bf16.msra.mxu1 %v7516_v34 }
0x1237   :  { %7521 = vmatprep.subr.bf16.mxu1 %v7520_v37 }
0x123a   :  { %7523 = vmatpush3.bf16.msra.mxu1 %v7520_v37 }
0x123b   :  { %7525 = vmatprep.subr.bf16.mxu1 %v7524_v41 }
0x123e   :  { %7527 = vmatpush3.bf16.msra.mxu1 %v7524_v41 }
0x123f   :  { %7529 = vmatprep.subr.bf16.mxu1 %v7528_v46 }
0x1242   :  { %7531 = vmatpush3.bf16.msra.mxu1 %v7528_v46 }
0x1243   :  { %7533 = vmatprep.subr.bf16.mxu1 %v7532_v42 }
0x1246   :  { %7535 = vmatpush3.bf16.msra.mxu1 %v7532_v42 }
0x1247   :  { %7537 = vmatprep.subr.bf16.mxu1 %v7536_v49 }
0x124a   :  { %7539 = vmatpush3.bf16.msra.mxu1 %v7536_v49 }
0x124b   :  { %7564 = vmatprep.subr.bf16.mxu1 %v8168_v0 }
0x124d   :  { %6214 = vmatmul.mubr.f32.vlgmr.msra.gmra.mrb[32].mxu1 %v8844_v6  ;;  %v8957_v6 = vpack.c.bf16 %v2845_v4, %v2844_v3  ;;  %v3566_v4 = vld [vmem:[#allocation3 + $0x190] sm:$0xff] }
0x124e   :  { %6216 = vmatprep.mubr.f32.mxu1 %v8867_v11  ;;  %7566 = vmatpush3.bf16.msra.mxu1 %v8941_v54  ;;  %v2849_v11 = vld [vmem:[#allocation6 + $0x1e8] sm:$0xff] }
0x124f   :  { %7567 = vmatprep.subr.bf16.mxu1 %v8168_v0  ;;  %v8965_v5 = vpack.c.bf16 %v2849_v11, %v2848_v51  ;;  %v3569_v51 = vld [vmem:[#allocation3 + $0x1a8] sm:$0xff] }
0x1251   :  { %6217 = vmatmul.mubr.f32.gmra.mrb[34].mxu1 %v8890_v14  ;;  %v1951_v14 = vadd.f32 %v8814_v57, %v8840_v62 }
0x1252   :  { %6219 = vmatprep.mubr.f32.mxu1 %v8912_v22  ;;  %7569 = vmatpush3.bf16.msra.mxu1 %v8945_v58 }
0x1253   :  { %7570 = vmatprep.subr.bf16.mxu1 %v8168_v0 }
0x1255   :  { %6220 = vmatmul.mubr.f32.gmra.mrb[36].mxu1 %v8032_v31 }
0x1256   :  { %7572 = vmatpush3.bf16.msra.mxu1 %v8949_v61 }
0x1257   :  { %7573 = vmatprep.subr.bf16.mxu1 %v8168_v0 }
0x125a   :  { %7575 = vmatpush3.bf16.msra.mxu1 %v8953_v2 }
0x125b   :  { %7576 = vmatprep.subr.bf16.mxu1 %v8168_v0 }
0x125e   :  { %7578 = vmatpush3.bf16.msra.mxu1 %v8957_v6 }
0x125f   :  { %7579 = vmatprep.subr.bf16.mxu1 %v8168_v0 }
0x1262   :  { %7581 = vmatpush3.bf16.msra.mxu1 %v8961_v10 }
0x1263   :  { %7582 = vmatprep.subr.bf16.mxu1 %v8168_v0 }
0x1266   :  { %7584 = vmatpush3.bf16.msra.mxu1 %v8965_v5 }
0x1267   :  { %7585 = vmatprep.subr.bf16.mxu1 %v8168_v0 }
0x126a   :  { %7587 = vmatpush3.bf16.msra.mxu1 %v8969_v13 }
0x126b   :  { %7612 = vmatprep.subr.bf16.mxu1 %v8168_v0 }
0x1300   :  { %v2591_v15 = vpop.f32.mrb[30].mxu1 }
0x1301   :  { %v2595_v17 = vadd.f32 %v2591_v15, %v1951_v14  ;;  %v6145_v18 = vpop.f32.mrb[31].mxu1  ;;  %v3573_v14 = vld [vmem:[#allocation3 + $0x1c8] sm:$0xff] }
0x1302   :  { %v3575_v18 = vld [vmem:[#allocation3 + $0x1d8] sm:$0xff] }
0x1303   :  { %8033 = vtanh.f32 %v2595_v17  ;;  %v3574_v17 = vld [vmem:[#allocation3 + $0x1d0] sm:$0xff] }
0x130d   :  { %v8034_v21 = vpop.eup %8033 }
0x130e   :  { %6179 = vmatmul.mubr.f32.vlgmr.msra.gmra.mrb[38].mxu0 %v8034_v21  ;;  %6222 = vmatprep.mubr.f32.mxu1 %v8034_v21  ;;  %v7752_v21 = vpack.c.bf16 %v3575_v18, %v3574_v17 }
0x130f   :  { %7542 = vmatpush3.bf16.msra.mxu0 %v8941_v54  ;;  %6257 = vmatprep.mubr.msk.f32.mxu0 %vm8169_vm0, %v8170_v1 }
0x1310   :  { %7543 = vmatprep.subr.bf16.mxu0 %v8168_v0 }
0x1313   :  { %7545 = vmatpush3.bf16.msra.mxu0 %v8945_v58 }
0x1314   :  { %7546 = vmatprep.subr.bf16.mxu0 %v8168_v0 }
0x1317   :  { %7548 = vmatpush3.bf16.msra.mxu0 %v8949_v61 }
0x1318   :  { %7549 = vmatprep.subr.bf16.mxu0 %v8168_v0 }
0x131b   :  { %7551 = vmatpush3.bf16.msra.mxu0 %v8953_v2 }
0x131c   :  { %7552 = vmatprep.subr.bf16.mxu0 %v8168_v0 }
0x131f   :  { %7554 = vmatpush3.bf16.msra.mxu0 %v8957_v6 }
0x1320   :  { %v8986_v62 = vpop.f32.mrb[32].mxu1  ;;  %7555 = vmatprep.subr.bf16.mxu0 %v8168_v0 }
0x1321   :  { %v2787_v22 = vpop.f32.mrb[33].mxu1  ;;  %v2793_v36 = vadd.f32 %v8986_v62, %v9029_v30  ;;  %v3576_v62 = vld [vmem:[#allocation3 + $0x1e0] sm:$0xff] }
0x1322   :  { %v2788_v31 = vadd.f32 %v9029_v30, %v2787_v22  ;;  %v3577_v22 = vld [vmem:[#allocation3 + $0x1e8] sm:$0xff] }
0x1323   :  { %7557 = vmatpush3.bf16.msra.mxu0 %v8961_v10 }
0x1324   :  { %v8990_v16 = vpop.f32.mrb[34].mxu1  ;;  %7558 = vmatprep.subr.bf16.mxu0 %v8168_v0 }
0x1325   :  { %v8993_v20 = vpop.f32.mrb[35].mxu1  ;;  %v2803_v42 = vadd.f32 %v8990_v16, %v9029_v30  ;;  %v7756_v16 = vpack.c.bf16 %v3577_v22, %v3576_v62 }
0x1326   :  { %v2798_v43 = vadd.f32 %v9029_v30, %v8993_v20  ;;  %v3578_v20 = vld [vmem:[#allocation3 + $0x1f0] sm:$0xff] }
0x1327   :  { %7560 = vmatpush3.bf16.msra.mxu0 %v8965_v5 }
0x1328   :  { %v8996_v23 = vpop.f32.mrb[36].mxu1  ;;  %7561 = vmatprep.subr.bf16.mxu0 %v8168_v0 }
0x1329   :  { %v8999_v40 = vpop.f32.mrb[37].mxu1  ;;  %v2813_v19 = vadd.f32 %v8996_v23, %v9029_v30  ;;  %v3579_v23 = vld [vmem:[#allocation3 + $0x1f8] sm:$0xff] }
0x132a   :  { %v2808_v53 = vadd.f32 %v9029_v30, %v8999_v40  ;;  %v7760_v40 = vpack.c.bf16 %v3579_v23, %v3578_v20 }
0x132b   :  { %7563 = vmatpush3.bf16.msra.mxu0 %v8969_v13 }
0x132c   :  { %7588 = vmatprep.subr.bf16.mxu0 %v8168_v0 }
0x132e   :  { %6258 = vmatmul.mubr.f32.vlgmr.msra.gmra.mrb[40].mxu0 %v8170_v1 }
0x132f   :  { %7590 = vmatpush3.bf16.msra.mxu0 %v8941_v54  ;;  %6327 = vmatprep.mubr.msk.f32.mxu0 %vm8169_vm0, %v8170_v1 }
0x1330   :  { %7591 = vmatprep.subr.bf16.mxu0 %v8168_v0 }
0x1333   :  { %7593 = vmatpush3.bf16.msra.mxu0 %v8945_v58 }
0x1334   :  { %7594 = vmatprep.subr.bf16.mxu0 %v8168_v0 }
0x1337   :  { %7596 = vmatpush3.bf16.msra.mxu0 %v8949_v61 }
0x1338   :  { %7597 = vmatprep.subr.bf16.mxu0 %v8168_v0 }
0x133b   :  { %7599 = vmatpush3.bf16.msra.mxu0 %v8953_v2 }
0x133c   :  { %7600 = vmatprep.subr.bf16.mxu0 %v8168_v0 }
0x133f   :  { %7602 = vmatpush3.bf16.msra.mxu0 %v8957_v6 }
0x1340   :  { %7603 = vmatprep.subr.bf16.mxu0 %v8168_v0 }
0x1343   :  { %7605 = vmatpush3.bf16.msra.mxu0 %v8961_v10 }
0x1344   :  { %7606 = vmatprep.subr.bf16.mxu0 %v8168_v0 }
0x1347   :  { %7608 = vmatpush3.bf16.msra.mxu0 %v8965_v5 }
0x1348   :  { %7609 = vmatprep.subr.bf16.mxu0 %v8168_v0 }
0x134b   :  { %7611 = vmatpush3.bf16.msra.mxu0 %v8969_v13 }
0x134c   :  { %7636 = vmatprep.subr.bf16.mxu0 %v8168_v0 }
0x13e1   :  { %v2681_v26 = vpop.f32.mrb[38].mxu0 }
0x13e2   :  { %v2685_v27 = vadd.f32 %v2681_v26, %v1956_v25  ;;  %v6180_v28 = vpop.f32.mrb[39].mxu0  ;;  %v3703_v25 = vld [vmem:[#allocation6 + $0x200] sm:$0xff]  ;;  %v3704_v26 = vld [vmem:[#allocation6 + $0x208] sm:$0xff] }
0x13e3   :  { %v3705_v28 = vld [vmem:[#allocation6 + $0x210] sm:$0xff] }
0x13e4   :  { %8035 = vtanh.f32 %v2685_v27  ;;  %v9156_v27 = vpack.c.bf16 %v3704_v26, %v3703_v25 }
0x13ee   :  { %v8036_v29 = vpop.eup %8035 }
0x13ef   :  { %6223 = vmatmul.mubr.f32.gmra.mrb[38].mxu1 %v8036_v29  ;;  %v3706_v29 = vld [vmem:[#allocation6 + $0x218] sm:$0xff] }
0x13f0   :  { %6292 = vmatprep.mubr.msk.f32.mxu1 %vm8169_vm0, %v8170_v1 }
0x1401   :  { %v2918_v32 = vpop.f32.mrb[40].mxu0 }
0x1402   :  { %v2922_v33 = vadd.f32 %v2918_v32, %v2788_v31  ;;  %v6259_v34 = vpop.f32.mrb[41].mxu0  ;;  %v9160_v31 = vpack.c.bf16 %v3706_v29, %v3705_v28  ;;  %v3707_v32 = vld [vmem:[#allocation6 + $0x220] sm:$0xff] }
0x1404   :  { %8037 = vtanh.f32 %v2922_v33  ;;  %v3708_v33 = vld [vmem:[#allocation6 + $0x228] sm:$0xff] }
0x1405   :  { %v9164_v34 = vpack.c.bf16 %v3708_v33, %v3707_v32 }
0x140e   :  { %v9032_v57 = vpop.eup %8037 }
0x140f   :  { %6293 = vmatmul.mubr.f32.vlgmr.msra.gmra.mrb[40].mxu1 %v9032_v57 }
0x1410   :  { %7614 = vmatpush3.bf16.msra.mxu1 %v8941_v54  ;;  %6362 = vmatprep.mubr.msk.f32.mxu1 %vm8169_vm0, %v8170_v1 }
0x1411   :  { %7615 = vmatprep.subr.bf16.mxu1 %v8168_v0 }
0x1414   :  { %7617 = vmatpush3.bf16.msra.mxu1 %v8945_v58 }
0x1415   :  { %7618 = vmatprep.subr.bf16.mxu1 %v8168_v0 }
0x1418   :  { %7620 = vmatpush3.bf16.msra.mxu1 %v8949_v61 }
0x1419   :  { %7621 = vmatprep.subr.bf16.mxu1 %v8168_v0 }
0x141c   :  { %7623 = vmatpush3.bf16.msra.mxu1 %v8953_v2 }
0x141d   :  { %7624 = vmatprep.subr.bf16.mxu1 %v8168_v0 }
0x1420   :  { %7626 = vmatpush3.bf16.msra.mxu1 %v8957_v6 }
0x1421   :  { %7627 = vmatprep.subr.bf16.mxu1 %v8168_v0 }
0x1424   :  { %7629 = vmatpush3.bf16.msra.mxu1 %v8961_v10 }
0x1425   :  { %7630 = vmatprep.subr.bf16.mxu1 %v8168_v0 }
0x1428   :  { %7632 = vmatpush3.bf16.msra.mxu1 %v8965_v5 }
0x1429   :  { %7633 = vmatprep.subr.bf16.mxu1 %v8168_v0 }
0x142c   :  { %7635 = vmatpush3.bf16.msra.mxu1 %v8969_v13 }
0x142d   :  { %7660 = vmatprep.subr.bf16.mxu1 %v8168_v0 }
0x14c2   :  { %v9053_v50 = vpop.f32.mrb[38].mxu1 }
0x14c3   :  { %v9055_v35 = vpop.f32.mrb[39].mxu1 }
0x14e2   :  { %v3008_v37 = vpop.f32.mrb[40].mxu1 }
0x14e3   :  { %v3012_v38 = vadd.f32 %v3008_v37, %v2793_v36  ;;  %v6294_v39 = vpop.f32.mrb[41].mxu1  ;;  %v3710_v36 = vld [vmem:[#allocation6 + $0x238] sm:$0xff] }
0x14e4   :  { %v3712_v39 = vld [vmem:[#allocation6 + $0x248] sm:$0xff] }
0x14e5   :  { %8039 = vtanh.f32 %v3012_v38  ;;  %v3711_v38 = vld [vmem:[#allocation6 + $0x240] sm:$0xff] }
0x14ef   :  { %v9059_v41 = vpop.eup %8039 }
0x14f0   :  { %6328 = vmatmul.mubr.f32.vlgmr.msra.gmra.mrb[42].mxu0 %v9059_v41 }
0x14f1   :  { %7638 = vmatpush3.bf16.msra.mxu0 %v8941_v54  ;;  %6397 = vmatprep.mubr.msk.f32.mxu0 %vm8169_vm0, %v8170_v1 }
0x14f2   :  { %7639 = vmatprep.subr.bf16.mxu0 %v8168_v0 }
0x14f5   :  { %7641 = vmatpush3.bf16.msra.mxu0 %v8945_v58 }
0x14f6   :  { %7642 = vmatprep.subr.bf16.mxu0 %v8168_v0 }
0x14f9   :  { %7644 = vmatpush3.bf16.msra.mxu0 %v8949_v61 }
0x14fa   :  { %7645 = vmatprep.subr.bf16.mxu0 %v8168_v0 }
0x14fd   :  { %7647 = vmatpush3.bf16.msra.mxu0 %v8953_v2 }
0x14fe   :  { %7648 = vmatprep.subr.bf16.mxu0 %v8168_v0 }
0x1501   :  { %7650 = vmatpush3.bf16.msra.mxu0 %v8957_v6 }
0x1502   :  { %7651 = vmatprep.subr.bf16.mxu0 %v8168_v0 }
0x1505   :  { %7653 = vmatpush3.bf16.msra.mxu0 %v8961_v10 }
0x1506   :  { %7654 = vmatprep.subr.bf16.mxu0 %v8168_v0 }
0x1509   :  { %7656 = vmatpush3.bf16.msra.mxu0 %v8965_v5 }
0x150a   :  { %7657 = vmatprep.subr.bf16.mxu0 %v8168_v0 }
0x150d   :  { %7659 = vmatpush3.bf16.msra.mxu0 %v8969_v13 }
0x150e   :  { %7684 = vmatprep.subr.bf16.mxu0 %v8168_v0 }
0x15c3   :  { %v3098_v44 = vpop.f32.mrb[42].mxu0 }
0x15c4   :  { %v3102_v46 = vadd.f32 %v3098_v44, %v2798_v43  ;;  %v6329_v24 = vpop.f32.mrb[43].mxu0  ;;  %v3713_v43 = vld [vmem:[#allocation6 + $0x250] sm:$0xff]  ;;  %v3714_v44 = vld [vmem:[#allocation6 + $0x258] sm:$0xff] }
0x15c5   :  { %v3715_v24 = vld [vmem:[#allocation6 + $0x260] sm:$0xff] }
0x15c6   :  { %8041 = vtanh.f32 %v3102_v46  ;;  %v9176_v46 = vpack.c.bf16 %v3714_v44, %v3713_v43  ;;  %v4305_v43 = vld [vmem:[#allocation8 + $0x18] sm:$0xff] }
0x15d0   :  { %v9082_v47 = vpop.eup %8041 }
0x15d1   :  { %6363 = vmatmul.mubr.f32.vlgmr.msra.gmra.mrb[42].mxu1 %v9082_v47 }
0x15d2   :  { %7662 = vmatpush3.bf16.msra.mxu1 %v8941_v54  ;;  %6432 = vmatprep.mubr.msk.f32.mxu1 %vm8169_vm0, %v8170_v1 }
0x15d3   :  { %7663 = vmatprep.subr.bf16.mxu1 %v8168_v0 }
0x15d6   :  { %7665 = vmatpush3.bf16.msra.mxu1 %v8945_v58 }
0x15d7   :  { %7666 = vmatprep.subr.bf16.mxu1 %v8168_v0 }
0x15da   :  { %7668 = vmatpush3.bf16.msra.mxu1 %v8949_v61 }
0x15db   :  { %7669 = vmatprep.subr.bf16.mxu1 %v8168_v0 }
0x15de   :  { %7671 = vmatpush3.bf16.msra.mxu1 %v8953_v2 }
0x15df   :  { %7672 = vmatprep.subr.bf16.mxu1 %v8168_v0 }
0x15e2   :  { %7674 = vmatpush3.bf16.msra.mxu1 %v8957_v6 }
0x15e3   :  { %7675 = vmatprep.subr.bf16.mxu1 %v8168_v0 }
0x15e6   :  { %7677 = vmatpush3.bf16.msra.mxu1 %v8961_v10 }
0x15e7   :  { %7678 = vmatprep.subr.bf16.mxu1 %v8168_v0 }
0x15ea   :  { %7680 = vmatpush3.bf16.msra.mxu1 %v8965_v5 }
0x15eb   :  { %7681 = vmatprep.subr.bf16.mxu1 %v8168_v0 }
0x15ee   :  { %7683 = vmatpush3.bf16.msra.mxu1 %v8969_v13 }
0x15ef   :  { %7708 = vmatprep.subr.bf16.mxu1 %v8168_v0 }
0x16a4   :  { %v3188_v45 = vpop.f32.mrb[42].mxu1 }
0x16a5   :  { %v3192_v48 = vadd.f32 %v3188_v45, %v2803_v42  ;;  %v6364_v49 = vpop.f32.mrb[43].mxu1  ;;  %v3717_v45 = vld [vmem:[#allocation6 + $0x270] sm:$0xff] }
0x16a7   :  { %8043 = vtanh.f32 %v3192_v48  ;;  %v3718_v48 = vld [vmem:[#allocation6 + $0x278] sm:$0xff] }
0x16a8   :  { %v9184_v49 = vpack.c.bf16 %v3718_v48, %v3717_v45  ;;  %v4309_v45 = vld [vmem:[#allocation8 + $0x38] sm:$0xff] }
0x16b1   :  { %v9105_v52 = vpop.eup %8043 }
0x16b2   :  { %6398 = vmatmul.mubr.f32.vlgmr.msra.gmra.mrb[44].mxu0 %v9105_v52 }
0x16b3   :  { %7686 = vmatpush3.bf16.msra.mxu0 %v8941_v54  ;;  %6467 = vmatprep.mubr.msk.f32.mxu0 %vm8169_vm0, %v8170_v1 }
0x16b4   :  { %7687 = vmatprep.subr.bf16.mxu0 %v8168_v0 }
0x16b7   :  { %7689 = vmatpush3.bf16.msra.mxu0 %v8945_v58 }
0x16b8   :  { %7690 = vmatprep.subr.bf16.mxu0 %v8168_v0 }
0x16bb   :  { %7692 = vmatpush3.bf16.msra.mxu0 %v8949_v61 }
0x16bc   :  { %7693 = vmatprep.subr.bf16.mxu0 %v8168_v0 }
0x16bf   :  { %7695 = vmatpush3.bf16.msra.mxu0 %v8953_v2 }
0x16c0   :  { %7696 = vmatprep.subr.bf16.mxu0 %v8168_v0 }
0x16c3   :  { %7698 = vmatpush3.bf16.msra.mxu0 %v8957_v6 }
0x16c4   :  { %7699 = vmatprep.subr.bf16.mxu0 %v8168_v0 }
0x16c7   :  { %7701 = vmatpush3.bf16.msra.mxu0 %v8961_v10 }
0x16c8   :  { %7702 = vmatprep.subr.bf16.mxu0 %v8168_v0 }
0x16cb   :  { %7704 = vmatpush3.bf16.msra.mxu0 %v8965_v5 }
0x16cc   :  { %7705 = vmatprep.subr.bf16.mxu0 %v8168_v0 }
0x16cf   :  { %7707 = vmatpush3.bf16.msra.mxu0 %v8969_v13 }
0x1785   :  { %v3278_v55 = vpop.f32.mrb[44].mxu0 }
0x1786   :  { %v3282_v56 = vadd.f32 %v3278_v55, %v2808_v53  ;;  %v6399_v59 = vpop.f32.mrb[45].mxu0 }
0x1788   :  { %8045 = vtanh.f32 %v3282_v56 }
0x1792   :  { %v9127_v60 = vpop.eup %8045 }
0x1793   :  { %6433 = vmatmul.mubr.f32.vlgmr.msra.gmra.mrb[44].mxu1 %v9127_v60 }
0x1794   :  { %7710 = vmatpush3.bf16.msra.mxu1 %v8941_v54  ;;  %6502 = vmatprep.mubr.msk.f32.mxu1 %vm8169_vm0, %v8170_v1  ;;  %v3564_v54 = vld [vmem:[#allocation3 + $0x180] sm:$0xff] }
0x1795   :  { %7711 = vmatprep.subr.bf16.mxu1 %v8168_v0 }
0x1798   :  { %7713 = vmatpush3.bf16.msra.mxu1 %v8945_v58  ;;  %v3565_v58 = vld [vmem:[#allocation3 + $0x188] sm:$0xff] }
0x1799   :  { %7714 = vmatprep.subr.bf16.mxu1 %v8168_v0 }
0x179c   :  { %7716 = vmatpush3.bf16.msra.mxu1 %v8949_v61  ;;  %v7732_v61 = vpack.c.bf16 %v3565_v58, %v3564_v54 }
0x179d   :  { %7717 = vmatprep.subr.bf16.mxu1 %v8168_v0 }
0x179e   :  { %7733 = vmatprep.subr.bf16.mxu0 %v7732_v61 }
0x17a0   :  { %7719 = vmatpush3.bf16.msra.mxu1 %v8953_v2 }
0x17a1   :  { %7720 = vmatprep.subr.bf16.mxu1 %v8168_v0 }
0x17a4   :  { %7722 = vmatpush3.bf16.msra.mxu1 %v8957_v6  ;;  %v3567_v6 = vld [vmem:[#allocation3 + $0x198] sm:$0xff] }
0x17a5   :  { %7723 = vmatprep.subr.bf16.mxu1 %v8168_v0  ;;  %v7736_v8 = vpack.c.bf16 %v3567_v6, %v3566_v4 }
0x17a8   :  { %7725 = vmatpush3.bf16.msra.mxu1 %v8961_v10  ;;  %v3568_v10 = vld [vmem:[#allocation3 + $0x1a0] sm:$0xff] }
0x17a9   :  { %7726 = vmatprep.subr.bf16.mxu1 %v8168_v0  ;;  %v7740_v11 = vpack.c.bf16 %v3569_v51, %v3568_v10 }
0x17ac   :  { %7728 = vmatpush3.bf16.msra.mxu1 %v8965_v5  ;;  %v3570_v5 = vld [vmem:[#allocation3 + $0x1b0] sm:$0xff] }
0x17ad   :  { %7729 = vmatprep.subr.bf16.mxu1 %v8168_v0  ;;  %v7744_v12 = vpack.c.bf16 %v3571_v7, %v3570_v5 }
0x17b0   :  { %7731 = vmatpush3.bf16.msra.mxu1 %v8969_v13  ;;  %v3572_v13 = vld [vmem:[#allocation3 + $0x1c0] sm:$0xff] }
0x17b1   :  { %7764 = vmatprep.subr.bf16.mxu1 %v8168_v0  ;;  %v7748_v15 = vpack.c.bf16 %v3573_v14, %v3572_v13 }
0x1866   :  { %v3368_v63 = vpop.f32.mrb[44].mxu1 }
0x1867   :  { %v3372_v2 = vadd.f32 %v3368_v63, %v2813_v19  ;;  %v6434_v3 = vpop.f32.mrb[45].mxu1  ;;  %v2823_v63 = vadd.f32 %v9053_v50, %v9029_v30 }
0x1869   :  { %8047 = vtanh.f32 %v3372_v2 }
0x1873   :  { %v8048_v9 = vpop.eup %8047 }
0x1874   :  { %6468 = vmatmul.mubr.f32.vlgmr.msra.gmra.mrb[46].mxu0 %v8048_v9 }
0x1875   :  { %7735 = vmatpush3.bf16.msra.mxu0 %v7732_v61  ;;  %6537 = vmatprep.mubr.f32.mxu0 %v9032_v57  ;;  %v3709_v57 = vld [vmem:[#allocation6 + $0x230] sm:$0xff] }
0x1876   :  { %7737 = vmatprep.subr.bf16.mxu0 %v7736_v8  ;;  %v9168_v37 = vpack.c.bf16 %v3710_v36, %v3709_v57 }
0x1879   :  { %7739 = vmatpush3.bf16.msra.mxu0 %v7736_v8  ;;  %v9244_v8 = vld [vmem:[%s9382_s4 + $0x4] ss:$0 sm:$0xff] }
0x187a   :  { %7741 = vmatprep.subr.bf16.mxu0 %v7740_v11 }
0x187d   :  { %7743 = vmatpush3.bf16.msra.mxu0 %v7740_v11 }
0x187e   :  { %7745 = vmatprep.subr.bf16.mxu0 %v7744_v12 }
0x1881   :  { %7747 = vmatpush3.bf16.msra.mxu0 %v7744_v12 }
0x1882   :  { %7749 = vmatprep.subr.bf16.mxu0 %v7748_v15 }
0x1885   :  { %7751 = vmatpush3.bf16.msra.mxu0 %v7748_v15 }
0x1886   :  { %7753 = vmatprep.subr.bf16.mxu0 %v7752_v21 }
0x1889   :  { %7755 = vmatpush3.bf16.msra.mxu0 %v7752_v21 }
0x188a   :  { %7757 = vmatprep.subr.bf16.mxu0 %v7756_v16 }
0x188d   :  { %7759 = vmatpush3.bf16.msra.mxu0 %v7756_v16 }
0x188e   :  { %7761 = vmatprep.subr.bf16.mxu0 %v7760_v40 }
0x1891   :  { %7763 = vmatpush3.bf16.msra.mxu0 %v7760_v40 }
0x1892   :  { %7788 = vmatprep.subr.bf16.mxu0 %v8168_v0 }
0x1894   :  { %6538 = vmatmul.mubr.f32.vlgmr.msra.gmra.mrb[48].mxu0 %v9059_v41  ;;  %v9172_v41 = vpack.c.bf16 %v3712_v39, %v3711_v38  ;;  %v4303_v38 = vld [vmem:[#allocation8 + $0x8] sm:$0xff]  ;;  %v4304_v39 = vld [vmem:[#allocation8 + $0x10] sm:$0xff] }
0x1895   :  { %6540 = vmatprep.mubr.f32.mxu0 %v9082_v47  ;;  %7790 = vmatpush3.bf16.msra.mxu0 %v9156_v27  ;;  %v3716_v47 = vld [vmem:[#allocation6 + $0x268] sm:$0xff]  ;;  %v7960_v44 = vpack.c.bf16 %v4305_v43, %v4304_v39 }
0x1896   :  { %7791 = vmatprep.subr.bf16.mxu0 %v8168_v0  ;;  %v9180_v42 = vpack.c.bf16 %v3716_v47, %v3715_v24  ;;  %v4307_v24 = vld [vmem:[#allocation8 + $0x28] sm:$0xff] }
0x1898   :  { %6541 = vmatmul.mubr.f32.gmra.mrb[50].mxu0 %v9105_v52  ;;  %v2818_v52 = vadd.f32 %v9029_v30, %v9055_v35 }
0x1899   :  { %6543 = vmatprep.mubr.f32.mxu0 %v9127_v60  ;;  %7793 = vmatpush3.bf16.msra.mxu0 %v9160_v31 }
0x189a   :  { %7794 = vmatprep.subr.bf16.mxu0 %v8168_v0 }
0x189c   :  { %6544 = vmatmul.mubr.f32.gmra.mrb[52].mxu0 %v8048_v9 }
0x189d   :  { %7796 = vmatpush3.bf16.msra.mxu0 %v9164_v34 }
0x189e   :  { %7797 = vmatprep.subr.bf16.mxu0 %v8168_v0 }
0x18a1   :  { %7799 = vmatpush3.bf16.msra.mxu0 %v9168_v37 }
0x18a2   :  { %7800 = vmatprep.subr.bf16.mxu0 %v8168_v0 }
0x18a5   :  { %7802 = vmatpush3.bf16.msra.mxu0 %v9172_v41 }
0x18a6   :  { %7803 = vmatprep.subr.bf16.mxu0 %v8168_v0 }
0x18a9   :  { %7805 = vmatpush3.bf16.msra.mxu0 %v9176_v46 }
0x18aa   :  { %7806 = vmatprep.subr.bf16.mxu0 %v8168_v0 }
0x18ad   :  { %7808 = vmatpush3.bf16.msra.mxu0 %v9180_v42 }
0x18ae   :  { %7809 = vmatprep.subr.bf16.mxu0 %v8168_v0 }
0x18b1   :  { %7811 = vmatpush3.bf16.msra.mxu0 %v9184_v49 }
0x18b2   :  { %7836 = vmatprep.subr.bf16.mxu0 %v8168_v0 }
0x1947   :  { %v3458_v53 = vpop.f32.mrb[46].mxu0 }
0x1948   :  { %v3462_v55 = vadd.f32 %v3458_v53, %v2818_v52  ;;  %v6469_v56 = vpop.f32.mrb[47].mxu0 }
0x194a   :  { %8049 = vtanh.f32 %v3462_v55 }
0x1954   :  { %v8050_v59 = vpop.eup %8049 }
0x1955   :  { %6503 = vmatmul.mubr.f32.vlgmr.msra.gmra.mrb[46].mxu1 %v8050_v59  ;;  %6546 = vmatprep.mubr.f32.mxu0 %v8050_v59 }
0x1956   :  { %7766 = vmatpush3.bf16.msra.mxu1 %v9156_v27  ;;  %6581 = vmatprep.mubr.msk.f32.mxu1 %vm8169_vm0, %v8170_v1 }
0x1957   :  { %7767 = vmatprep.subr.bf16.mxu1 %v8168_v0 }
0x195a   :  { %7769 = vmatpush3.bf16.msra.mxu1 %v9160_v31 }
0x195b   :  { %7770 = vmatprep.subr.bf16.mxu1 %v8168_v0 }
0x195e   :  { %7772 = vmatpush3.bf16.msra.mxu1 %v9164_v34 }
0x195f   :  { %7773 = vmatprep.subr.bf16.mxu1 %v8168_v0 }
0x1962   :  { %7775 = vmatpush3.bf16.msra.mxu1 %v9168_v37 }
0x1963   :  { %7776 = vmatprep.subr.bf16.mxu1 %v8168_v0 }
0x1966   :  { %7778 = vmatpush3.bf16.msra.mxu1 %v9172_v41 }
0x1967   :  { %v9201_v35 = vpop.f32.mrb[48].mxu0  ;;  %7779 = vmatprep.subr.bf16.mxu1 %v8168_v0 }
0x1968   :  { %v3654_v60 = vpop.f32.mrb[49].mxu0  ;;  %v3660_v7 = vadd.f32 %v9201_v35, %v9244_v8 }
0x1969   :  { %v3655_v9 = vadd.f32 %v9244_v8, %v3654_v60  ;;  %v4312_v60 = vld [vmem:[#allocation8 + $0x50] sm:$0xff] }
0x196a   :  { %7781 = vmatpush3.bf16.msra.mxu1 %v9176_v46 }
0x196b   :  { %v9205_v54 = vpop.f32.mrb[50].mxu0  ;;  %7782 = vmatprep.subr.bf16.mxu1 %v8168_v0 }
0x196c   :  { %v9208_v58 = vpop.f32.mrb[51].mxu0  ;;  %v3670_v16 = vadd.f32 %v9205_v54, %v9244_v8  ;;  %v4313_v54 = vld [vmem:[#allocation8 + $0x58] sm:$0xff] }
0x196d   :  { %v3665_v17 = vadd.f32 %v9244_v8, %v9208_v58  ;;  %v7972_v58 = vpack.c.bf16 %v4313_v54, %v4312_v60 }
0x196e   :  { %7784 = vmatpush3.bf16.msra.mxu1 %v9180_v42 }
0x196f   :  { %v9211_v61 = vpop.f32.mrb[52].mxu0  ;;  %7785 = vmatprep.subr.bf16.mxu1 %v8168_v0 }
0x1970   :  { %v9214_v19 = vpop.f32.mrb[53].mxu0 }
0x1971   :  { %v3675_v26 = vadd.f32 %v9244_v8, %v9214_v19  ;;  %v4315_v19 = vld [vmem:[#allocation8 + $0x68] sm:$0xff] }
0x1972   :  { %7787 = vmatpush3.bf16.msra.mxu1 %v9184_v49 }
0x1973   :  { %7812 = vmatprep.subr.bf16.mxu1 %v8168_v0 }
0x1975   :  { %6582 = vmatmul.mubr.f32.vlgmr.msra.gmra.mrb[48].mxu1 %v8170_v1 }
0x1976   :  { %7814 = vmatpush3.bf16.msra.mxu1 %v9156_v27  ;;  %6651 = vmatprep.mubr.msk.f32.mxu1 %vm8169_vm0, %v8170_v1 }
0x1977   :  { %7815 = vmatprep.subr.bf16.mxu1 %v8168_v0 }
0x197a   :  { %7817 = vmatpush3.bf16.msra.mxu1 %v9160_v31 }
0x197b   :  { %7818 = vmatprep.subr.bf16.mxu1 %v8168_v0 }
0x197e   :  { %7820 = vmatpush3.bf16.msra.mxu1 %v9164_v34 }
0x197f   :  { %7821 = vmatprep.subr.bf16.mxu1 %v8168_v0 }
0x1982   :  { %7823 = vmatpush3.bf16.msra.mxu1 %v9168_v37 }
0x1983   :  { %7824 = vmatprep.subr.bf16.mxu1 %v8168_v0 }
0x1986   :  { %7826 = vmatpush3.bf16.msra.mxu1 %v9172_v41 }
0x1987   :  { %7827 = vmatprep.subr.bf16.mxu1 %v8168_v0 }
0x198a   :  { %7829 = vmatpush3.bf16.msra.mxu1 %v9176_v46 }
0x198b   :  { %7830 = vmatprep.subr.bf16.mxu1 %v8168_v0 }
0x198e   :  { %7832 = vmatpush3.bf16.msra.mxu1 %v9180_v42 }
0x198f   :  { %7833 = vmatprep.subr.bf16.mxu1 %v8168_v0 }
0x1992   :  { %7835 = vmatpush3.bf16.msra.mxu1 %v9184_v49 }
0x1993   :  { %7860 = vmatprep.subr.bf16.mxu1 %v8168_v0 }
0x1a28   :  { %v3548_v2 = vpop.f32.mrb[46].mxu1 }
0x1a29   :  { %v3552_v3 = vadd.f32 %v3548_v2, %v2823_v63  ;;  %v6504_v4 = vpop.f32.mrb[47].mxu1  ;;  %v4316_v2 = vld [vmem:[#allocation8 + $0x70] sm:$0xff] }
0x1a2b   :  { %8051 = vtanh.f32 %v3552_v3  ;;  %v4317_v3 = vld [vmem:[#allocation8 + $0x78] sm:$0xff] }
0x1a2c   :  { %v7978_v4 = vpack.c.bf16 %v4317_v3, %v4316_v2 }
0x1a35   :  { %v8052_v6 = vpop.eup %8051 }
0x1a36   :  { %6547 = vmatmul.mubr.f32.gmra.mrb[54].mxu0 %v8052_v6 }
0x1a37   :  { %6616 = vmatprep.mubr.msk.f32.mxu0 %vm8169_vm0, %v8170_v1 }
0x1a48   :  { %v3785_v10 = vpop.f32.mrb[48].mxu1 }
0x1a49   :  { %v3789_v51 = vadd.f32 %v3785_v10, %v3655_v9  ;;  %v6583_v11 = vpop.f32.mrb[49].mxu1 }
0x1a4b   :  { %8053 = vtanh.f32 %v3789_v51 }
0x1a55   :  { %v8054_v30 = vpop.eup %8053 }
0x1a56   :  { %6617 = vmatmul.mubr.f32.vlgmr.msra.gmra.mrb[56].mxu0 %v8054_v30  ;;  %v4430_v30 = vld [vmem:[%s9384_s6] ss:$0 sm:$0xff] }
0x1a57   :  { %7838 = vmatpush3.bf16.msra.mxu0 %v9156_v27  ;;  %6686 = vmatprep.mubr.msk.f32.mxu0 %vm8169_vm0, %v8170_v1 }
0x1a58   :  { %7839 = vmatprep.subr.bf16.mxu0 %v8168_v0 }
0x1a5b   :  { %7841 = vmatpush3.bf16.msra.mxu0 %v9160_v31 }
0x1a5c   :  { %7842 = vmatprep.subr.bf16.mxu0 %v8168_v0 }
0x1a5f   :  { %7844 = vmatpush3.bf16.msra.mxu0 %v9164_v34 }
0x1a60   :  { %7845 = vmatprep.subr.bf16.mxu0 %v8168_v0 }
0x1a63   :  { %7847 = vmatpush3.bf16.msra.mxu0 %v9168_v37 }
0x1a64   :  { %7848 = vmatprep.subr.bf16.mxu0 %v8168_v0 }
0x1a67   :  { %7850 = vmatpush3.bf16.msra.mxu0 %v9172_v41 }
0x1a68   :  { %7851 = vmatprep.subr.bf16.mxu0 %v8168_v0 }
0x1a6b   :  { %7853 = vmatpush3.bf16.msra.mxu0 %v9176_v46 }
0x1a6c   :  { %7854 = vmatprep.subr.bf16.mxu0 %v8168_v0 }
0x1a6f   :  { %7856 = vmatpush3.bf16.msra.mxu0 %v9180_v42 }
0x1a70   :  { %7857 = vmatprep.subr.bf16.mxu0 %v8168_v0 }
0x1a73   :  { %7859 = vmatpush3.bf16.msra.mxu0 %v9184_v49 }
0x1a74   :  { %7884 = vmatprep.subr.bf16.mxu0 %v8168_v0 }
0x1b09   :  { %v9265_v50 = vpop.f32.mrb[54].mxu0 }
0x1b0a   :  { %v9267_v5 = vpop.f32.mrb[55].mxu0  ;;  %v3690_v6 = vadd.f32 %v9265_v50, %v9244_v8 }
0x1b0b   :  { %v3685_v53 = vadd.f32 %v9244_v8, %v9267_v5 }
0x1b29   :  { %v3858_v12 = vpop.f32.mrb[56].mxu0 }
0x1b2a   :  { %v3862_v13 = vadd.f32 %v3858_v12, %v3660_v7  ;;  %v6618_v14 = vpop.f32.mrb[57].mxu0 }
0x1b2c   :  { %8055 = vtanh.f32 %v3862_v13 }
0x1b36   :  { %v8056_v15 = vpop.eup %8055 }
0x1b37   :  { %6652 = vmatmul.mubr.f32.vlgmr.msra.gmra.mrb[50].mxu1 %v8056_v15 }
0x1b38   :  { %7862 = vmatpush3.bf16.msra.mxu1 %v9156_v27  ;;  %6721 = vmatprep.mubr.msk.f32.mxu1 %vm8169_vm0, %v8170_v1 }
0x1b39   :  { %7863 = vmatprep.subr.bf16.mxu1 %v8168_v0 }
0x1b3c   :  { %7865 = vmatpush3.bf16.msra.mxu1 %v9160_v31 }
0x1b3d   :  { %7866 = vmatprep.subr.bf16.mxu1 %v8168_v0 }
0x1b40   :  { %7868 = vmatpush3.bf16.msra.mxu1 %v9164_v34 }
0x1b41   :  { %7869 = vmatprep.subr.bf16.mxu1 %v8168_v0 }
0x1b44   :  { %7871 = vmatpush3.bf16.msra.mxu1 %v9168_v37 }
0x1b45   :  { %7872 = vmatprep.subr.bf16.mxu1 %v8168_v0 }
0x1b48   :  { %7874 = vmatpush3.bf16.msra.mxu1 %v9172_v41 }
0x1b49   :  { %7875 = vmatprep.subr.bf16.mxu1 %v8168_v0 }
0x1b4c   :  { %7877 = vmatpush3.bf16.msra.mxu1 %v9176_v46 }
0x1b4d   :  { %7878 = vmatprep.subr.bf16.mxu1 %v8168_v0 }
0x1b50   :  { %7880 = vmatpush3.bf16.msra.mxu1 %v9180_v42 }
0x1b51   :  { %7881 = vmatprep.subr.bf16.mxu1 %v8168_v0 }
0x1b54   :  { %7883 = vmatpush3.bf16.msra.mxu1 %v9184_v49 }
0x1b55   :  { %7908 = vmatprep.subr.bf16.mxu1 %v8168_v0 }
0x1c0a   :  { %v3931_v18 = vpop.f32.mrb[50].mxu1 }
0x1c0b   :  { %v3935_v21 = vadd.f32 %v3931_v18, %v3665_v17  ;;  %v6653_v62 = vpop.f32.mrb[51].mxu1 }
0x1c0d   :  { %8057 = vtanh.f32 %v3935_v21 }
0x1c17   :  { %v8058_v22 = vpop.eup %8057 }
0x1c18   :  { %6687 = vmatmul.mubr.f32.vlgmr.msra.gmra.mrb[58].mxu0 %v8058_v22 }
0x1c19   :  { %7886 = vmatpush3.bf16.msra.mxu0 %v9156_v27  ;;  %6756 = vmatprep.mubr.msk.f32.mxu0 %vm8169_vm0, %v8170_v1 }
0x1c1a   :  { %7887 = vmatprep.subr.bf16.mxu0 %v8168_v0 }
0x1c1d   :  { %7889 = vmatpush3.bf16.msra.mxu0 %v9160_v31 }
0x1c1e   :  { %7890 = vmatprep.subr.bf16.mxu0 %v8168_v0 }
0x1c21   :  { %7892 = vmatpush3.bf16.msra.mxu0 %v9164_v34 }
0x1c22   :  { %7893 = vmatprep.subr.bf16.mxu0 %v8168_v0 }
0x1c25   :  { %7895 = vmatpush3.bf16.msra.mxu0 %v9168_v37 }
0x1c26   :  { %7896 = vmatprep.subr.bf16.mxu0 %v8168_v0 }
0x1c29   :  { %7898 = vmatpush3.bf16.msra.mxu0 %v9172_v41 }
0x1c2a   :  { %7899 = vmatprep.subr.bf16.mxu0 %v8168_v0 }
0x1c2d   :  { %7901 = vmatpush3.bf16.msra.mxu0 %v9176_v46 }
0x1c2e   :  { %7902 = vmatprep.subr.bf16.mxu0 %v8168_v0 }
0x1c31   :  { %7904 = vmatpush3.bf16.msra.mxu0 %v9180_v42 }
0x1c32   :  { %7905 = vmatprep.subr.bf16.mxu0 %v8168_v0 }
0x1c35   :  { %7907 = vmatpush3.bf16.msra.mxu0 %v9184_v49 }
0x1c36   :  { %7932 = vmatprep.subr.bf16.mxu0 %v8168_v0 }
0x1ceb   :  { %v4004_v20 = vpop.f32.mrb[58].mxu0 }
0x1cec   :  { %v4008_v23 = vadd.f32 %v4004_v20, %v3670_v16  ;;  %v6688_v40 = vpop.f32.mrb[59].mxu0 }
0x1cee   :  { %8059 = vtanh.f32 %v4008_v23 }
0x1cf8   :  { %v8060_v25 = vpop.eup %8059 }
0x1cf9   :  { %6722 = vmatmul.mubr.f32.vlgmr.msra.gmra.mrb[52].mxu1 %v8060_v25 }
0x1cfa   :  { %7910 = vmatpush3.bf16.msra.mxu1 %v9156_v27  ;;  %6791 = vmatprep.mubr.msk.f32.mxu1 %vm8169_vm0, %v8170_v1 }
0x1cfb   :  { %7911 = vmatprep.subr.bf16.mxu1 %v8168_v0 }
0x1cfe   :  { %7913 = vmatpush3.bf16.msra.mxu1 %v9160_v31 }
0x1cff   :  { %7914 = vmatprep.subr.bf16.mxu1 %v8168_v0 }
0x1d02   :  { %7916 = vmatpush3.bf16.msra.mxu1 %v9164_v34 }
0x1d03   :  { %7917 = vmatprep.subr.bf16.mxu1 %v8168_v0 }
0x1d06   :  { %7919 = vmatpush3.bf16.msra.mxu1 %v9168_v37 }
0x1d07   :  { %7920 = vmatprep.subr.bf16.mxu1 %v8168_v0 }
0x1d0a   :  { %7922 = vmatpush3.bf16.msra.mxu1 %v9172_v41 }
0x1d0b   :  { %7923 = vmatprep.subr.bf16.mxu1 %v8168_v0 }
0x1d0e   :  { %7925 = vmatpush3.bf16.msra.mxu1 %v9176_v46 }
0x1d0f   :  { %7926 = vmatprep.subr.bf16.mxu1 %v8168_v0 }
0x1d12   :  { %7928 = vmatpush3.bf16.msra.mxu1 %v9180_v42 }
0x1d13   :  { %7929 = vmatprep.subr.bf16.mxu1 %v8168_v0 }
0x1d16   :  { %7931 = vmatpush3.bf16.msra.mxu1 %v9184_v49 }
0x1d17   :  { %7956 = vmatprep.subr.bf16.mxu1 %v8168_v0 }
0x1dcc   :  { %v4077_v28 = vpop.f32.mrb[52].mxu1 }
0x1dcd   :  { %v4081_v29 = vadd.f32 %v4077_v28, %v3675_v26  ;;  %v6723_v32 = vpop.f32.mrb[53].mxu1 }
0x1dcf   :  { %8061 = vtanh.f32 %v4081_v29 }
0x1dd9   :  { %v8062_v33 = vpop.eup %8061 }
0x1dda   :  { %6757 = vmatmul.mubr.f32.vlgmr.msra.gmra.mrb[60].mxu0 %v8062_v33 }
0x1ddb   :  { %7934 = vmatpush3.bf16.msra.mxu0 %v9156_v27  ;;  %6826 = vmatprep.mubr.msk.f32.mxu0 %vm8169_vm0, %v8170_v1  ;;  %v3680_v27 = vadd.f32 %v9211_v61, %v9244_v8  ;;  %v4314_v61 = vld [vmem:[#allocation8 + $0x60] sm:$0xff] }
0x1ddc   :  { %7935 = vmatprep.subr.bf16.mxu0 %v8168_v0  ;;  %v7975_v63 = vpack.c.bf16 %v4315_v19, %v4314_v61 }
0x1ddf   :  { %7937 = vmatpush3.bf16.msra.mxu0 %v9160_v31 }
0x1de0   :  { %7938 = vmatprep.subr.bf16.mxu0 %v8168_v0 }
0x1de3   :  { %7940 = vmatpush3.bf16.msra.mxu0 %v9164_v34 }
0x1de4   :  { %7941 = vmatprep.subr.bf16.mxu0 %v8168_v0 }
0x1de7   :  { %7943 = vmatpush3.bf16.msra.mxu0 %v9168_v37  ;;  %v4302_v37 = vld [vmem:[#allocation8] sm:$0xff] }
0x1de8   :  { %7944 = vmatprep.subr.bf16.mxu0 %v8168_v0 }
0x1deb   :  { %7946 = vmatpush3.bf16.msra.mxu0 %v9172_v41  ;;  %v7957_v41 = vpack.c.bf16 %v4303_v38, %v4302_v37 }
0x1dec   :  { %7947 = vmatprep.subr.bf16.mxu0 %v8168_v0 }
0x1def   :  { %7949 = vmatpush3.bf16.msra.mxu0 %v9176_v46  ;;  %v4306_v46 = vld [vmem:[#allocation8 + $0x20] sm:$0xff] }
0x1df0   :  { %7950 = vmatprep.subr.bf16.mxu0 %v8168_v0  ;;  %v7963_v47 = vpack.c.bf16 %v4307_v24, %v4306_v46 }
0x1df3   :  { %7952 = vmatpush3.bf16.msra.mxu0 %v9180_v42  ;;  %v4308_v42 = vld [vmem:[#allocation8 + $0x30] sm:$0xff] }
0x1df4   :  { %7953 = vmatprep.subr.bf16.mxu0 %v8168_v0  ;;  %v7966_v48 = vpack.c.bf16 %v4309_v45, %v4308_v42 }
0x1df7   :  { %7955 = vmatpush3.bf16.msra.mxu0 %v9184_v49  ;;  %v4311_v49 = vld [vmem:[#allocation8 + $0x48] sm:$0xff] }
0x1ead   :  { %v4150_v31 = vpop.f32.mrb[60].mxu0 }
0x1eae   :  { %v4154_v34 = vadd.f32 %v4150_v31, %v3680_v27  ;;  %v6758_v57 = vpop.f32.mrb[61].mxu0 }
0x1eb0   :  { %8063 = vtanh.f32 %v4154_v34 }
0x1eba   :  { %v8064_v36 = vpop.eup %8063 }
0x1ebb   :  { %6792 = vmatmul.mubr.f32.vlgmr.msra.gmra.mrb[54].mxu1 %v8064_v36 }
0x1ebc   :  { %6861 = vmatprep.mubr.msk.f32.mxu1 %vm8169_vm0, %v8170_v1  ;;  %7958 = vmatpush3.bf16.msra.mxu1 %v7957_v41  ;;  %v4310_v1 = vld [vmem:[#allocation8 + $0x40] sm:$0xff] }
0x1ebd   :  { %7959 = vmatprep.subr.bf16.mxu1 %v8168_v0  ;;  %v7969_v52 = vpack.c.bf16 %v4311_v49, %v4310_v1 }
0x1ec0   :  { %7961 = vmatpush3.bf16.msra.mxu1 %v7960_v44 }
0x1ec1   :  { %7962 = vmatprep.subr.bf16.mxu1 %v8168_v0 }
0x1ec4   :  { %7964 = vmatpush3.bf16.msra.mxu1 %v7963_v47 }
0x1ec5   :  { %7965 = vmatprep.subr.bf16.mxu1 %v8168_v0 }
0x1ec8   :  { %7967 = vmatpush3.bf16.msra.mxu1 %v7966_v48 }
0x1ec9   :  { %7968 = vmatprep.subr.bf16.mxu1 %v8168_v0 }
0x1ecc   :  { %7970 = vmatpush3.bf16.msra.mxu1 %v7969_v52 }
0x1ecd   :  { %7971 = vmatprep.subr.bf16.mxu1 %v8168_v0 }
0x1ed0   :  { %7973 = vmatpush3.bf16.msra.mxu1 %v7972_v58 }
0x1ed1   :  { %7974 = vmatprep.subr.bf16.mxu1 %v8168_v0 }
0x1ed4   :  { %7976 = vmatpush3.bf16.msra.mxu1 %v7975_v63 }
0x1ed5   :  { %7977 = vmatprep.subr.bf16.mxu1 %v8168_v0 }
0x1ed8   :  { %7979 = vmatpush3.bf16.msra.mxu1 %v7978_v4 }
0x1f8e   :  { %v4223_v55 = vpop.f32.mrb[54].mxu1 }
0x1f8f   :  { %v4227_v56 = vadd.f32 %v4223_v55, %v3685_v53  ;;  %v6793_v59 = vpop.f32.mrb[55].mxu1 }
0x1f91   :  { %8065 = vtanh.f32 %v4227_v56 }
0x1f9b   :  { %v8066_v35 = vpop.eup %8065 }
0x1f9c   :  { %6827 = vmatmul.mubr.f32.vlgmr.msra.gmra.mrb[62].mxu0 %v8066_v35 }
0x206f   :  { %v4296_v9 = vpop.f32.mrb[62].mxu0 }
0x2070   :  { %v4300_v10 = vadd.f32 %v4296_v9, %v3690_v6  ;;  %v6828_v51 = vpop.f32.mrb[63].mxu0 }
0x2072   :  { %8067 = vtanh.f32 %v4300_v10 }
0x207c   :  { %v8068_v11 = vpop.eup %8067 }
0x207d   :  { %6862 = vmatmul.mubr.f32.vlgmr.msra.gmra.mrb[56].mxu1 %v8068_v11 }
0x2150   :  { %v4391_v5 = vpop.f32.mrb[56].mxu1 }
0x2151   :  { %v4392_v7 = vadd.f32 %v4430_v30, %v4391_v5  ;;  %v6863_v12 = vpop.f32.mrb[57].mxu1 }
0x2153   :  { %4395 = vst [vmem:[#allocation9] sm:$0xff] %v4392_v7 }
0x2154   :  { %8146 = shalt.err (!%p8143_p0)
}
0x2155   :  { %s8147_s1 = scalar_lea.hbm %s9385_s7, 128 }
0x2156   :  { %p8148_p1 = scmp.ne.s32.totalorder %s9385_s7, %s8147_s1  ;;  %p8151_p2 = scmp.lt.u32.totalorder %s8147_s1, %s9385_s7 }
0x2158   :  { %p8153_p3 = pnand %p8151_p2, %p8148_p1 }
0x215a   :  { %8156 = shalt.err (!%p8153_p3)
}
0x215b   :  { %4405 = dma.vmem_to_hbm [thread:$0]  %s4403_s19, 128, %s9385_s7, [#allocation5]  }
0x215c   :  { %8161 = dma.done.wait [#allocation5], 128  }
0x215d   :  { %8162 = vsyncadd [#allocation5], 4294967168 }
0x215e   :  { %4409 = vsyncpa [#allocation4], 1 }
0x215f   :  { %4410 = vsyncpa [#allocation7], 1 }
0x2160   :  { %4411 = vsyncpa [#allocation5], 1 }

</bundles_post_ra>
